<compile_context>
chip_gen: v7x
topology: tpu7x:2x2x1
jax: 0.10.0
libtpu: 0.0.40
codegen_flags: <defaults>
</compile_context>

<pallas_src>
import functools

import jax
import jax.numpy as jnp
from jax import lax
from jax.experimental import pallas as pl
from jax.experimental.pallas import tpu as pltpu


LANE = 128


def _round_up(x, m):
    return (x + m - 1) // m * m


def _derive_vmem():
    cap = 64 * 1024 * 1024  # conservative (v7x-sized) fallback
    try:
        info = pltpu.get_tpu_info()
        cap = int(getattr(info, "vmem_capacity_bytes", cap))
    except Exception:
        pass
    limit = min(cap * 3 // 4, 112 * 1024 * 1024)     # per-call scoped VMEM limit
    budget = min(cap * 9 // 20, 64 * 1024 * 1024)    # tile-size search budget
    return limit, budget


_VMEM_LIMIT_BYTES, _TILE_BUDGET_BYTES = _derive_vmem()

_COMPILER_PARAMS = pltpu.CompilerParams(
    dimension_semantics=("parallel", "parallel"),
    vmem_limit_bytes=_VMEM_LIMIT_BYTES,
)


def _pick_rows(total, bytes_fn, budget, *, even=False, max_rows=None):
    """Largest divisor of `total` whose estimated VMEM footprint fits `budget`."""
    best = None
    smallest = None
    for c in range(1, total + 1):
        if total % c:
            continue
        if even and c % 2:
            continue
        if smallest is None:
            smallest = c
        if max_rows is not None and c > max_rows:
            continue
        if bytes_fn(c) <= budget:
            best = c
    return best if best is not None else smallest


# ----------------------------------------------------------------------------
# Kernel 1: ConvTranspose2d(k=3, s=2, p=1, output_padding=1) + bias
#           computed as 4 output-parity phases on the un-dilated input,
#           output(N)-axis fused weights -> 4 matmuls, zero LHS/RHS concats.
# ----------------------------------------------------------------------------
def _upconv_kernel(xmid_ref, xbot_ref, w_ref, b_ref, o_ref, xwin, *, th, W, cmid_p):
    C = cmid_p
    f32 = jnp.float32
    dn = (((2,), (0,)), ((), ()))

    # Assemble the (th+1, W+1, cin_p) haloed window (halo row/col already exists
    # in the HBM input, so this is a plain copy of two auto-pipelined blocks).
    xwin[0:th] = xmid_ref[0]
    xwin[th] = xbot_ref[0, 0]

    bias = b_ref[...]                         # (1, C) f32

    x00 = xwin[0:th, 0:W, :]                  # x[i,   j  ]
    x01 = xwin[0:th, 1:W + 1, :]              # x[i,   j+1]
    x10 = xwin[1:th + 1, 0:W, :]              # x[i+1, j  ]
    x11 = xwin[1:th + 1, 1:W + 1, :]          # x[i+1, j+1]

    m00 = lax.dot_general(x00, w_ref[:, 0:4 * C], dn, preferred_element_type=f32)
    m01 = lax.dot_general(x01, w_ref[:, 4 * C:6 * C], dn, preferred_element_type=f32)
    m10 = lax.dot_general(x10, w_ref[:, 6 * C:8 * C], dn, preferred_element_type=f32)
    m11 = lax.dot_general(x11, w_ref[:, 8 * C:9 * C], dn, preferred_element_type=f32)

    p00 = m00[..., 0 * C:1 * C] + bias
    p01 = m00[..., 1 * C:2 * C] + m01[..., 0:C] + bias
    p10 = m00[..., 2 * C:3 * C] + m10[..., 0:C] + bias
    p11 = m00[..., 3 * C:4 * C] + m01[..., C:2 * C] + m10[..., C:2 * C] + m11 + bias

    dt = o_ref.dtype
    o_ref[0, :, 0, :, 0:C] = p00.astype(dt)         # even row / even col
    o_ref[0, :, 0, :, C:2 * C] = p01.astype(dt)     # even row / odd  col
    o_ref[0, :, 1, :, 0:C] = p10.astype(dt)         # odd  row / even col
    o_ref[0, :, 1, :, C:2 * C] = p11.astype(dt)     # odd  row / odd  col


def conv_transpose2x_pallas(x_hal, w_iohw, bias, *, out_dtype=jnp.bfloat16,
                            max_rows=None):
    """x_hal: (N, H+1, W+1, cin_p) bf16, channel-padded, zero halo row/col at
    bottom/right.  w_iohw: (cin, cmid, 3, 3).  Returns (N, 2H, 2W, cmid_p)."""
    N, Hp1, Wp1, cin_p = x_hal.shape
    H, W = Hp1 - 1, Wp1 - 1
    cin, cmid = w_iohw.shape[0], w_iohw.shape[1]
    cmid_p = _round_up(cmid, LANE)

    wp = jnp.zeros((cin_p, cmid_p, 3, 3), jnp.float32)
    wp = wp.at[:cin, :cmid].set(w_iohw.astype(jnp.float32))

    def tap(kh, kw):
        return wp[:, :, kh, kw]

    # Output-axis fused parity weights; column blocks are lane-aligned.
    w_all = jnp.concatenate([
        tap(1, 1), tap(1, 2), tap(2, 1), tap(2, 2),   # applied to x[i,   j  ]
        tap(1, 0), tap(2, 0),                         # applied to x[i,   j+1]
        tap(0, 1), tap(0, 2),                         # applied to x[i+1, j  ]
        tap(0, 0),                                    # applied to x[i+1, j+1]
    ], axis=1).astype(jnp.bfloat16)                   # (cin_p, 9*cmid_p)

    b = jnp.zeros((1, cmid_p), jnp.float32).at[0, :cmid].set(bias.astype(jnp.float32))

    def tile_bytes(c):
        return (2 * (c + 1) * Wp1 * cin_p * 2                 # x blocks (double buf)
                + 2 * cin_p * 9 * cmid_p * 2                  # weights (double buf)
                + 2 * c * 2 * W * 2 * cmid_p * 2              # output block (double buf)
                + (c + 1) * Wp1 * cin_p * 2                   # xwin scratch
                + c * W * (9 * cmid_p * 4 + 4 * cmid_p * 4    # matmul / parity temps
                           + 4 * cmid_p * 2 + 4 * cin_p * 2))

    th = _pick_rows(H, tile_bytes, _TILE_BUDGET_BYTES, max_rows=max_rows)
    T = H // th

    kern = functools.partial(_upconv_kernel, th=th, W=W, cmid_p=cmid_p)
    out5 = pl.pallas_call(
        kern,
        out_shape=jax.ShapeDtypeStruct((N, H, 2, W, 2 * cmid_p), out_dtype),
        grid=(N, T),
        in_specs=[
            pl.BlockSpec((1, th, Wp1, cin_p), lambda n, t: (n, t, 0, 0)),
            pl.BlockSpec((1, 1, Wp1, cin_p), lambda n, t: (n, t * th + th, 0, 0)),
            pl.BlockSpec((cin_p, 9 * cmid_p), lambda n, t: (0, 0)),
            pl.BlockSpec((1, cmid_p), lambda n, t: (0, 0)),
        ],
        out_specs=pl.BlockSpec((1, th, 2, W, 2 * cmid_p),
                               lambda n, t: (n, t, 0, 0, 0)),
        scratch_shapes=[pltpu.VMEM((th + 1, Wp1, cin_p), jnp.bfloat16)],
        compiler_params=_COMPILER_PARAMS,
    )(x_hal, x_hal, w_all, b)

    # (N, H, 2, W, 2*cmid_p) is a contiguous row-major view of (N, 2H, 2W, cmid_p)
    return out5.reshape(N, 2 * H, 2 * W, cmid_p)


# ----------------------------------------------------------------------------
# Kernel 2: fused double_conv = (3x3 conv + folded-BN affine + ReLU) x 2
#           conv1 runs with a 1-row recompute halo into a VMEM z-buffer; conv2
#           reads it directly -> the intermediate never touches HBM.
# ----------------------------------------------------------------------------
def _double_conv_kernel(ytop_ref, ymid_ref, ybot_ref,
                        w1_ref, s1_ref, b1_ref, w2_ref, s2_ref, b2_ref,
                        o_ref, ybuf, zbuf, *, TO, Wo, cmid_p, cout_p):
    t = pl.program_id(1)
    T = pl.num_programs(1)
    f32 = jnp.float32
    dn = (((2,), (0,)), ((), ()))

    # ---- assemble the (TO+4, Wo+2, cmid_p) y window (zero conv-padding halos) --
    zcol = jnp.zeros((TO + 4, cmid_p), ybuf.dtype)
    ybuf[:, 0, :] = zcol
    ybuf[:, Wo + 1, :] = zcol
    top_valid = (t > 0).astype(ybuf.dtype)
    bot_valid = (t < T - 1).astype(ybuf.dtype)
    ybuf[0:2, 1:Wo + 1, :] = ytop_ref[0] * top_valid
    ybuf[2:TO + 2, 1:Wo + 1, :] = ymid_ref[0]
    ybuf[TO + 2:TO + 4, 1:Wo + 1, :] = ybot_ref[0] * bot_valid

    # ---- conv1 (3x3 "same") + affine + ReLU over TO+2 rows (recompute halo) ----
    R1 = TO + 2
    acc1 = None
    for ky in range(3):
        patches = jnp.concatenate(
            [ybuf[ky:ky + R1, kx:kx + Wo, :] for kx in range(3)], axis=-1)
        d = lax.dot_general(patches, w1_ref[ky], dn, preferred_element_type=f32)
        acc1 = d if acc1 is None else acc1 + d
    z = jnp.maximum(acc1 * s1_ref[...] + b1_ref[...], 0.0)      # (TO+2, Wo, cout_p)

    zcol2 = jnp.zeros((R1, cout_p), zbuf.dtype)
    zbuf[:, 0, :] = zcol2
    zbuf[:, Wo + 1, :] = zcol2
    zbuf[:, 1:Wo + 1, :] = z.astype(zbuf.dtype)

    zrow = jnp.zeros((Wo + 2, cout_p), zbuf.dtype)

    @pl.when(t == 0)
    def _():
        zbuf[0] = zrow            # conv2 top padding row

    @pl.when(t == T - 1)
    def _():
        zbuf[TO + 1] = zrow       # conv2 bottom padding row

    # ---- conv2 (3x3 "same") + affine + ReLU over the TO output rows ------------
    acc2 = None
    for ky in range(3):
        patches = jnp.concatenate(
            [zbuf[ky:ky + TO, kx:kx + Wo, :] for kx in range(3)], axis=-1)
        d = lax.dot_general(patches, w2_ref[ky], dn, preferred_element_type=f32)
        acc2 = d if acc2 is None else acc2 + d
    out = jnp.maximum(acc2 * s2_ref[...] + b2_ref[...], 0.0)
    o_ref[0] = out.astype(o_ref.dtype)


def double_conv_pallas(y, w1_hwio, s1, b1, w2_hwio, s2, b2, *,
                       out_dtype=jnp.float32, max_rows=None):
    """y: (N, Ho, Wo, cmid_p) bf16, channel-padded.
    Fused (conv3x3 -> BN -> ReLU) x 2 with a single HBM round trip."""
    N, Ho, Wo, cmid_p = y.shape
    cin1, cout = w1_hwio.shape[2], w1_hwio.shape[3]
    cin2 = w2_hwio.shape[2]
    cout_p = _round_up(cout, LANE)

    w1 = jnp.zeros((3, 3, cmid_p, cout_p), jnp.float32)
    w1 = w1.at[:, :, :cin1, :cout].set(w1_hwio.astype(jnp.float32))
    w1 = w1.reshape(3, 3 * cmid_p, cout_p).astype(jnp.bfloat16)

    w2 = jnp.zeros((3, 3, cout_p, cout_p), jnp.float32)
    w2 = w2.at[:, :, :cin2, :cout].set(w2_hwio.astype(jnp.float32))
    w2 = w2.reshape(3, 3 * cout_p, cout_p).astype(jnp.bfloat16)

    def vec(v):
        return jnp.zeros((1, cout_p), jnp.float32).at[0, :cout].set(
            v.astype(jnp.float32))

    s1v, b1v, s2v, b2v = vec(s1), vec(b1), vec(s2), vec(b2)
    out_isz = jnp.dtype(out_dtype).itemsize

    def tile_bytes(c):
        return (2 * (c + 4) * Wo * cmid_p * 2                           # y blocks
                + 2 * 9 * (cmid_p + cout_p) * cout_p * 2                # weights
                + 2 * c * Wo * cout_p * out_isz                         # output block
                + (c + 4) * (Wo + 2) * cmid_p * 2                       # ybuf
                + (c + 2) * (Wo + 2) * cout_p * 2                       # zbuf
                + (c + 2) * Wo * (2 * 3 * cmid_p * 2 + 2 * cout_p * 4)  # conv1 temps
                + c * Wo * (2 * 3 * cout_p * 2 + 2 * cout_p * 4))       # conv2 temps

    TO = _pick_rows(Ho, tile_bytes, _TILE_BUDGET_BYTES, even=True, max_rows=max_rows)
    T = Ho // TO
    half = TO // 2
    n_row_pairs = Ho // 2

    kern = functools.partial(_double_conv_kernel, TO=TO, Wo=Wo,
                             cmid_p=cmid_p, cout_p=cout_p)
    return pl.pallas_call(
        kern,
        out_shape=jax.ShapeDtypeStruct((N, Ho, Wo, cout_p), out_dtype),
        grid=(N, T),
        in_specs=[
            pl.BlockSpec((1, 2, Wo, cmid_p),
                         lambda n, t: (n, jnp.maximum(t * half - 1, 0), 0, 0)),
            pl.BlockSpec((1, TO, Wo, cmid_p), lambda n, t: (n, t, 0, 0)),
            pl.BlockSpec((1, 2, Wo, cmid_p),
                         lambda n, t: (n, jnp.minimum(t * half + half,
                                                      n_row_pairs - 1), 0, 0)),
            pl.BlockSpec((3, 3 * cmid_p, cout_p), lambda n, t: (0, 0, 0)),
            pl.BlockSpec((1, cout_p), lambda n, t: (0, 0)),
            pl.BlockSpec((1, cout_p), lambda n, t: (0, 0)),
            pl.BlockSpec((3, 3 * cout_p, cout_p), lambda n, t: (0, 0, 0)),
            pl.BlockSpec((1, cout_p), lambda n, t: (0, 0)),
            pl.BlockSpec((1, cout_p), lambda n, t: (0, 0)),
        ],
        out_specs=pl.BlockSpec((1, TO, Wo, cout_p), lambda n, t: (n, t, 0, 0)),
        scratch_shapes=[
            pltpu.VMEM((TO + 4, Wo + 2, cmid_p), jnp.bfloat16),
            pltpu.VMEM((TO + 2, Wo + 2, cout_p), jnp.bfloat16),
        ],
        compiler_params=_COMPILER_PARAMS,
    )(y, y, y, w1, s1v, b1v, w2, s2v, b2v)


# ----------------------------------------------------------------------------
# Parameters (deterministic synthetic init matching the PyTorch shapes)
# ----------------------------------------------------------------------------
def init_params(key, in_ch, out_ch):
    mid = in_ch // 2
    ks = jax.random.split(key, 16)
    p = {}
    # ConvTranspose2d weight layout: (Cin, Cout, kH, kW); bias: (Cout,)
    p["up_w"] = 0.1 * jax.random.normal(ks[0], (in_ch, mid, 3, 3), jnp.float32)
    p["up_b"] = 0.05 * jax.random.normal(ks[1], (mid,), jnp.float32)
    # double_conv first Conv2d: (Cout, Cin, kH, kW)
    p["c1_w"] = 0.1 * jax.random.normal(ks[2], (out_ch, mid, 3, 3), jnp.float32)
    p["c1_b"] = 0.05 * jax.random.normal(ks[3], (out_ch,), jnp.float32)
    p["bn1_gamma"] = 1.0 + 0.1 * jax.random.normal(ks[4], (out_ch,), jnp.float32)
    p["bn1_beta"] = 0.05 * jax.random.normal(ks[5], (out_ch,), jnp.float32)
    p["bn1_mean"] = 0.02 * jax.random.normal(ks[6], (out_ch,), jnp.float32)
    p["bn1_var"] = 1.0 + 0.1 * jax.random.uniform(ks[7], (out_ch,), jnp.float32)
    # double_conv second Conv2d: (Cout, Cout, kH, kW)
    p["c2_w"] = 0.1 * jax.random.normal(ks[8], (out_ch, out_ch, 3, 3), jnp.float32)
    p["c2_b"] = 0.05 * jax.random.normal(ks[9], (out_ch,), jnp.float32)
    p["bn2_gamma"] = 1.0 + 0.1 * jax.random.normal(ks[10], (out_ch,), jnp.float32)
    p["bn2_beta"] = 0.05 * jax.random.normal(ks[11], (out_ch,), jnp.float32)
    p["bn2_mean"] = 0.02 * jax.random.normal(ks[12], (out_ch,), jnp.float32)
    p["bn2_var"] = 1.0 + 0.1 * jax.random.uniform(ks[13], (out_ch,), jnp.float32)
    return p


# ----------------------------------------------------------------------------
# `up.forward` using the Pallas kernels (x2 is unused in the reference module)
# ----------------------------------------------------------------------------
def up_forward_pallas(x_nchw, p, eps=1e-5, *, k1_max_rows=None, k2_max_rows=None):
    x = jnp.transpose(x_nchw, (0, 2, 3, 1))            # NCHW -> NHWC
    N, H, W, cin = x.shape
    cin_p = _round_up(cin, LANE)
    out_ch = p["c1_w"].shape[0]

    # channel pad to a lane multiple + bf16 cast + 1px bottom/right zero halo,
    # all folded into the single layout-change copy (no separate jnp.pad pass).
    x_hal = jnp.zeros((N, H + 1, W + 1, cin_p), jnp.bfloat16)
    x_hal = x_hal.at[:, :H, :W, :cin].set(x.astype(jnp.bfloat16))

    # --- ConvTranspose2d(k=3, s=2, p=1, op=1) + bias ------------------------
    y = conv_transpose2x_pallas(x_hal, p["up_w"], p["up_b"],
                                out_dtype=jnp.bfloat16, max_rows=k1_max_rows)

    # --- fused double_conv: (Conv2d 3x3 -> folded BN -> ReLU) x 2 -----------
    def fold_bn(b, gamma, beta, mean, var):
        s = gamma / jnp.sqrt(var + eps)
        return s, (b - mean) * s + beta

    s1, b1 = fold_bn(p["c1_b"], p["bn1_gamma"], p["bn1_beta"],
                     p["bn1_mean"], p["bn1_var"])
    s2, b2 = fold_bn(p["c2_b"], p["bn2_gamma"], p["bn2_beta"],
                     p["bn2_mean"], p["bn2_var"])
    w1 = jnp.transpose(p["c1_w"], (2, 3, 1, 0))        # OIHW -> HWIO
    w2 = jnp.transpose(p["c2_w"], (2, 3, 1, 0))
    out = double_conv_pallas(y, w1, s1, b1, w2, s2, b2,
                             out_dtype=jnp.float32, max_rows=k2_max_rows)

    out = out[..., :out_ch]                            # drop channel padding
    return jnp.transpose(out, (0, 3, 1, 2))            # NHWC -> NCHW


# ----------------------------------------------------------------------------
# Pure-JAX reference (mirrors PyTorch semantics, inference-mode BN, f32)
# ----------------------------------------------------------------------------
def up_forward_ref(x_nchw, p, eps=1e-5):
    dn = ("NCHW", "OIHW", "NCHW")
    w_t = jnp.transpose(jnp.flip(p["up_w"], (2, 3)), (1, 0, 2, 3))
    y = lax.conv_general_dilated(x_nchw, w_t, (1, 1), ((1, 2), (1, 2)),
                                 lhs_dilation=(2, 2), dimension_numbers=dn)
    y = y + p["up_b"][None, :, None, None]

    def cbr(x, w, b, g, beta, m, v):
        z = lax.conv_general_dilated(x, w, (1, 1), ((1, 1), (1, 1)),
                                     dimension_numbers=dn)
        z = z + b[None, :, None, None]
        z = (z - m[None, :, None, None]) / jnp.sqrt(v[None, :, None, None] + eps)
        z = z * g[None, :, None, None] + beta[None, :, None, None]
        return jnp.maximum(z, 0.0)

    y = cbr(y, p["c1_w"], p["c1_b"], p["bn1_gamma"], p["bn1_beta"],
            p["bn1_mean"], p["bn1_var"])
    y = cbr(y, p["c2_w"], p["c2_b"], p["bn2_gamma"], p["bn2_beta"],
            p["bn2_mean"], p["bn2_var"])
    return y


if __name__ == "__main__":
    N, in_ch, out_ch, H, W = 2, 4, 4, 16, 16
    key = jax.random.PRNGKey(0)
    kx_, kp_ = jax.random.split(key)
    x = jax.random.normal(kx_, (N, in_ch, H, W), jnp.float32)   # NCHW, like PyTorch
    params = init_params(kp_, in_ch, out_ch)

    ref = jax.block_until_ready(up_forward_ref(x, params))

    # default (largest-fitting) tiles
    out = jax.block_until_ready(up_forward_pallas(x, params))
    assert out.shape == (N, out_ch, 2 * H, 2 * W), out.shape
    err = float(jnp.max(jnp.abs(out - ref)))
    assert jnp.allclose(out, ref, atol=5e-2, rtol=5e-2), err

    # forced small tiles: exercises the multi-tile / boundary-halo code paths
    out_t = jax.block_until_ready(
        up_forward_pallas(x, params, k1_max_rows=8, k2_max_rows=8))
    err_t = float(jnp.max(jnp.abs(out_t - ref)))
    assert jnp.allclose(out_t, ref, atol=5e-2, rtol=5e-2), err_t

    print("KERNEL_OK")
</pallas_src>

<mosaic_0001>
module attributes {stable_mosaic.version = 11 : i64} {
  func.func @_upconv_kernel(%arg0: i32, %arg1: i32, %arg2: memref<1x16x17x128xbf16, #tpu.memory_space<vmem>>, %arg3: memref<1x1x17x128xbf16, #tpu.memory_space<vmem>>, %arg4: memref<128x1152xbf16, #tpu.memory_space<vmem>>, %arg5: memref<1x128xf32, #tpu.memory_space<vmem>>, %arg6: memref<1x16x2x16x256xbf16, #tpu.memory_space<vmem>>, %arg7: memref<17x17x128xbf16, #tpu.memory_space<vmem>>) attributes {dimension_semantics = [#tpu.dimension_semantics<parallel>, #tpu.dimension_semantics<parallel>], iteration_bounds = array<i64: 2, 1>, scalar_prefetch = 0 : i64, scratch_operands = 1 : i64, tpu.core_type = #tpu.core_type<tc>, window_params = [{transform_indices = @transform_0, window_bounds = array<i64: 1, 16, 17, 128>}, {transform_indices = @transform_1, window_bounds = array<i64: 1, 1, 17, 128>}, {pipeline_mode = #tpu.pipeline_mode<synchronous>, transform_indices = @transform_2, window_bounds = array<i64: 128, 1152>}, {pipeline_mode = #tpu.pipeline_mode<synchronous>, transform_indices = @transform_3, window_bounds = array<i64: 1, 128>}, {transform_indices = @transform_4, window_bounds = array<i64: 1, 16, 2, 16, 256>}]} {
    %c0 = arith.constant 0 : index
    %c0_0 = arith.constant 0 : index
    %c0_1 = arith.constant 0 : index
    %c0_2 = arith.constant 0 : index
    %0 = vector.load %arg2[%c0, %c0_0, %c0_1, %c0_2] : memref<1x16x17x128xbf16, #tpu.memory_space<vmem>>, vector<1x16x17x128xbf16>
    %1 = vector.shape_cast %0 : vector<1x16x17x128xbf16> to vector<16x17x128xbf16>
    %c0_3 = arith.constant 0 : index
    %c0_4 = arith.constant 0 : index
    %c0_5 = arith.constant 0 : index
    %2 = vector.load %arg7[%c0_3, %c0_4, %c0_5] : memref<17x17x128xbf16, #tpu.memory_space<vmem>>, vector<16x17x128xbf16>
    tpu.vector_store %arg7[%c0_3, %c0_4, %c0_5], %1 {strides = array<i32>} : memref<17x17x128xbf16, #tpu.memory_space<vmem>>, vector<16x17x128xbf16>,
    %c0_6 = arith.constant 0 : index
    %c0_7 = arith.constant 0 : index
    %c0_8 = arith.constant 0 : index
    %c0_9 = arith.constant 0 : index
    %3 = vector.load %arg3[%c0_6, %c0_7, %c0_8, %c0_9] : memref<1x1x17x128xbf16, #tpu.memory_space<vmem>>, vector<1x1x17x128xbf16>
    %4 = vector.shape_cast %3 : vector<1x1x17x128xbf16> to vector<17x128xbf16>
    %c16 = arith.constant 16 : index
    %c0_10 = arith.constant 0 : index
    %c0_11 = arith.constant 0 : index
    %5 = vector.load %arg7[%c16, %c0_10, %c0_11] : memref<17x17x128xbf16, #tpu.memory_space<vmem>>, vector<1x17x128xbf16>
    %6 = vector.shape_cast %5 : vector<1x17x128xbf16> to vector<17x128xbf16>
    %7 = vector.shape_cast %4 : vector<17x128xbf16> to vector<1x17x128xbf16>
    tpu.vector_store %arg7[%c16, %c0_10, %c0_11], %7 {strides = array<i32>} : memref<17x17x128xbf16, #tpu.memory_space<vmem>>, vector<1x17x128xbf16>,
    %c0_12 = arith.constant 0 : index
    %c0_13 = arith.constant 0 : index
    %8 = vector.load %arg5[%c0_12, %c0_13] : memref<1x128xf32, #tpu.memory_space<vmem>>, vector<1x128xf32>
    %c0_14 = arith.constant 0 : index
    %c0_15 = arith.constant 0 : index
    %c0_16 = arith.constant 0 : index
    %9 = vector.load %arg7[%c0_14, %c0_15, %c0_16] : memref<17x17x128xbf16, #tpu.memory_space<vmem>>, vector<16x16x128xbf16>
    %c0_17 = arith.constant 0 : index
    %c1 = arith.constant 1 : index
    %c0_18 = arith.constant 0 : index
    %10 = vector.load %arg7[%c0_17, %c1, %c0_18] : memref<17x17x128xbf16, #tpu.memory_space<vmem>>, vector<16x16x128xbf16>
    %c1_19 = arith.constant 1 : index
    %c0_20 = arith.constant 0 : index
    %c0_21 = arith.constant 0 : index
    %11 = vector.load %arg7[%c1_19, %c0_20, %c0_21] : memref<17x17x128xbf16, #tpu.memory_space<vmem>>, vector<16x16x128xbf16>
    %c1_22 = arith.constant 1 : index
    %c1_23 = arith.constant 1 : index
    %c0_24 = arith.constant 0 : index
    %12 = vector.load %arg7[%c1_22, %c1_23, %c0_24] : memref<17x17x128xbf16, #tpu.memory_space<vmem>>, vector<16x16x128xbf16>
    %c0_25 = arith.constant 0 : index
    %c0_26 = arith.constant 0 : index
    %13 = vector.load %arg4[%c0_25, %c0_26] : memref<128x1152xbf16, #tpu.memory_space<vmem>>, vector<128x512xbf16>
    %cst = arith.constant dense<0.000000e+00> : vector<16x16x512xf32>
    %14 = tpu.matmul %9, %13, %cst {dimension_numbers = #tpu.dot_dimension_numbers<[2], [0], [0, 1], [1], [0, 0, 0, 1, 1, 1], [], []>} : vector<16x16x128xbf16>, vector<128x512xbf16>, vector<16x16x512xf32> -> vector<16x16x512xf32>
    %c0_27 = arith.constant 0 : index
    %c512 = arith.constant 512 : index
    %15 = vector.load %arg4[%c0_27, %c512] : memref<128x1152xbf16, #tpu.memory_space<vmem>>, vector<128x256xbf16>
    %cst_28 = arith.constant dense<0.000000e+00> : vector<16x16x256xf32>
    %16 = tpu.matmul %10, %15, %cst_28 {dimension_numbers = #tpu.dot_dimension_numbers<[2], [0], [0, 1], [1], [0, 0, 0, 1, 1, 1], [], []>} : vector<16x16x128xbf16>, vector<128x256xbf16>, vector<16x16x256xf32> -> vector<16x16x256xf32>
    %c0_29 = arith.constant 0 : index
    %c768 = arith.constant 768 : index
    %17 = vector.load %arg4[%c0_29, %c768] : memref<128x1152xbf16, #tpu.memory_space<vmem>>, vector<128x256xbf16>
    %cst_30 = arith.constant dense<0.000000e+00> : vector<16x16x256xf32>
    %18 = tpu.matmul %11, %17, %cst_30 {dimension_numbers = #tpu.dot_dimension_numbers<[2], [0], [0, 1], [1], [0, 0, 0, 1, 1, 1], [], []>} : vector<16x16x128xbf16>, vector<128x256xbf16>, vector<16x16x256xf32> -> vector<16x16x256xf32>
    %c0_31 = arith.constant 0 : index
    %c1024 = arith.constant 1024 : index
    %19 = vector.load %arg4[%c0_31, %c1024] : memref<128x1152xbf16, #tpu.memory_space<vmem>>, vector<128x128xbf16>
    %cst_32 = arith.constant dense<0.000000e+00> : vector<16x16x128xf32>
    %20 = tpu.matmul %12, %19, %cst_32 {dimension_numbers = #tpu.dot_dimension_numbers<[2], [0], [0, 1], [1], [0, 0, 0, 1, 1, 1], [], []>} : vector<16x16x128xbf16>, vector<128x128xbf16>, vector<16x16x128xf32> -> vector<16x16x128xf32>
    %21 = vector.extract_strided_slice %14 {offsets = [0, 0, 0], sizes = [16, 16, 128], strides = [1, 1, 1]} : vector<16x16x512xf32> to vector<16x16x128xf32>
    %22 = vector.shape_cast %8 : vector<1x128xf32> to vector<1x1x128xf32>
    %23 = vector.broadcast %22 : vector<1x1x128xf32> to vector<16x16x128xf32>
    %24 = arith.addf %21, %23 : vector<16x16x128xf32>
    %25 = vector.extract_strided_slice %14 {offsets = [0, 0, 128], sizes = [16, 16, 128], strides = [1, 1, 1]} : vector<16x16x512xf32> to vector<16x16x128xf32>
    %26 = vector.extract_strided_slice %16 {offsets = [0, 0, 0], sizes = [16, 16, 128], strides = [1, 1, 1]} : vector<16x16x256xf32> to vector<16x16x128xf32>
    %27 = arith.addf %25, %26 : vector<16x16x128xf32>
    %28 = vector.shape_cast %8 : vector<1x128xf32> to vector<1x1x128xf32>
    %29 = vector.broadcast %28 : vector<1x1x128xf32> to vector<16x16x128xf32>
    %30 = arith.addf %27, %29 : vector<16x16x128xf32>
    %31 = vector.extract_strided_slice %14 {offsets = [0, 0, 256], sizes = [16, 16, 128], strides = [1, 1, 1]} : vector<16x16x512xf32> to vector<16x16x128xf32>
    %32 = vector.extract_strided_slice %18 {offsets = [0, 0, 0], sizes = [16, 16, 128], strides = [1, 1, 1]} : vector<16x16x256xf32> to vector<16x16x128xf32>
    %33 = arith.addf %31, %32 : vector<16x16x128xf32>
    %34 = vector.shape_cast %8 : vector<1x128xf32> to vector<1x1x128xf32>
    %35 = vector.broadcast %34 : vector<1x1x128xf32> to vector<16x16x128xf32>
    %36 = arith.addf %33, %35 : vector<16x16x128xf32>
    %37 = vector.extract_strided_slice %14 {offsets = [0, 0, 384], sizes = [16, 16, 128], strides = [1, 1, 1]} : vector<16x16x512xf32> to vector<16x16x128xf32>
    %38 = vector.extract_strided_slice %16 {offsets = [0, 0, 128], sizes = [16, 16, 128], strides = [1, 1, 1]} : vector<16x16x256xf32> to vector<16x16x128xf32>
    %39 = arith.addf %37, %38 : vector<16x16x128xf32>
    %40 = vector.extract_strided_slice %18 {offsets = [0, 0, 128], sizes = [16, 16, 128], strides = [1, 1, 1]} : vector<16x16x256xf32> to vector<16x16x128xf32>
    %41 = arith.addf %39, %40 : vector<16x16x128xf32>
    %42 = arith.addf %41, %20 : vector<16x16x128xf32>
    %43 = vector.shape_cast %8 : vector<1x128xf32> to vector<1x1x128xf32>
    %44 = vector.broadcast %43 : vector<1x1x128xf32> to vector<16x16x128xf32>
    %45 = arith.addf %42, %44 : vector<16x16x128xf32>
    %46 = arith.truncf %24 : vector<16x16x128xf32> to vector<16x16x128xbf16>
    %c0_33 = arith.constant 0 : index
    %c0_34 = arith.constant 0 : index
    %c0_35 = arith.constant 0 : index
    %c0_36 = arith.constant 0 : index
    %c0_37 = arith.constant 0 : index
    %47 = vector.load %arg6[%c0_33, %c0_34, %c0_35, %c0_36, %c0_37] : memref<1x16x2x16x256xbf16, #tpu.memory_space<vmem>>, vector<1x16x1x16x128xbf16>
    %48 = vector.shape_cast %47 : vector<1x16x1x16x128xbf16> to vector<16x16x128xbf16>
    %49 = vector.shape_cast %46 : vector<16x16x128xbf16> to vector<1x16x1x16x128xbf16>
    tpu.vector_store %arg6[%c0_33, %c0_34, %c0_35, %c0_36, %c0_37], %49 {strides = array<i32>} : memref<1x16x2x16x256xbf16, #tpu.memory_space<vmem>>, vector<1x16x1x16x128xbf16>,
    %50 = arith.truncf %30 : vector<16x16x128xf32> to vector<16x16x128xbf16>
    %c0_38 = arith.constant 0 : index
    %c0_39 = arith.constant 0 : index
    %c0_40 = arith.constant 0 : index
    %c0_41 = arith.constant 0 : index
    %c128 = arith.constant 128 : index
    %51 = vector.load %arg6[%c0_38, %c0_39, %c0_40, %c0_41, %c128] : memref<1x16x2x16x256xbf16, #tpu.memory_space<vmem>>, vector<1x16x1x16x128xbf16>
    %52 = vector.shape_cast %51 : vector<1x16x1x16x128xbf16> to vector<16x16x128xbf16>
    %53 = vector.shape_cast %50 : vector<16x16x128xbf16> to vector<1x16x1x16x128xbf16>
    tpu.vector_store %arg6[%c0_38, %c0_39, %c0_40, %c0_41, %c128], %53 {strides = array<i32>} : memref<1x16x2x16x256xbf16, #tpu.memory_space<vmem>>, vector<1x16x1x16x128xbf16>,
    %54 = arith.truncf %36 : vector<16x16x128xf32> to vector<16x16x128xbf16>
    %c0_42 = arith.constant 0 : index
    %c0_43 = arith.constant 0 : index
    %c1_44 = arith.constant 1 : index
    %c0_45 = arith.constant 0 : index
    %c0_46 = arith.constant 0 : index
    %55 = vector.load %arg6[%c0_42, %c0_43, %c1_44, %c0_45, %c0_46] : memref<1x16x2x16x256xbf16, #tpu.memory_space<vmem>>, vector<1x16x1x16x128xbf16>
    %56 = vector.shape_cast %55 : vector<1x16x1x16x128xbf16> to vector<16x16x128xbf16>
    %57 = vector.shape_cast %54 : vector<16x16x128xbf16> to vector<1x16x1x16x128xbf16>
    tpu.vector_store %arg6[%c0_42, %c0_43, %c1_44, %c0_45, %c0_46], %57 {strides = array<i32>} : memref<1x16x2x16x256xbf16, #tpu.memory_space<vmem>>, vector<1x16x1x16x128xbf16>,
    %58 = arith.truncf %45 : vector<16x16x128xf32> to vector<16x16x128xbf16>
    %c0_47 = arith.constant 0 : index
    %c0_48 = arith.constant 0 : index
    %c1_49 = arith.constant 1 : index
    %c0_50 = arith.constant 0 : index
    %c128_51 = arith.constant 128 : index
    %59 = vector.load %arg6[%c0_47, %c0_48, %c1_49, %c0_50, %c128_51] : memref<1x16x2x16x256xbf16, #tpu.memory_space<vmem>>, vector<1x16x1x16x128xbf16>
    %60 = vector.shape_cast %59 : vector<1x16x1x16x128xbf16> to vector<16x16x128xbf16>
    %61 = vector.shape_cast %58 : vector<16x16x128xbf16> to vector<1x16x1x16x128xbf16>
    tpu.vector_store %arg6[%c0_47, %c0_48, %c1_49, %c0_50, %c128_51], %61 {strides = array<i32>} : memref<1x16x2x16x256xbf16, #tpu.memory_space<vmem>>, vector<1x16x1x16x128xbf16>,
    return
  }
  func.func @transform_0(%arg0: i32, %arg1: i32) -> (i32, i32, i32, i32) {
    %c0_i32 = arith.constant 0 : i32
    %c0_i32_0 = arith.constant 0 : i32
    %c0_i32_1 = arith.constant 0 : i32
    return %arg0, %arg1, %c0_i32, %c0_i32_0 : i32, i32, i32, i32
  }
  func.func @transform_1(%arg0: i32, %arg1: i32) -> (i32, i32, i32, i32) {
    %c16_i32 = arith.constant 16 : i32
    %0 = arith.muli %arg1, %c16_i32 : i32
    %c16_i32_0 = arith.constant 16 : i32
    %1 = arith.addi %0, %c16_i32_0 : i32
    %c0_i32 = arith.constant 0 : i32
    %c0_i32_1 = arith.constant 0 : i32
    %c0_i32_2 = arith.constant 0 : i32
    return %arg0, %1, %c0_i32, %c0_i32_1 : i32, i32, i32, i32
  }
  func.func @transform_2(%arg0: i32, %arg1: i32) -> (i32, i32) {
    %c0_i32 = arith.constant 0 : i32
    %c0_i32_0 = arith.constant 0 : i32
    %c0_i32_1 = arith.constant 0 : i32
    return %c0_i32, %c0_i32_0 : i32, i32
  }
  func.func @transform_3(%arg0: i32, %arg1: i32) -> (i32, i32) {
    %c0_i32 = arith.constant 0 : i32
    %c0_i32_0 = arith.constant 0 : i32
    %c0_i32_1 = arith.constant 0 : i32
    return %c0_i32, %c0_i32_0 : i32, i32
  }
  func.func @transform_4(%arg0: i32, %arg1: i32) -> (i32, i32, i32, i32, i32) {
    %c0_i32 = arith.constant 0 : i32
    %c0_i32_0 = arith.constant 0 : i32
    %c0_i32_1 = arith.constant 0 : i32
    %c0_i32_2 = arith.constant 0 : i32
    return %arg0, %arg1, %c0_i32, %c0_i32_0, %c0_i32_1 : i32, i32, i32, i32, i32
  }
}

</mosaic_0001>

<bundles_post_ra>
// kernel: tpu_custom_call.1
= control target key start
LH: loop header
LB: loop body
LE: loop exit
PB: predicated region body
PF: predicated region fallthrough
CT: control target
= control target key end

     0   :  { %9 = vsyncpa [#allocation4], 0  ;;  %s7119_s0 = inlined_call_operand.vmem [shape: bf16[2,17,17,128], index: 0, kind: input, shape index: {}]   ;;  %s7120_s1 = inlined_call_operand.vmem [shape: bf16[2,17,17,128], index: 1, kind: input, shape index: {}]   ;;  %s7121_s2 = inlined_call_operand.vmem [shape: bf16[128,1152], index: 2, kind: input, shape index: {}]   ;;  %s7122_s3 = inlined_call_operand.vmem [shape: f32[1,128], index: 3, kind: input, shape index: {}]   ;;  %s7123_s4 = inlined_call_operand.hbm [shape: bf16[2,16,2,16,256], index: 4, kind: output, shape index: {}]  }
   0x1   :  { %11 = vsyncpa [#allocation4 + $0x1], 0  ;;  %s4938_s15 = smov 0   ;;  %s4940_s16 = smov 0  }
   0x2   :  { %s4942_s17 = smov 0   ;;  %s4944_s18 = smov 0  }
   0x3   :  { %s4946_s19 = smov 0   ;;  %s4948_s20 = smov 0  }
   0x4 LB: > { %s4069_s21 = sadd.s32 4294967295, %s4907_s20   ;;  %s4070_s22 = sadd.s32 4294967294, %s4907_s20   ;;  %s4907_s20 = sphi %s4948_s20, %s17_s20   ;;  %s4903_s19 = sphi %s4946_s19, %s7273_s19   ;;  %s4899_s18 = sphi %s4944_s18, %s7272_s18   ;;  %s4895_s17 = sphi %s4942_s17, %s7271_s17   ;;  %s4891_s16 = sphi %s4940_s16, %s7270_s16   ;;  %s4887_s15 = sphi %s4938_s15, %s7269_s15  }
   0x5   : > { %s29_s23 = sadd.s32 1, %s4903_s19  ;;  %s140_s24 = sadd.s32 1, %s4895_s17 }
   0x6   : > { %p31_p0 = scmp.ge.s32.totalorder %s29_s23, 2  ;;  %p150_p1 = scmp.ne.s32.totalorder %s4895_s17, %s4891_s16 }
   0x7   : > { %p151_p2 = scmp.eq.s32.totalorder %s4069_s21, 1  ;;  %p156_p3 = scmp.ne.s32.totalorder %s4891_s16, %s4887_s15 }
   0x8   : > { %s7275_s23 = smov (%p31_p0, %s29_s23), 0  ;;  %p157_p5 = scmp.eq.s32.totalorder %s4070_s22, 1 }
   0x9   : > { %p4978_p4 = por %p151_p2, %p150_p1  ;;  %s135_s26 = ssub.s32 %s4903_s19, %s7275_s23 }
   0xa   : > { %p4073_p6 = scmp.ge.s32.totalorder %s4907_s20, 1  ;;  %p138_p7 = scmp.eq.s32.totalorder %s135_s26, 0 }
   0xb   : > { %p4985_p8 = por %p157_p5, %p156_p3  ;;  %p221_p9 = scmp.lt.s32.totalorder %s4907_s20, 3 }
   0xc   : > { %s4991_s28 = scalar_select %p138_p7, %s4895_s17, %s140_s24  }
   0xd   : > { %p222_p10 = pnand %p4073_p6, %p221_p9 }
   0xf   : > { %225 = sbr.rel (%p222_p10) target bundleno = 574 (0x23e), region = 36 }
  0x16   : > { %v4691_v0 = vld [vmem:[%s7121_s2 + $0x4] ss:$36 sps:$4 sm:$0xff]   ;;  %p274_p11 = scmp.lt.s32.totalorder %s4899_s18, 1  ;;  %v7124_v2 = vmov 0   ;;  %v4694_v3 = vld [vmem:[%s7121_s2 + $0x4c] ss:$36 sps:$4 sm:$0xff]  }
  0x17   : > { %v4693_v1 = vld [vmem:[%s7121_s2] ss:$36 sps:$4 sm:$0xff]   ;;  %862 = vmatprep.mubr.bf16.mxu0 %v7124_v2  ;;  %982 = vmatprep.mubr.bf16.mxu1 %v7124_v2  ;;  %v4696_v4 = vld [vmem:[%s7121_s2 + $0x48] ss:$36 sps:$4 sm:$0xff]   ;;  %v4697_v5 = vld [vmem:[%s7121_s2 + $0x94] ss:$36 sps:$4 sm:$0xff]  }
  0x18   : > { %830 = vmatprep.subr.bf16.mxu0 %v4691_v0  ;;  %4614 = vmatprep.subr.bf16.mxu1 %v4691_v0  ;;  %s5006_s9 = scalar_select %p274_p11, %s4899_s18, 1  ;;  %v4699_v6 = vld [vmem:[%s7121_s2 + $0x90] ss:$36 sps:$4 sm:$0xff]   ;;  %v4700_v7 = vld [vmem:[%s7121_s2 + $0xdc] ss:$36 sps:$4 sm:$0xff]   ;;  %vm354_vm3 = vcmask 1040384  }
  0x19   : > { %831 = vmatpush1.bf16.msra.mxu0 %v4693_v1  ;;  %4622 = vmatpush1.bf16.msra.mxu1 %v4693_v1  ;;  %v4702_v8 = vld [vmem:[%s7121_s2 + $0xd8] ss:$36 sps:$4 sm:$0xff]   ;;  %v4703_v11 = vld [vmem:[%s7121_s2 + $0x124] ss:$36 sps:$4 sm:$0xff]   ;;  %v4706_v15 = vld [vmem:[%s7121_s2 + $0x16c] ss:$36 sps:$4 sm:$0xff]  }
  0x1a   : > { %832 = vmatprep.subr.bf16.mxu0 %v4694_v3  ;;  %4615 = vmatprep.subr.bf16.mxu1 %v4694_v3  ;;  %s4630_s14 = smul.u32 204, %s5006_s9  ;;  %v4705_v12 = vld [vmem:[%s7121_s2 + $0x120] ss:$36 sps:$4 sm:$0xff]   ;;  %v4708_v17 = vld [vmem:[%s7121_s2 + $0x168] ss:$36 sps:$4 sm:$0xff]   ;;  %s265_s9 = sand.u32 1, %s4891_s16  }
  0x1b   : > { %v4709_v20 = vld [vmem:[%s7121_s2 + $0x1b4] ss:$36 sps:$4 sm:$0xff]   ;;  %vm1232_vm0 = vsmask.f32 3328  ;;  %vm1233_vm1 = vsmask.f32 7440 }
  0x1c   : > { %s5023_s29 = scalar_lea.vmem %s7119_s0, %s4630_s14  ;;  %v4711_v26 = vld [vmem:[%s7121_s2 + $0x1b0] ss:$36 sps:$4 sm:$0xff]   ;;  %v4712_v30 = vld [vmem:[%s7121_s2 + $0x1fc] ss:$36 sps:$4 sm:$0xff]   ;;  %vm5072_vm2 = vmor %vm1232_vm0, %vm1233_vm1  ;;  %vm355_vm4 = vsmask.f32 256 }
  0x1d   : > { %833 = vmatpush1.bf16.msra.mxu0 %v4696_v4  ;;  %4623 = vmatpush1.bf16.msra.mxu1 %v4696_v4  ;;  %v304_v9 = vld [vmem:[%s5023_s29] sm:$0xff]   ;;  %v340_v10 = vld [vmem:[%s5023_s29 + $0x90] sm:$0xff]   ;;  %v310_v24 = vld [vmem:[%s5023_s29 + $0x18] sm:$0xff]   ;;  %s6067_s10 = sshll.u32 %s265_s9, 9  ;;  %s4541_s24 = sshll.u32 %s4899_s18, 13 }
  0x1e   : > { %834 = vmatprep.subr.bf16.mxu0 %v4697_v5  ;;  %4616 = vmatprep.subr.bf16.mxu1 %v4697_v5  ;;  %352 = vst [vmem:[#allocation2] sm:$0xff] %v304_v9   ;;  %415 = vst [vmem:[#allocation2 + $0x90] sm:$0xff] %v340_v10   ;;  %v307_v13 = vld [vmem:[%s5023_s29 + $0xc] sm:$0xff]   ;;  %v343_v14 = vld [vmem:[%s5023_s29 + $0x9c] sm:$0xff]   ;;  %s6117_s11 = scalar_lea.vmem [#allocation3], %s6067_s10  ;;  %s7064_s5 = scalar_lea.hbm %s7123_s4, %s4541_s24 }
  0x1f   : > { %360 = vst [vmem:[#allocation2 + $0xc] sm:$0xff] %v307_v13   ;;  %420 = vst [vmem:[#allocation2 + $0x9c] sm:$0xff] %v343_v14   ;;  %v346_v29 = vld [vmem:[%s5023_s29 + $0xa8] sm:$0xff]   ;;  %v4714_v32 = vld [vmem:[%s7121_s2 + $0x1f8] ss:$36 sps:$4 sm:$0xff]   ;;  %s3966_s26 = sshll.u32 %s6117_s11, 4  ;;  %s7066_s26 = int_to_ptr.vmem [resolvable:$true] %s3966_s26 }
  0x20   : > { %365 = vst [vmem:[#allocation2 + $0x18] sm:$0xff] %v310_v24   ;;  %425 = vst [vmem:[#allocation2 + $0xa8] sm:$0xff] %v346_v29   ;;  %v4719_v41 = vld [vmem:[%s7121_s2 + $0xc] ss:$36 sps:$4 sm:$0xff]   ;;  %v4722_v42 = vld [vmem:[%s7121_s2 + $0x14] ss:$36 sps:$4 sm:$0xff]  }
  0x21   : > { %835 = vmatpush1.bf16.msra.mxu0 %v4699_v6  ;;  %4624 = vmatpush1.bf16.msra.mxu1 %v4699_v6  ;;  %v4717_v47 = vld [vmem:[%s7121_s2 + $0x8] ss:$36 sps:$4 sm:$0xff]   ;;  %v4720_v51 = vld [vmem:[%s7121_s2 + $0x10] ss:$36 sps:$4 sm:$0xff]   ;;  %v4736_v59 = vld [vmem:[%s7121_s2 + $0x5c] ss:$36 sps:$4 sm:$0xff]  }
  0x22   : > { %836 = vmatprep.subr.bf16.mxu0 %v4700_v7  ;;  %4617 = vmatprep.subr.bf16.mxu1 %v4700_v7  ;;  %v313_v50 = vld [vmem:[%s5023_s29 + $0x24] sm:$0xff]   ;;  %v349_v54 = vld [vmem:[%s5023_s29 + $0xb4] sm:$0xff]   ;;  %v4730_v6 = vld [vmem:[%s7121_s2 + $0x9c] ss:$36 sps:$4 sm:$0xff]   ;;  %s7073_s18 = scalar_lea.sflag [#allocation4], %s265_s9  ;;  %s4829_s6 = scalar_lea.vmem %s7066_s26, 8192 }
  0x23   : > { %370 = vst [vmem:[#allocation2 + $0x24] sm:$0xff] %v313_v50   ;;  %v4725_v56 = vld [vmem:[%s7121_s2 + $0x54] ss:$36 sps:$4 sm:$0xff]   ;;  %430 = vst [vmem:[#allocation2 + $0xb4] sm:$0xff] %v349_v54   ;;  %v4752_v7 = vld [vmem:[%s7121_s2 + $0xa4] ss:$36 sps:$4 sm:$0xff]   ;;  %p4830_p12 = scmp.ne.s32.totalorder %s7066_s26, %s4829_s6 }
  0x24   : > { %v4723_v58 = vld [vmem:[%s7121_s2 + $0x50] ss:$36 sps:$4 sm:$0xff]   ;;  %v4734_v63 = vld [vmem:[%s7121_s2 + $0x58] ss:$36 sps:$4 sm:$0xff]   ;;  %v4739_v54 = vld [vmem:[%s7121_s2 + $0x128] ss:$36 sps:$4 sm:$0xff]  }
  0x25   : > { %837 = vmatpush1.bf16.msra.mxu0 %v4702_v8  ;;  %4625 = vmatpush1.bf16.msra.mxu1 %v4702_v8  ;;  %v445_v16 = vld [vmem:[#allocation2] sm:$0xf]  ;;  %v5050_v21 = vld [vmem:[#allocation2 + $0x4] sm:$0xf]  ;;  %v5078_v37 = vld [vmem:[#allocation2 + $0x90] sm:$0xf]  ;;  %p4831_p13 = pnand %p4830_p12, %p4978_p4 }
  0x26   : > { %838 = vmatprep.subr.bf16.mxu0 %v4703_v11  ;;  %4618 = vmatprep.subr.bf16.mxu1 %v4703_v11  ;;  %v1236_v18 = vshrl.u32 %v445_v16, 16  ;;  %v1239_v19 = vshll.u32 %v445_v16, 16  ;;  %v1245_v25 = vshll.u32 %v5050_v21, 16  ;;  %v5057_v28 = vld [vmem:[#allocation2 + $0xc] sm:$0xf]  ;;  %v5095_v45 = vcombine.low %v445_v16, %v5050_v21  ;;  %vm5408_vm5 = vmand %vm354_vm3, %vm355_vm4 }
  0x27   : > { %v1260_v31 = vshrl.u32 %v5057_v28, 16  ;;  %v1263_v34 = vshll.u32 %v5057_v28, 16  ;;  %v5080_v38 = vld [vmem:[#allocation2 + $0x94] sm:$0xf]  ;;  %v5092_v44 = vld [vmem:[#allocation2 + $0x18] sm:$0xf]  ;;  %p4832_p0 = pneg %p4831_p13 }
  0x28   : > { %v1238_v22 = vrot.slane %v1236_v18, 4  ;;  %v1241_v23 = vrot.slane %v1239_v19, 5  ;;  %v5076_v36 = vrot.slane %v1245_v25, 5  ;;  %7156 = vst [vmem:[#allocation6_spill] sm:$0xff] %v5080_v38  ;;  %v5099_v46 = vcombine.low %v5078_v37, %v5080_v38  ;;  %v5104_v48 = vld [vmem:[#allocation2 + $0x10] sm:$0xf] }
  0x29   : > { %839 = vmatpush1.bf16.msra.mxu0 %v4705_v12  ;;  %4626 = vmatpush1.bf16.msra.mxu1 %v4705_v12  ;;  %v1262_v39 = vrot.slane %v1260_v31, 4  ;;  %v1265_v40 = vrot.slane %v1263_v34, 5  ;;  %v1284_v49 = vshrl.u32 %v5092_v44, 16  ;;  %v1269_v52 = vshll.u32 %v5104_v48, 16  ;;  %v5123_v60 = vld [vmem:[#allocation2 + $0x1c] sm:$0xf] }
  0x2a   : > { %840 = vmatprep.subr.bf16.mxu0 %v4706_v15  ;;  %4619 = vmatprep.subr.bf16.mxu1 %v4706_v15  ;;  %v1242_v27 = vor.u32 %v1241_v23, %v1238_v22  ;;  %7157 = vst [vmem:[#allocation7_spill] sm:$0xff] %v5099_v46  ;;  %v1287_v53 = vshll.u32 %v5092_v44, 16  ;;  %v5127_v62 = vld [vmem:[#allocation2 + $0x9c] sm:$0xf]  ;;  %v1293_v0 = vshll.u32 %v5123_v60, 16  ;;  %v5155_v10 = vcombine.low %v5057_v28, %v5104_v48 }
  0x2b   : > { %v1266_v55 = vor.u32 %v1265_v40, %v1262_v39  ;;  %v1286_v57 = vrot.slane %v1284_v49, 4  ;;  %7158 = vst [vmem:[#allocation8_spill] sm:$0xff] %v5127_v62  ;;  %v5133_v1 = vrot.slane %v1269_v52, 5  ;;  %v5135_v3 = vld [vmem:[#allocation2 + $0xa0] sm:$0xf]  ;;  %v1249_v18 = vshrl.u32 %v5050_v21, 16 }
  0x2c   : > { %v5067_v33 = vrot.slane %v1242_v27, 4  ;;  %v1289_v61 = vrot.slane %v1287_v53, 5  ;;  %7159 = vst [vmem:[#allocation9_spill] sm:$0xff] %v5135_v3  ;;  %v5159_v11 = vcombine.low %v5127_v62, %v5135_v3  ;;  %v5161_v12 = vrot.slane %v1293_v0, 5  ;;  %v5163_v13 = vld [vmem:[#allocation2 + $0x24] sm:$0xf] }
  0x2d   : > { %841 = vmatpush1.bf16.msra.mxu0 %v4708_v17  ;;  %4627 = vmatpush1.bf16.msra.mxu1 %v4708_v17  ;;  %v5137_v4 = vrot.slane %v1266_v55, 4  ;;  %v4728_v14 = vld [vmem:[%s7121_s2 + $0x98] ss:$36 sps:$4 sm:$0xff]   ;;  %v1308_v15 = vshrl.u32 %v5163_v13, 16  ;;  %v1311_v16 = vshll.u32 %v5163_v13, 16  ;;  %v316_v17 = vld [vmem:[%s5023_s29 + $0x30] sm:$0xff]  }
  0x2e   : > { %842 = vmatprep.subr.bf16.mxu0 %v4709_v20  ;;  %4620 = vmatprep.subr.bf16.mxu1 %v4709_v20  ;;  %v1290_v5 = vor.u32 %v1289_v61, %v1286_v57  ;;  %7160 = vst [vmem:[#allocation10_spill] sm:$0xff] %v5159_v11  ;;  %v4733_v19 = vld [vmem:[%s7121_s2 + $0xe4] ss:$36 sps:$4 sm:$0xff]   ;;  %v5175_v20 = vld [vmem:[#allocation2 + $0x28] sm:$0xf]  ;;  %375 = vst [vmem:[#allocation2 + $0x30] sm:$0xff] %v316_v17  }
  0x2f   : > { %v4731_v23 = vld [vmem:[%s7121_s2 + $0xe0] ss:$36 sps:$4 sm:$0xff]   ;;  %v1310_v24 = vrot.slane %v1308_v15, 4  ;;  %v1313_v21 = vrot.slane %v1311_v16, 5  ;;  %v1317_v25 = vshll.u32 %v5175_v20, 16  ;;  %v1273_v27 = vshrl.u32 %v5104_v48, 16 }
  0x30   : > { %v5151_v9 = vrot.slane %v1290_v5, 4  ;;  %v5191_v28 = vld [vmem:[#allocation2 + $0xa8] sm:$0xf]  ;;  %v4741_v29 = vld [vmem:[%s7121_s2 + $0x12c] ss:$36 sps:$4 sm:$0xff]   ;;  %v1251_v34 = vrot.slane %v1249_v18, 4 }
  0x31   : > { %843 = vmatpush1.bf16.msra.mxu0 %v4711_v26  ;;  %4628 = vmatpush1.bf16.msra.mxu1 %v4711_v26  ;;  %v4750_v26 = vld [vmem:[%s7121_s2 + $0xa0] ss:$36 sps:$4 sm:$0xff]   ;;  %7161 = vst [vmem:[#allocation11_spill] sm:$0xff] %v5191_v28  ;;  %v1321_v39 = vshrl.u32 %v5175_v20, 16  ;;  %v4762_v40 = vld [vmem:[%s7121_s2 + $0xec] ss:$36 sps:$4 sm:$0xff]  }
  0x32   : > { %844 = vmatprep.subr.bf16.mxu0 %v4712_v30  ;;  %4621 = vmatprep.subr.bf16.mxu1 %v4712_v30  ;;  %v1297_v30 = vshrl.u32 %v5123_v60, 16  ;;  %v5198_v31 = vld [vmem:[#allocation2 + $0xac] sm:$0xf]  ;;  %v4760_v48 = vld [vmem:[%s7121_s2 + $0xe8] ss:$36 sps:$4 sm:$0xff]   ;;  %v1275_v50 = vrot.slane %v1273_v27, 4 }
  0x33   : > { %7162 = vst [vmem:[#allocation12_spill] sm:$0xff] %v5198_v31  ;;  %v5220_v52 = vcombine.low %v5191_v28, %v5198_v31  ;;  %v325_v57 = vld [vmem:[%s5023_s29 + $0x54] sm:$0xff]   ;;  %v5239_v61 = vld [vmem:[#allocation2 + $0xb8] sm:$0xf]  ;;  %v4774_v15 = vld [vmem:[%s7121_s2 + $0x17c] ss:$36 sps:$4 sm:$0xff]  }
  0x34   : > { %v1299_v53 = vrot.slane %v1297_v30, 4  ;;  %7165 = vst [vmem:[#allocation15_spill] sm:$0xff] %v5239_v61  ;;  %v4770_v0 = vld [vmem:[%s7121_s2 + $0x134] ss:$36 sps:$4 sm:$0xff]   ;;  %390 = vst [vmem:[#allocation2 + $0x54] sm:$0xff] %v325_v57   ;;  %v5278_v30 = vcombine.low %v5163_v13, %v5175_v20 }
  0x35   : > { %845 = vmatpush1.bf16.msra.mxu0 %v4714_v32  ;;  %4629 = vmatpush1.bf16.msra.mxu1 %v4714_v32  ;;  %v1314_v32 = vor.u32 %v1313_v21, %v1310_v24  ;;  %7163 = vst [vmem:[#allocation13_spill] sm:$0xff] %v5220_v52  ;;  %v5248_v5 = vld [vmem:[#allocation2 + $0x34] sm:$0xf]  ;;  %v4749_v17 = vld [vmem:[%s7121_s2 + $0x1bc] ss:$36 sps:$4 sm:$0xff]  }
  0x36   : > { %1023 = vmatprep.subr.bf16.mxu1 %v4719_v41  ;;  %1763 = vmatprep.subr.bf16.mxu0 %v4722_v42  ;;  %v319_v41 = vld [vmem:[%s5023_s29 + $0x3c] sm:$0xff]   ;;  %v322_v42 = vld [vmem:[%s5023_s29 + $0x48] sm:$0xff]   ;;  %v1300_v16 = vor.u32 %v1299_v53, %v5161_v12  ;;  %v1345_v27 = vshrl.u32 %v5248_v5, 16 }
  0x37   : > { %380 = vst [vmem:[#allocation2 + $0x3c] sm:$0xff] %v319_v41   ;;  %385 = vst [vmem:[#allocation2 + $0x48] sm:$0xff] %v322_v42   ;;  %v5212_v49 = vrot.slane %v1314_v32, 4  ;;  %v4772_v13 = vld [vmem:[%s7121_s2 + $0x178] ss:$36 sps:$4 sm:$0xff]  }
  0x38   : > { %863 = vmatmul.mubr.bf16.vlgmr.msra.gmra.mrb[0].mxu0 %v5095_v45  ;;  %983 = vmatmul.mubr.bf16.vlgmr.msra.gmra.mrb[0].mxu1 %v5099_v46  ;;  %v334_v20 = vld [vmem:[%s5023_s29 + $0x78] sm:$0xff]   ;;  %v5296_v42 = vrot.slane %v1300_v16, 4  ;;  %v5311_v57 = vrot.slane %v1345_v27, 4  ;;  %v357_v62 = vld [vmem:[#allocation2 + $0x8] sm:$0x1] }
  0x39   : > { %1024 = vmatpush1.bf16.msra.mxu1 %v4717_v47  ;;  %1764 = vmatpush1.bf16.msra.mxu0 %v4720_v51  ;;  %v5207_v47 = vrot.slane %v1317_v25, 5  ;;  %v5216_v51 = vcombine.low %v5092_v44, %v5123_v60  ;;  %v4744_v44 = vld [vmem:[%s7121_s2 + $0x174] ss:$36 sps:$4 sm:$0xff]   ;;  %v5237_v60 = vld [vmem:[#allocation2 + $0xb4] sm:$0xf]  ;;  %405 = vst [vmem:[#allocation2 + $0x78] sm:$0xff] %v334_v20  }
  0x3a   : > { %1025 = vmatprep.subr.bf16.mxu1 %v4725_v56  ;;  %872 = vmatprep.mubr.bf16.mxu0 %v7124_v2  ;;  %v1323_v56 = vrot.slane %v1321_v39, 4  ;;  %7164 = vst [vmem:[#allocation14_spill] sm:$0xff] %v5237_v60  ;;  %v5282_v32 = vcombine.low %v5237_v60, %v5239_v61  ;;  %v4757_v20 = vld [vmem:[%s7121_s2 + $0x18] ss:$36 sps:$4 sm:$0xff]  }
  0x3b   : > { %992 = vmatprep.mubr.bf16.mxu1 %v7124_v2  ;;  %1765 = vmatprep.subr.bf16.mxu0 %v4736_v59  ;;  %v4742_v59 = vld [vmem:[%s7121_s2 + $0x170] ss:$36 sps:$4 sm:$0xff]  }
  0x3c   : > { %v1324_v24 = vor.u32 %v1323_v56, %v5207_v47  ;;  %7166 = vst [vmem:[#allocation16_spill] sm:$0xff] %v5282_v32  ;;  %v4753_v56 = vld [vmem:[%s7121_s2 + $0x200] ss:$36 sps:$4 sm:$0xff]  }
  0x3d   : > { %1026 = vmatpush1.bf16.msra.mxu1 %v4723_v58  ;;  %1766 = vmatpush1.bf16.msra.mxu0 %v4734_v63  ;;  %v1252_v58 = vor.u32 %v1251_v34, %v5076_v36  ;;  %v5241_v63 = vld [vmem:[#allocation2 + $0x30] sm:$0xf] }
  0x3e   : > { %1027 = vmatprep.subr.bf16.mxu1 %v4730_v6  ;;  %1767 = vmatprep.subr.bf16.mxu0 %v4752_v7  ;;  %v4768_v6 = vld [vmem:[%s7121_s2 + $0x130] ss:$36 sps:$4 sm:$0xff]   ;;  %v328_v7 = vld [vmem:[%s5023_s29 + $0x60] sm:$0xff]   ;;  %v1332_v18 = vshrl.u32 %v5241_v63, 16 }
  0x3f   : > { %395 = vst [vmem:[#allocation2 + $0x60] sm:$0xff] %v328_v7   ;;  %v5268_v21 = vrot.slane %v1252_v58, 4  ;;  %v4755_v34 = vld [vmem:[%s7121_s2 + $0x204] ss:$36 sps:$4 sm:$0xff]   ;;  %v5287_v39 = vld [vmem:[#allocation2 + $0x3c] sm:$0xf] }
  0x40   : > { %873 = vmatmul.mubr.bf16.gmra.mrb[4].mxu0 %v5155_v10  ;;  %993 = vmatmul.mubr.bf16.gmra.mrb[4].mxu1 %v5159_v11  ;;  %v1356_v41 = vshrl.u32 %v5287_v39, 16  ;;  %v1359_v58 = vshll.u32 %v5287_v39, 16  ;;  %v5430_v3 = vld [vmem:[#allocation2 + $0x78] sm:$0xf] }
  0x41   : > { %1028 = vmatpush1.bf16.msra.mxu1 %v4728_v14  ;;  %882 = vmatprep.mubr.bf16.mxu0 %v7124_v2  ;;  %v1276_v14 = vor.u32 %v1275_v50, %v5133_v1  ;;  %7174 = vst [vmem:[#allocation21_spill] sm:$0xff] %v5430_v3 }
  0x42   : > { %1029 = vmatprep.subr.bf16.mxu1 %v4733_v19  ;;  %1002 = vmatprep.mubr.bf16.mxu1 %v7124_v2  ;;  %v1335_v19 = vshll.u32 %v5241_v63, 16  ;;  %v5353_v8 = vrot.slane %v1359_v58, 5 }
  0x43   : > { %1768 = vmatpush1.bf16.msra.mxu0 %v4750_v26  ;;  %v4747_v26 = vld [vmem:[%s7121_s2 + $0x1b8] ss:$36 sps:$4 sm:$0xff]  }
  0x44   : > { %1769 = vmatprep.subr.bf16.mxu0 %v4762_v40  ;;  %v5289_v40 = vrot.slane %v1276_v14, 4  ;;  %v5300_v50 = vrot.slane %v1335_v19, 5  ;;  %v5323_v14 = vld [vmem:[#allocation2 + $0x4c] sm:$0xf]  ;;  %v5331_v19 = vld [vmem:[#allocation2 + $0x54] sm:$0xf] }
  0x45   : > { %1030 = vmatpush1.bf16.msra.mxu1 %v4731_v23  ;;  %v1341_v23 = vshll.u32 %v5248_v5, 16  ;;  %v1404_v27 = vshrl.u32 %v5331_v19, 16 }
  0x46   : > { %1031 = vmatprep.subr.bf16.mxu1 %v4741_v29  ;;  %v331_v29 = vld [vmem:[%s5023_s29 + $0x6c] sm:$0xff]   ;;  %v5350_v55 = vld [vmem:[#allocation2 + $0x64] sm:$0xf] }
  0x47   : > { %1770 = vmatpush1.bf16.msra.mxu0 %v4760_v48  ;;  %400 = vst [vmem:[#allocation2 + $0x6c] sm:$0xff] %v331_v29   ;;  %v5298_v48 = vrot.slane %v1332_v18, 4  ;;  %v5302_v53 = vrot.slane %v1341_v23, 5  ;;  %v1389_v18 = vshll.u32 %v5323_v14, 16  ;;  %v5333_v23 = vld [vmem:[#allocation2 + $0x58] sm:$0xf] }
  0x48   : > { %883 = vmatmul.mubr.bf16.gmra.mrb[8].mxu0 %v5216_v51  ;;  %1003 = vmatmul.mubr.bf16.gmra.mrb[8].mxu1 %v5220_v52  ;;  %v5339_v29 = vld [vmem:[#allocation2 + $0x60] sm:$0xf]  ;;  %v1417_v25 = vshrl.u32 %v5333_v23, 16 }
  0x49   : > { %1032 = vmatpush1.bf16.msra.mxu1 %v4739_v54  ;;  %892 = vmatprep.mubr.bf16.mxu0 %v7124_v2  ;;  %v5304_v54 = vld [vmem:[#allocation2 + $0x40] sm:$0xf]  ;;  %v1428_v22 = vshrl.u32 %v5339_v29, 16  ;;  %v1338_v58 = vor.u32 %v5300_v50, %v5298_v48 }
  0x4a   : > { %1033 = vmatprep.subr.bf16.mxu1 %v4744_v44  ;;  %1012 = vmatprep.mubr.bf16.mxu1 %v7124_v2  ;;  %v5306_v44 = vrot.slane %v1324_v24, 4  ;;  %v1369_v7 = vshrl.u32 %v5304_v54, 16  ;;  %v1393_v24 = vshrl.u32 %v5323_v14, 16  ;;  %v5387_v48 = vrot.slane %v1417_v25, 4 }
  0x4b   : > { %1771 = vmatprep.subr.bf16.mxu0 %v4770_v0  ;;  %v5315_v0 = vld [vmem:[#allocation2 + $0x48] sm:$0xf]  ;;  %v5389_v50 = vrot.slane %v1428_v22, 4  ;;  %v4778_v22 = vld [vmem:[%s7121_s2 + $0xac] ss:$36 sps:$4 sm:$0xff]   ;;  %v5424_v31 = vrot.slane %v1338_v58, 4  ;;  %v5428_v28 = vcombine.low %v5287_v39, %v5304_v54 }
  0x4c   : > { %1772 = vmatpush1.bf16.msra.mxu0 %v4768_v6  ;;  %v4759_v6 = vld [vmem:[%s7121_s2 + $0x1c] ss:$36 sps:$4 sm:$0xff]   ;;  %v1383_v16 = vshll.u32 %v5315_v0, 16  ;;  %v5373_v46 = vrot.slane %v1393_v24, 4  ;;  %v4776_v58 = vld [vmem:[%s7121_s2 + $0xa8] ss:$36 sps:$4 sm:$0xff]  }
  0x4d   : > { %1034 = vmatpush1.bf16.msra.mxu1 %v4742_v59  ;;  %1773 = vmatprep.subr.bf16.mxu0 %v4774_v15  ;;  %v1365_v59 = vshll.u32 %v5304_v54, 16  ;;  %v1380_v15 = vshrl.u32 %v5315_v0, 16  ;;  %7173 = vst [vmem:[#allocation20_spill] sm:$0xff] %v5428_v28  ;;  %v5442_v39 = vld [vmem:[#allocation2 + $0x7c] sm:$0xf]  ;;  %v1476_v54 = vshrl.u32 %v5430_v3, 16 }
  0x4e   : > { %1035 = vmatprep.subr.bf16.mxu1 %v4749_v17  ;;  %v5328_v17 = vrot.slane %v1356_v41, 4  ;;  %v5343_v41 = vcombine.low %v5241_v63, %v5248_v5  ;;  %v1431_v63 = vshll.u32 %v5339_v29, 16  ;;  %v1437_v5 = vshll.u32 %v5350_v55, 16  ;;  %v5404_v25 = vld [vmem:[#allocation2 + $0x6c] sm:$0xf] }
  0x4f   : > { %v5355_v43 = vrot.slane %v1365_v59, 5  ;;  %v5362_v52 = vrot.slane %v1380_v15, 4  ;;  %v5364_v11 = vrot.slane %v1383_v16, 5  ;;  %v5371_v59 = vrot.slane %v1389_v18, 5  ;;  %7168 = vst [vmem:[#allocation18_spill] sm:$0xff] %v5404_v25 }
  0x50   : > { %893 = vmatmul.mubr.bf16.gmra.mrb[12].mxu0 %v5278_v30  ;;  %1013 = vmatmul.mubr.bf16.gmra.mrb[12].mxu1 %v5282_v32  ;;  %7167 = vst [vmem:[#allocation17_spill] sm:$0xff] %v5343_v41  ;;  %v5360_v32 = vrot.slane %v1369_v7, 4  ;;  %v5378_v7 = vrot.slane %v1404_v27, 4  ;;  %v5396_v18 = vrot.slane %v1431_v63, 5  ;;  %v5398_v24 = vrot.slane %v1437_v5, 5 }
  0x51   : > { %1036 = vmatpush1.bf16.msra.mxu1 %v4747_v26  ;;  %902 = vmatprep.mubr.bf16.mxu0 %v7124_v2  ;;  %v1407_v26 = vshll.u32 %v5331_v19, 16  ;;  %v1441_v27 = vshrl.u32 %v5350_v55, 16  ;;  %v1452_v63 = vshrl.u32 %v5404_v25, 16  ;;  %v4789_v5 = vld [vmem:[%s7121_s2 + $0x20c] ss:$36 sps:$4 sm:$0xff]  }
  0x52   : > { %1037 = vmatprep.subr.bf16.mxu1 %v4755_v34  ;;  %1055 = vmatprep.mubr.bf16.mxu1 %v7124_v2  ;;  %v1413_v34 = vshll.u32 %v5333_v23, 16  ;;  %v337_v2 = vld [vmem:[%s5023_s29 + $0x84] sm:$0xff]  }
  0x53   : > { %1774 = vmatpush1.bf16.msra.mxu0 %v4772_v13  ;;  %v4782_v13 = vld [vmem:[%s7121_s2 + $0x1c4] ss:$36 sps:$4 sm:$0xff]   ;;  %410 = vst [vmem:[#allocation2 + $0x84] sm:$0xff] %v337_v2   ;;  %v5380_v15 = vrot.slane %v1407_v26, 5  ;;  %v496_v26 = vld [vmem:[#allocation2 + $0x18] sm:$0xf] }
  0x54   : > { %v4765_v2 = vld [vmem:[%s7121_s2 + $0x60] ss:$36 sps:$4 sm:$0xff]   ;;  %v5385_v16 = vrot.slane %v1413_v34, 5  ;;  %1775 = vmatprep.subr.bf16.mxu0 %v4782_v13  ;;  %v5413_v34 = vld [vmem:[#allocation2 + $0x70] sm:$0xf]  ;;  %v1455_v13 = vshll.u32 %v5404_v25, 16  ;;  %v1362_v25 = vor.u32 %v5353_v8, %v5328_v17 }
  0x55   : > { %1038 = vmatpush1.bf16.msra.mxu1 %v4753_v56  ;;  %v4767_v56 = vld [vmem:[%s7121_s2 + $0x64] ss:$36 sps:$4 sm:$0xff]   ;;  %7172 = vst [vmem:[#allocation19_spill] sm:$0xff] %v5413_v34  ;;  %v1461_v61 = vshll.u32 %v5413_v34, 16  ;;  %v1465_v60 = vshrl.u32 %v5413_v34, 16  ;;  %v5451_v17 = vrot.slane %v1452_v63, 4 }
  0x56   : > { %2148 = vmatprep.subr.bf16.mxu1 %v4759_v6  ;;  %v4780_v6 = vld [vmem:[%s7121_s2 + $0x1c0] ss:$36 sps:$4 sm:$0xff]   ;;  %v1485_v34 = vshll.u32 %v5442_v39, 16  ;;  %v5455_v38 = vrot.slane %v1455_v13, 5  ;;  %v4786_v63 = vld [vmem:[%s7121_s2 + $0xf4] ss:$36 sps:$4 sm:$0xff]  }
  0x57   : > { %1776 = vmatpush1.bf16.msra.mxu0 %v4780_v6  ;;  %v362_v8 = vld [vmem:[#allocation2 + $0x14] sm:$0x1]  ;;  %v312_v13 = vld [vmem:[%s5023_s29 + $0x20] sm:$0x1] }
  0x58   : > { %903 = vmatmul.mubr.bf16.gmra.mrb[16].mxu0 %v5343_v41  ;;  %1056 = vmatmul.mubr.bf16.vlgmr.msra.gmra.mrb[16].mxu1 %v5095_v45  ;;  %v7171_v45 = vmov 0   ;;  %v5437_v41 = vrot.slane %v1441_v27, 4  ;;  %v1479_v27 = vshll.u32 %v5430_v3, 16  ;;  %v5480_v3 = vrot.slane %v1362_v25, 4 }
  0x59   : > { %2149 = vmatpush1.bf16.msra.mxu1 %v4757_v20  ;;  %912 = vmatprep.mubr.bf16.mxu0 %v7171_v45  ;;  %v306_v20 = vld [vmem:[%s5023_s29 + $0x8] sm:$0x1]  ;;  %v1348_v25 = vor.u32 %v5311_v57, %v5302_v53  ;;  %v377_v57 = vld [vmem:[#allocation2 + $0x38] sm:$0x1] }
  0x5a   : > { %1065 = vmatprep.mubr.bf16.mxu1 %v7171_v45  ;;  %2150 = vmatprep.subr.bf16.mxu1 %v4767_v56  ;;  %v4787_v56 = vld [vmem:[%s7121_s2 + $0x208] ss:$36 sps:$4 sm:$0xff]   ;;  %v358_v6 = vsel %vm5408_vm5, %v306_v20, %v357_v62  ;;  %v5462_v62 = vld [vmem:[%s7121_s2 + $0x20] ss:$36 sps:$4 sm:$0xff]   ;;  %v309_v20 = vld [vmem:[%s5023_s29 + $0x14] sm:$0x1] }
  0x5b   : > { %1777 = vmatprep.subr.bf16.mxu0 %v4789_v5  ;;  %359 = vst [vmem:[#allocation2 + $0x8] sm:$0x1] %v358_v6  ;;  %v5457_v5 = vrot.slane %v1461_v61, 5  ;;  %7175 = vst [vmem:[#allocation22_spill] sm:$0xff] %v5462_v62  ;;  %v5472_v61 = vrot.slane %v1476_v54, 4 }
  0x5c   : > { %1778 = vmatpush1.bf16.msra.mxu0 %v4787_v56  ;;  %v367_v6 = vld [vmem:[#allocation2 + $0x20] sm:$0x1]  ;;  %7177 = vst [vmem:[#allocation24_spill] sm:$0xff] %v5480_v3  ;;  %v5486_v56 = vrot.slane %v1485_v34, 5  ;;  %v4793_v54 = vld [vmem:[%s7121_s2 + $0x13c] ss:$36 sps:$4 sm:$0xff]  }
  0x5d   : > { %2151 = vmatpush1.bf16.msra.mxu1 %v4765_v2  ;;  %v5465_v2 = vrot.slane %v1465_v60, 4  ;;  %v363_v60 = vsel %vm5408_vm5, %v309_v20, %v362_v8  ;;  %v368_v8 = vsel %vm5408_vm5, %v312_v13, %v367_v6  ;;  %v5495_v20 = vld [vmem:[#allocation2 + $0x84] sm:$0xf]  ;;  %4566 = vmatprep.subr.bf16.mxu0 %v5462_v62  ;;  %v372_v13 = vld [vmem:[#allocation2 + $0x2c] sm:$0x1] }
  0x5e   : > { %2152 = vmatprep.subr.bf16.mxu1 %v4778_v22  ;;  %v4784_v22 = vld [vmem:[%s7121_s2 + $0xf0] ss:$36 sps:$4 sm:$0xff]   ;;  %364 = vst [vmem:[#allocation2 + $0x14] sm:$0x1] %v363_v60  ;;  %7178 = vst [vmem:[#allocation25_spill] sm:$0xff] %v5495_v20  ;;  %v5505_v60 = vcombine.low %v5315_v0, %v5323_v14  ;;  %v1500_v62 = vshrl.u32 %v5495_v20, 16 }
  0x5f   : > { %7176 = vst [vmem:[#allocation23_spill] sm:$0xff] %v5465_v2  ;;  %369 = vst [vmem:[#allocation2 + $0x20] sm:$0x1] %v368_v8  ;;  %v318_v6 = vld [vmem:[%s5023_s29 + $0x38] sm:$0x1]  ;;  %v1410_v8 = vor.u32 %v5380_v15, %v5378_v7  ;;  %v1434_v2 = vor.u32 %v5396_v18, %v5389_v50 }
  0x60   : > { %913 = vmatmul.mubr.bf16.gmra.mrb[20].mxu0 %v5428_v28  ;;  %1066 = vmatmul.mubr.bf16.gmra.mrb[20].mxu1 %v5155_v10  ;;  %v5484_v10 = vrot.slane %v1479_v27, 5  ;;  %v315_v27 = vld [vmem:[%s5023_s29 + $0x2c] sm:$0x1]  ;;  %v1503_v28 = vshll.u32 %v5495_v20, 16  ;;  %v4791_v0 = vld [vmem:[%s7121_s2 + $0x138] ss:$36 sps:$4 sm:$0xff]  }
  0x61   : > { %922 = vmatprep.mubr.bf16.mxu0 %v7171_v45  ;;  %1075 = vmatprep.mubr.bf16.mxu1 %v7171_v45  ;;  %v373_v14 = vsel %vm5408_vm5, %v315_v27, %v372_v13  ;;  %v4797_v7 = vld [vmem:[%s7121_s2 + $0x184] ss:$36 sps:$4 sm:$0xff]   ;;  %v382_v20 = vld [vmem:[#allocation2 + $0x44] sm:$0x1]  ;;  %v5542_v18 = vrot.slane %v1410_v8, 4  ;;  %v5571_v8 = vrot.slane %v1434_v2, 4  ;;  %v1396_v2 = vor.u32 %v5373_v46, %v5371_v59 }
  0x62   : > { %2153 = vmatpush1.bf16.msra.mxu1 %v4776_v58  ;;  %v1386_v58 = vor.u32 %v5364_v11, %v5362_v52  ;;  %v477_v34 = vld [vmem:[#allocation2 + $0x8] sm:$0x1]  ;;  %374 = vst [vmem:[#allocation2 + $0x2c] sm:$0x1] %v373_v14  ;;  %v5521_v52 = vrot.slane %v1348_v25, 4  ;;  %v5575_v14 = vcombine.low %v5331_v19, %v5333_v23  ;;  %v7180_v46 = vsel %vm5072_vm2, %v5137_v4, %v5133_v1 }
  0x63   : > { %2154 = vmatprep.subr.bf16.mxu1 %v4786_v63  ;;  %v378_v63 = vsel %vm5408_vm5, %v318_v6, %v377_v57  ;;  %v1255_v11 = vshll.u32 %v477_v34, 16  ;;  %v321_v15 = vld [vmem:[%s5023_s29 + $0x44] sm:$0x1]  ;;  %v1372_v34 = vor.u32 %v5360_v32, %v5355_v43  ;;  %v324_v25 = vld [vmem:[%s5023_s29 + $0x50] sm:$0x1]  ;;  %v5538_v6 = vrot.slane %v1500_v62, 4 }
  0x64   : > { %379 = vst [vmem:[#allocation2 + $0x38] sm:$0x1] %v378_v63  ;;  %v383_v27 = vsel %vm5408_vm5, %v321_v15, %v382_v20  ;;  %v387_v13 = vld [vmem:[#allocation2 + $0x50] sm:$0x1]  ;;  %v1458_v32 = vor.u32 %v5455_v38, %v5451_v17  ;;  %v7179_v38 = vsel %vm5072_vm2, %v5067_v33, %v5076_v36  ;;  %v4801_v36 = vld [vmem:[%s7121_s2 + $0x1cc] ss:$36 sps:$4 sm:$0xff]   ;;  %v1440_v19 = vsel %vm5072_vm2, %v5571_v8, %v5398_v24 }
  0x65   : > { %v1257_v3 = vrot.slane %v1255_v11, 5  ;;  %v478_v57 = vld [vmem:[#allocation2 + $0x14] sm:$0x1]  ;;  %384 = vst [vmem:[#allocation2 + $0x44] sm:$0x1] %v383_v27  ;;  %v388_v50 = vsel %vm5408_vm5, %v324_v25, %v387_v13  ;;  %v7181_v4 = vsel %vm5072_vm2, %v5151_v9, %v5161_v12  ;;  %v1397_v12 = vrot.slane %v1396_v2, 4 }
  0x66   : > { %2155 = vmatpush1.bf16.msra.mxu1 %v4784_v22  ;;  %v5534_v22 = vrot.slane %v1386_v58, 4  ;;  %v1279_v62 = vshll.u32 %v478_v57, 16  ;;  %v479_v20 = vld [vmem:[#allocation2 + $0x20] sm:$0x1]  ;;  %389 = vst [vmem:[#allocation2 + $0x50] sm:$0x1] %v388_v50  ;;  %v1482_v57 = vor.u32 %v5484_v10, %v5472_v61 }
  0x67   : > { %2156 = vmatprep.subr.bf16.mxu1 %v4793_v54  ;;  %v5548_v54 = vrot.slane %v1503_v28, 5  ;;  %v1303_v28 = vshll.u32 %v479_v20, 16  ;;  %v5588_v23 = vrot.slane %v1458_v32, 4  ;;  %v327_v25 = vld [vmem:[%s5023_s29 + $0x5c] sm:$0x1]  ;;  %v1489_v2 = vshrl.u32 %v5442_v39, 16 }
  0x68   : > { %923 = vmatmul.mubr.bf16.gmra.mrb[24].mxu0 %v5505_v60  ;;  %1076 = vmatmul.mubr.bf16.gmra.mrb[24].mxu1 %v5216_v51  ;;  %v1258_v51 = vsel %vm5072_vm2, %v5268_v21, %v1257_v3  ;;  %v1392_v58 = vsel %vm5072_vm2, %v5534_v22, %v5371_v59  ;;  %v4795_v3 = vld [vmem:[%s7121_s2 + $0x180] ss:$36 sps:$4 sm:$0xff]   ;;  %v1416_v21 = vsel %vm5072_vm2, %v5542_v18, %v5385_v16  ;;  %v1281_v33 = vrot.slane %v1279_v62, 5  ;;  %v392_v13 = vld [vmem:[#allocation2 + $0x5c] sm:$0x1] }
  0x69   : > { %932 = vmatprep.mubr.bf16.mxu0 %v7171_v45  ;;  %1085 = vmatprep.mubr.bf16.mxu1 %v7171_v45  ;;  %v5562_v17 = vcombine.low %v7179_v38, %v1258_v51  ;;  %v1305_v63 = vrot.slane %v1303_v28, 5  ;;  %v480_v11 = vld [vmem:[#allocation2 + $0x2c] sm:$0x1]  ;;  %v393_v51 = vsel %vm5408_vm5, %v327_v25, %v392_v13  ;;  %v330_v61 = vld [vmem:[%s5023_s29 + $0x68] sm:$0x1]  ;;  %v1464_v1 = vsel %vm5072_vm2, %v5588_v23, %v5457_v5  ;;  %v7189_v59 = vld [vmem:[#allocation17_spill] sm:$0xff] }
  0x6a   : > { %2157 = vmatpush1.bf16.msra.mxu1 %v4791_v0  ;;  %v5580_v0 = vrot.slane %v1372_v34, 4  ;;  %v1327_v27 = vshll.u32 %v480_v11, 16  ;;  %v397_v10 = vld [vmem:[#allocation2 + $0x68] sm:$0x1]  ;;  %v4805_v28 = vld [vmem:[%s7121_s2 + $0x214] ss:$36 sps:$4 sm:$0xff]  }
  0x6b   : > { %2158 = vmatprep.subr.bf16.mxu1 %v4797_v7  ;;  %v481_v15 = vld [vmem:[#allocation2 + $0x38] sm:$0x1]  ;;  %v1282_v7 = vsel %vm5072_vm2, %v5289_v40, %v1281_v33  ;;  %v1306_v32 = vsel %vm5072_vm2, %v5296_v42, %v1305_v63  ;;  %v4799_v40 = vld [vmem:[%s7121_s2 + $0x1c8] ss:$36 sps:$4 sm:$0xff]   ;;  %394 = vst [vmem:[#allocation2 + $0x5c] sm:$0x1] %v393_v51  ;;  %v1506_v51 = vor.u32 %v5548_v54, %v5538_v6 }
  0x6c   : > { %v1351_v34 = vshll.u32 %v481_v15, 16  ;;  %v5601_v50 = vcombine.low %v7180_v46, %v1282_v7  ;;  %v5621_v42 = vcombine.low %v7181_v4, %v1306_v32  ;;  %v1329_v62 = vrot.slane %v1327_v27, 5  ;;  %v482_v38 = vld [vmem:[#allocation2 + $0x44] sm:$0x1]  ;;  %v333_v25 = vld [vmem:[%s5023_s29 + $0x74] sm:$0x1] }
  0x6d   : > { %v1375_v33 = vshll.u32 %v482_v38, 16  ;;  %v483_v9 = vld [vmem:[#allocation2 + $0x50] sm:$0x1]  ;;  %v5641_v15 = vrot.slane %v1482_v57, 4  ;;  %v7182_v7 = vsel %vm5072_vm2, %v5212_v49, %v5207_v47  ;;  %v402_v13 = vld [vmem:[#allocation2 + $0x74] sm:$0x1]  ;;  %v1420_v46 = vor.u32 %v5387_v48, %v5385_v16 }
  0x6e   : > { %2159 = vmatpush1.bf16.msra.mxu1 %v4795_v3  ;;  %v1353_v20 = vrot.slane %v1351_v34, 5  ;;  %v398_v3 = vsel %vm5408_vm5, %v330_v61, %v397_v10  ;;  %v1399_v11 = vshll.u32 %v483_v9, 16  ;;  %v403_v47 = vsel %vm5408_vm5, %v333_v25, %v402_v13  ;;  %v336_v48 = vld [vmem:[%s5023_s29 + $0x80] sm:$0x1]  ;;  %v7184_v10 = vld [vmem:[#allocation6_spill] sm:$0xff]  ;;  %v7187_v9 = vld [vmem:[#allocation23_spill] sm:$0xff] }
  0x6f   : > { %2160 = vmatprep.subr.bf16.mxu1 %v4801_v36  ;;  %399 = vst [vmem:[#allocation2 + $0x68] sm:$0x1] %v398_v3  ;;  %v1330_v36 = vsel %vm5072_vm2, %v5306_v44, %v1329_v62  ;;  %v1377_v34 = vrot.slane %v1375_v33, 5  ;;  %v1488_v49 = vsel %vm5072_vm2, %v5641_v15, %v5486_v56  ;;  %v1444_v32 = vor.u32 %v5437_v41, %v5398_v24  ;;  %v5681_v62 = vld [vmem:[#allocation2 + $0x88] sm:$0xf] }
  0x70   : > { %933 = vmatmul.mubr.bf16.gmra.mrb[28].mxu0 %v5575_v14  ;;  %1086 = vmatmul.mubr.bf16.gmra.mrb[28].mxu1 %v5278_v30  ;;  %v1354_v63 = vsel %vm5072_vm2, %v5521_v52, %v1353_v20  ;;  %v4803_v30 = vld [vmem:[%s7121_s2 + $0x210] ss:$36 sps:$4 sm:$0xff]   ;;  %v5649_v44 = vcombine.low %v7182_v7, %v1330_v36  ;;  %v7183_v52 = vsel %vm5072_vm2, %v5424_v31, %v5302_v53  ;;  %v1401_v57 = vrot.slane %v1399_v11, 5  ;;  %v345_v23 = vld [vmem:[%s5023_s29 + $0xa4] sm:$0x1] }
  0x71   : > { %942 = vmatprep.mubr.bf16.mxu0 %v7171_v45  ;;  %1095 = vmatprep.mubr.bf16.mxu1 %v7171_v45  ;;  %v5656_v27 = vcombine.low %v7183_v52, %v1354_v63  ;;  %v5669_v31 = vcombine.low %v5339_v29, %v5350_v55  ;;  %v1378_v53 = vsel %vm5072_vm2, %v5580_v0, %v1377_v34  ;;  %v1527_v61 = vshll.u32 %v5078_v37, 16  ;;  %v7185_v55 = vld [vmem:[#allocation24_spill] sm:$0xff] }
  0x72   : > { %2161 = vmatpush1.bf16.msra.mxu1 %v4799_v40  ;;  %404 = vst [vmem:[#allocation2 + $0x74] sm:$0x1] %v403_v47  ;;  %v407_v40 = vld [vmem:[#allocation2 + $0x80] sm:$0x1]  ;;  %v1533_v4 = vshll.u32 %v7184_v10, 16  ;;  %v7186_v29 = vsel %vm5072_vm2, %v7185_v55, %v5355_v43  ;;  %v1402_v41 = vsel %vm5072_vm2, %v1397_v12, %v1401_v57  ;;  %v1509_v20 = vshll.u32 %v5681_v62, 16 }
  0x73   : > { %2162 = vmatprep.subr.bf16.mxu1 %v4805_v28  ;;  %v5688_v0 = vcombine.low %v7186_v29, %v1378_v53  ;;  %v5698_v6 = vcombine.low %v1392_v58, %v1402_v41  ;;  %v484_v54 = vld [vmem:[#allocation2 + $0x5c] sm:$0x1]  ;;  %v408_v38 = vsel %vm5408_vm5, %v336_v48, %v407_v40  ;;  %v1491_v43 = vrot.slane %v1489_v2, 4  ;;  %v7191_v47 = vld [vmem:[#allocation19_spill] sm:$0xff]  ;;  %v7192_v53 = vld [vmem:[#allocation18_spill] sm:$0xff] }
  0x74   : > { %v1421_v28 = vrot.slane %v1420_v46, 4  ;;  %v1423_v3 = vshll.u32 %v484_v54, 16  ;;  %v1468_v12 = vor.u32 %v7187_v9, %v5457_v5  ;;  %409 = vst [vmem:[#allocation2 + $0x80] sm:$0x1] %v408_v38  ;;  %v7188_v36 = vshrl.u32 %v5078_v37, 16  ;;  %v7190_v52 = vld [vmem:[#allocation8_spill] sm:$0xff] }
  0x75   : > { %v1445_v22 = vrot.slane %v1444_v32, 4  ;;  %v5708_v11 = vrot.slane %v1506_v51, 4  ;;  %v5710_v2 = vrot.slane %v1533_v4, 5  ;;  %v1537_v7 = vshrl.u32 %v7184_v10, 16  ;;  %v339_v46 = vld [vmem:[%s5023_s29 + $0x8c] sm:$0x1] }
  0x76   : > { %2163 = vmatpush1.bf16.msra.mxu1 %v4803_v30  ;;  %v485_v33 = vld [vmem:[#allocation2 + $0x68] sm:$0x1]  ;;  %v1526_v63 = vrot.slane %v7188_v36, 4  ;;  %v1529_v30 = vrot.slane %v1527_v61, 5  ;;  %v1425_v37 = vrot.slane %v1423_v3, 5  ;;  %v1548_v34 = vshrl.u32 %v7190_v52, 16 }
  0x77   : > { %v1447_v58 = vshll.u32 %v485_v33, 16  ;;  %v5716_v25 = vrot.slane %v1509_v20, 5  ;;  %v1513_v13 = vshrl.u32 %v5681_v62, 16  ;;  %v5722_v32 = vcombine.low %v7192_v53, %v7191_v47  ;;  %v412_v29 = vld [vmem:[#allocation2 + $0x8c] sm:$0x1]  ;;  %v7193_v54 = vld [vmem:[#allocation9_spill] sm:$0xff] }
  0x78   : > { %943 = vmatmul.mubr.bf16.gmra.mrb[32].mxu0 %v5669_v31  ;;  %1096 = vmatmul.mubr.bf16.gmra.mrb[32].mxu1 %v7189_v59  ;;  %v1426_v48 = vsel %vm5072_vm2, %v1421_v28, %v1425_v37  ;;  %v1469_v51 = vrot.slane %v1468_v12, 4  ;;  %v1492_v61 = vor.u32 %v1491_v43, %v5486_v56  ;;  %v1551_v20 = vshll.u32 %v7190_v52, 16  ;;  %v7194_v28 = vld [vmem:[#allocation11_spill] sm:$0xff]  ;;  %v7195_v37 = vld [vmem:[#allocation20_spill] sm:$0xff] }
  0x79   : > { %952 = vmatprep.mubr.bf16.mxu0 %v7171_v45  ;;  %1105 = vmatprep.mubr.bf16.mxu1 %v7171_v45  ;;  %v1449_v57 = vrot.slane %v1447_v58, 5  ;;  %v486_v40 = vld [vmem:[#allocation2 + $0x74] sm:$0x1]  ;;  %v5732_v10 = vcombine.low %v1416_v21, %v1426_v48  ;;  %v1512_v41 = vsel %vm5072_vm2, %v5708_v11, %v5716_v25  ;;  %v1557_v38 = vshll.u32 %v7193_v54, 16  ;;  %v342_v21 = vld [vmem:[%s5023_s29 + $0x98] sm:$0x1] }
  0x7a   : > { %v1471_v55 = vshll.u32 %v486_v40, 16  ;;  %v413_v18 = vsel %vm5408_vm5, %v339_v46, %v412_v29  ;;  %v1561_v43 = vshrl.u32 %v7193_v54, 16  ;;  %v1572_v3 = vshrl.u32 %v7194_v28, 16  ;;  %v417_v58 = vld [vmem:[#allocation2 + $0x98] sm:$0x1]  ;;  %v7196_v40 = vld [vmem:[#allocation12_spill] sm:$0xff] }
  0x7b   : > { %v1450_v4 = vsel %vm5072_vm2, %v1445_v22, %v1449_v57  ;;  %v1515_v33 = vrot.slane %v1513_v13, 4  ;;  %v487_v12 = vld [vmem:[#allocation2 + $0x80] sm:$0x1]  ;;  %414 = vst [vmem:[#allocation2 + $0x8c] sm:$0x1] %v413_v18  ;;  %v1575_v36 = vshll.u32 %v7194_v28, 16  ;;  %v1530_v24 = vor.u32 %v1529_v30, %v1526_v63 }
  0x7c   : > { %v5747_v16 = vcombine.low %v1440_v19, %v1450_v4  ;;  %v1473_v9 = vrot.slane %v1471_v55, 5  ;;  %v1493_v59 = vrot.slane %v1492_v61, 4  ;;  %v1495_v22 = vshll.u32 %v487_v12, 16  ;;  %v7197_v55 = vld [vmem:[#allocation14_spill] sm:$0xff] }
  0x7d   : > { %v1539_v8 = vrot.slane %v1537_v7, 4  ;;  %v1550_v19 = vrot.slane %v1548_v34, 4  ;;  %v418_v13 = vsel %vm5408_vm5, %v342_v21, %v417_v58  ;;  %v1553_v57 = vrot.slane %v1551_v20, 5  ;;  %v7198_v20 = vld [vmem:[#allocation21_spill] sm:$0xff]  ;;  %v427_v12 = vld [vmem:[#allocation2 + $0xb0] sm:$0x1] }
  0x7e   : > { %v1474_v52 = vsel %vm5072_vm2, %v1469_v51, %v1473_v9  ;;  %v1497_v30 = vrot.slane %v1495_v22, 5  ;;  %419 = vst [vmem:[#allocation2 + $0x98] sm:$0x1] %v418_v13  ;;  %v1531_v7 = vrot.slane %v1530_v24, 4  ;;  %v5770_v34 = vrot.slane %v1557_v38, 5  ;;  %v7199_v13 = vld [vmem:[#allocation15_spill] sm:$0xff] }
  0x7f   : > { %v5768_v63 = vcombine.low %v1464_v1, %v1474_v52  ;;  %v1563_v46 = vrot.slane %v1561_v43, 4  ;;  %v1574_v47 = vrot.slane %v1572_v3, 4  ;;  %v1516_v53 = vor.u32 %v1515_v33, %v5716_v25  ;;  %v422_v1 = vld [vmem:[#allocation2 + $0xa4] sm:$0x1] }
  0x80   : > { %953 = vmatmul.mubr.bf16.gmra.mrb[36].mxu0 %v5722_v32  ;;  %1106 = vmatmul.mubr.bf16.gmra.mrb[36].mxu1 %v7195_v37  ;;  %v1577_v48 = vrot.slane %v1575_v36, 5  ;;  %v1581_v51 = vshll.u32 %v7196_v40, 16  ;;  %v1498_v61 = vsel %vm5072_vm2, %v1493_v59, %v1497_v30  ;;  %v1536_v5 = vsel %vm5072_vm2, %v1531_v7, %v5710_v2 }
  0x81   : > { %962 = vmatprep.mubr.bf16.mxu0 %v7171_v45  ;;  %1115 = vmatprep.mubr.bf16.mxu1 %v7171_v45  ;;  %v1585_v4 = vshrl.u32 %v7196_v40, 16  ;;  %v1596_v29 = vshrl.u32 %v7197_v55, 16  ;;  %v5784_v54 = vcombine.low %v7198_v20, %v5442_v39  ;;  %v5791_v38 = vcombine.low %v1488_v49, %v1498_v61  ;;  %v348_v39 = vld [vmem:[%s5023_s29 + $0xb0] sm:$0x1]  ;;  %v7200_v40 = vld [vmem:[#allocation25_spill] sm:$0xff] }
  0x82   : > { %v1599_v18 = vshll.u32 %v7197_v55, 16  ;;  %v488_v21 = vld [vmem:[#allocation2 + $0x8c] sm:$0x1]  ;;  %v1540_v43 = vor.u32 %v1539_v8, %v5710_v2  ;;  %v423_v28 = vsel %vm5408_vm5, %v345_v23, %v422_v1  ;;  %v1554_v3 = vor.u32 %v1553_v57, %v1550_v19  ;;  %v351_v23 = vld [vmem:[%s5023_s29 + $0xbc] sm:$0x1]  ;;  %s4412_s29 = sadd.s32 192, %s4630_s14 }
  0x83   : > { %v1517_v33 = vrot.slane %v1516_v53, 4  ;;  %v1519_v9 = vshll.u32 %v488_v21, 16  ;;  %424 = vst [vmem:[#allocation2 + $0xa4] sm:$0x1] %v423_v28  ;;  %v1583_v36 = vrot.slane %v1581_v51, 5  ;;  %v1587_v22 = vrot.slane %v1585_v4, 4  ;;  %s299_s7 = scalar_lea.vmem %s7120_s1, %s4412_s29 }
  0x84   : > { %v1555_v59 = vrot.slane %v1554_v3, 4  ;;  %v1598_v56 = vrot.slane %v1596_v29, 4  ;;  %v428_v2 = vsel %vm5408_vm5, %v348_v39, %v427_v12  ;;  %v1601_v58 = vrot.slane %v1599_v18, 5  ;;  %v4798_v12 = vld [vmem:[%s7121_s2 + $0x68] ss:$36 sps:$4 sm:$0xff]  }
  0x85   : > { %v1521_v15 = vrot.slane %v1519_v9, 5  ;;  %v489_v49 = vld [vmem:[#allocation2 + $0x98] sm:$0x1]  ;;  %v1541_v24 = vrot.slane %v1540_v43, 4  ;;  %429 = vst [vmem:[#allocation2 + $0xb0] sm:$0x1] %v428_v2  ;;  %v1564_v37 = vor.u32 %v1563_v46, %v5770_v34  ;;  %v1578_v52 = vor.u32 %v1577_v48, %v1574_v47 }
  0x86   : > { %v1543_v8 = vshll.u32 %v489_v49, 16  ;;  %v1560_v19 = vsel %vm5072_vm2, %v1555_v59, %v5770_v34  ;;  %v1605_v57 = vshll.u32 %v7199_v13, 16  ;;  %v1609_v53 = vshrl.u32 %v7199_v13, 16  ;;  %v432_v48 = vld [vmem:[#allocation2 + $0xbc] sm:$0x1] }
  0x87   : > { %v5821_v51 = vcombine.low %v7200_v40, %v5681_v62  ;;  %v1579_v61 = vrot.slane %v1578_v52, 4  ;;  %v1588_v47 = vor.u32 %v1587_v22, %v1583_v36  ;;  %v1602_v1 = vor.u32 %v1601_v58, %v1598_v56  ;;  %v4802_v49 = vld [vmem:[%s7121_s2 + $0xb0] ss:$36 sps:$4 sm:$0xff]  }
  0x88   : > { %963 = vmatmul.mubr.bf16.gmra.mrb[40].mxu0 %v5784_v54  ;;  %1116 = vmatmul.mubr.bf16.gmra.mrb[40].mxu1 %v5505_v60  ;;  %v1522_v60 = vsel %vm5072_vm2, %v1517_v33, %v1521_v15  ;;  %v1545_v7 = vrot.slane %v1543_v8, 5  ;;  %v1565_v11 = vrot.slane %v1564_v37, 4  ;;  %v1607_v55 = vrot.slane %v1605_v57, 5  ;;  %v7201_v15 = vld [vmem:[#allocation22_spill] sm:$0xff]  ;;  %v7205_v52 = vld [vmem:[#allocation16_spill] sm:$0xff] }
  0x89   : > { %972 = vmatprep.mubr.bf16.mxu0 %v7171_v45  ;;  %1125 = vmatprep.mubr.bf16.mxu1 %v7171_v45  ;;  %v5816_v30 = vcombine.low %v1512_v41, %v1522_v60  ;;  %v1584_v41 = vsel %vm5072_vm2, %v1579_v61, %v1583_v36  ;;  %v433_v62 = vsel %vm5408_vm5, %v351_v23, %v432_v48  ;;  %v1603_v29 = vrot.slane %v1602_v1, 4  ;;  %v4811_v8 = vld [vmem:[%s7121_s2 + $0x188] ss:$36 sps:$4 sm:$0xff]   ;;  %v441_v60 = vld [vmem:[#allocation2 + $0xc8] sm:$0x1] }
  0x8a   : > { %v1546_v34 = vsel %vm5072_vm2, %v1541_v24, %v1545_v7  ;;  %v490_v46 = vld [vmem:[#allocation2 + $0xa4] sm:$0x1]  ;;  %v1611_v20 = vrot.slane %v1609_v53, 4  ;;  %434 = vst [vmem:[#allocation2 + $0xbc] sm:$0x1] %v433_v62 }
  0x8b   : > { %v5826_v4 = vcombine.low %v1536_v5, %v1546_v34  ;;  %v1567_v25 = vshll.u32 %v490_v46, 16  ;;  %v1589_v5 = vrot.slane %v1588_v47, 4  ;;  %v1608_v28 = vsel %vm5072_vm2, %v1603_v29, %v1607_v55  ;;  %v4808_v24 = vld [vmem:[%s7121_s2 + $0x140] ss:$36 sps:$4 sm:$0xff]   ;;  %v498_v7 = vld [vmem:[#allocation2 + $0x24] sm:$0xf] }
  0x8c   : > { %v491_v21 = vld [vmem:[#allocation2 + $0xb0] sm:$0x1]  ;;  %v1612_v39 = vor.u32 %v1611_v20, %v1607_v55  ;;  %v499_v53 = vld [vmem:[#allocation2 + $0x28] sm:$0xf]  ;;  %v501_v34 = vld [vmem:[#allocation2 + $0x34] sm:$0xf] }
  0x8d   : > { %v1569_v18 = vrot.slane %v1567_v25, 5  ;;  %v1591_v43 = vshll.u32 %v491_v21, 16  ;;  %v4159_v40 = vcombine.low %v498_v7, %v499_v53  ;;  %v2409_v55 = vshll.u32 %v498_v7, 16  ;;  %v502_v62 = vld [vmem:[#allocation2 + $0x3c] sm:$0xf] }
  0x8e   : > { %v1613_v22 = vrot.slane %v1612_v39, 4  ;;  %v503_v29 = vld [vmem:[#allocation2 + $0x40] sm:$0xf]  ;;  %v2415_v20 = vshll.u32 %v499_v53, 16 }
  0x8f   : > { %v1570_v3 = vsel %vm5072_vm2, %v1565_v11, %v1569_v18  ;;  %v1593_v9 = vrot.slane %v1591_v43, 5  ;;  %v2419_v18 = vshrl.u32 %v499_v53, 16  ;;  %v5936_v43 = vrot.slane %v2409_v55, 5  ;;  %v527_v53 = vld [vmem:[#allocation2 + $0x20] sm:$0x1] }
  0x90   : > { %973 = vmatmul.mubr.bf16.gmra.mrb[44].mxu0 %v5821_v51  ;;  %1126 = vmatmul.mubr.bf16.gmra.mrb[44].mxu1 %v5575_v14  ;;  %v5840_v33 = vcombine.low %v1560_v19, %v1570_v3  ;;  %v437_v19 = vld [vmem:[%s299_s7 + $0x8] sm:$0x1] }
  0x91   : > { %1135 = vmatprep.mubr.bf16.mxu1 %v7171_v45  ;;  %1795 = vmatprep.mubr.bf16.mxu0 %v7171_v45  ;;  %v1594_v14 = vsel %vm5072_vm2, %v1589_v5, %v1593_v9  ;;  %v492_v59 = vld [vmem:[#allocation2 + $0xbc] sm:$0x1]  ;;  %v442_v37 = vsel %vm5408_vm5, %v437_v19, %v441_v60  ;;  %v4161_v9 = vcombine.low %v502_v62, %v503_v29  ;;  %v505_v60 = vld [vmem:[#allocation2 + $0x4c] sm:$0xf] }
  0x92   : > { %v5847_v36 = vcombine.low %v1584_v41, %v1594_v14  ;;  %v1615_v56 = vshll.u32 %v492_v59, 16  ;;  %443 = vst [vmem:[#allocation2 + $0xc8] sm:$0x1] %v442_v37  ;;  %v2406_v41 = vshrl.u32 %v498_v7, 16  ;;  %v2443_v14 = vshrl.u32 %v501_v34, 16 }
  0x93   : > { %v2457_v59 = vshll.u32 %v502_v62, 16 }
  0x94   : > { %v1617_v2 = vrot.slane %v1615_v56, 5  ;;  %v5934_v5 = vrot.slane %v2406_v41, 4  ;;  %v5942_v56 = vrot.slane %v2419_v18, 4  ;;  %v2401_v41 = vshll.u32 %v527_v53, 16 }
  0x95   : > { %v5959_v19 = vrot.slane %v2457_v59, 5 }
  0x96   : > { %v1618_v58 = vsel %vm5072_vm2, %v1613_v22, %v1617_v2  ;;  %v5940_v22 = vrot.slane %v2415_v20, 5  ;;  %v504_v2 = vld [vmem:[#allocation2 + $0x48] sm:$0xf]  ;;  %v528_v20 = vld [vmem:[#allocation2 + $0x2c] sm:$0x1]  ;;  %v2403_v59 = vrot.slane %v2401_v41, 5 }
  0x97   : > { %v2481_v37 = vshll.u32 %v504_v2, 16 }
  0x98   : > { %1136 = vmatmul.mubr.bf16.gmra.mrb[48].mxu1 %v5669_v31  ;;  %1796 = vmatmul.mubr.bf16.vlgmr.msra.gmra.mrb[48].mxu0 %v5562_v17  ;;  %v5859_v31 = vcombine.low %v1608_v28, %v1618_v58  ;;  %v4806_v17 = vld [vmem:[%s7121_s2 + $0xf8] ss:$36 sps:$4 sm:$0xff]  }
  0x99   : > { %4567 = vmatpush3.bf16.msra.mxu0 %v7201_v15  ;;  %1145 = vmatprep.mubr.bf16.mxu1 %v7171_v45  ;;  %v2463_v15 = vshll.u32 %v503_v29, 16 }
  0x9a   : > { %1805 = vmatprep.mubr.bf16.mxu0 %v7171_v45  ;;  %4568 = vmatprep.subr.bf16.mxu0 %v4798_v12 }
  0x9d   : > { %4569 = vmatpush3.bf16.msra.mxu0 %v4798_v12  ;;  %v2454_v12 = vshrl.u32 %v502_v62, 16 }
  0x9e   : > { %4570 = vmatprep.subr.bf16.mxu0 %v4802_v49 }
  0xa0   : > { %1146 = vmatmul.mubr.bf16.gmra.mrb[52].mxu1 %v5722_v32  ;;  %1806 = vmatmul.mubr.bf16.gmra.mrb[52].mxu0 %v5601_v50  ;;  %v4814_v50 = vld [vmem:[%s7121_s2 + $0x1d0] ss:$36 sps:$4 sm:$0xff]   ;;  %v4817_v32 = vld [vmem:[%s7121_s2 + $0x218] ss:$36 sps:$4 sm:$0xff]  }
  0xa1   : > { %1155 = vmatprep.mubr.bf16.mxu1 %v7171_v45  ;;  %1815 = vmatprep.mubr.bf16.mxu0 %v7171_v45 }
  0xa2   : > { %4571 = vmatpush3.bf16.msra.mxu0 %v4802_v49  ;;  %v2467_v49 = vshrl.u32 %v503_v29, 16 }
  0xa3   : > { %4572 = vmatprep.subr.bf16.mxu0 %v4806_v17 }
  0xa6   : > { %4573 = vmatpush3.bf16.msra.mxu0 %v4806_v17 }
  0xa7   : > { %4574 = vmatprep.subr.bf16.mxu0 %v4808_v24 }
  0xa8   : > { %1156 = vmatmul.mubr.bf16.gmra.mrb[56].mxu1 %v5784_v54  ;;  %1816 = vmatmul.mubr.bf16.gmra.mrb[56].mxu0 %v5621_v42  ;;  %v7202_v42 = vld [vmem:[#allocation7_spill] sm:$0xff]  ;;  %v7203_v54 = vld [vmem:[#allocation10_spill] sm:$0xff] }
  0xa9   : > { %1165 = vmatprep.mubr.bf16.mxu1 %v7171_v45  ;;  %1825 = vmatprep.mubr.bf16.mxu0 %v7171_v45 }
  0xaa   : > { %4575 = vmatpush3.bf16.msra.mxu0 %v4808_v24 }
  0xab   : > { %4576 = vmatprep.subr.bf16.mxu0 %v4811_v8 }
  0xae   : > { %4577 = vmatpush3.bf16.msra.mxu0 %v4811_v8 }
  0xaf   : > { %4578 = vmatprep.subr.bf16.mxu0 %v4814_v50 }
  0xb0   : > { %1166 = vmatmul.mubr.bf16.gmra.mrb[60].mxu1 %v5821_v51  ;;  %1826 = vmatmul.mubr.bf16.gmra.mrb[60].mxu0 %v5649_v44  ;;  %v435_v44 = vld [vmem:[%s299_s7] sm:$0xff]   ;;  %v2382_v51 = vshrl.u32 %v496_v26, 16  ;;  %s4910_s7 = smov [#allocation3]  }
  0xb1   : > { %1175 = vmatprep.mubr.bf16.mxu1 %v7171_v45  ;;  %1835 = vmatprep.mubr.bf16.mxu0 %v7171_v45  ;;  %439 = vst [vmem:[#allocation2 + $0xc0] sm:$0xff] %v435_v44   ;;  %v2478_v44 = vshrl.u32 %v504_v2, 16  ;;  %s4833_s14 = sshll.u32 %s4910_s7, 4  ;;  %s4834_s14 = int_to_ptr.vmem [resolvable:$false] %s4833_s14 }
  0xb2   : > { %4579 = vmatpush3.bf16.msra.mxu0 %v4814_v50  ;;  %v2384_v46 = vrot.slane %v2382_v51, 4  ;;  %s4835_s8 = scalar_lea.vmem %s4834_s14, 16384  ;;  %p4836_p1 = scmp.lt.s32.totalorder %s7066_s26, %s4834_s14 }
  0xb3   : > { %4580 = vmatprep.subr.bf16.mxu0 %v4817_v32  ;;  %v5971_v51 = vrot.slane %v2478_v44, 4  ;;  %v6007_v44 = vld [vmem:[#allocation2 + $0x6c] sm:$0xf]  ;;  %p4837_p2 = scmp.lt.s32.totalorder %s4835_s8, %s4829_s6 }
  0xb5   : > { %p4838_p3 = por %p4837_p2, %p4836_p1 }
  0xb6   : > { %4581 = vmatpush3.bf16.msra.mxu0 %v4817_v32 }
  0xb7   : > { %p4839_p5 = pnand %p4838_p3, %p4832_p0 }
  0xb8   : > { %1176 = vmatmul.mubr.bf16.gmra.mrb[64].mxu1 %v7202_v42  ;;  %1836 = vmatmul.mubr.bf16.gmra.mrb[64].mxu0 %v5656_v27  ;;  %v7204_v27 = vld [vmem:[#allocation13_spill] sm:$0xff] }
  0xb9   : > { %1185 = vmatprep.mubr.bf16.mxu1 %v7171_v45  ;;  %1845 = vmatprep.mubr.bf16.mxu0 %v7171_v45 }
  0xc0   : > { %1186 = vmatmul.mubr.bf16.gmra.mrb[68].mxu1 %v7203_v54  ;;  %1846 = vmatmul.mubr.bf16.gmra.mrb[68].mxu0 %v5688_v0  ;;  %v5911_v0 = vld [vmem:[#allocation2 + $0xc] sm:$0xf]  ;;  %v5955_v54 = vrot.slane %v2443_v14, 4 }
  0xc1   : > { %1195 = vmatprep.mubr.bf16.mxu1 %v7171_v45  ;;  %1855 = vmatprep.mubr.bf16.mxu0 %v7171_v45  ;;  %v2358_v58 = vshrl.u32 %v5911_v0, 16  ;;  %v2361_v17 = vshll.u32 %v5911_v0, 16 }
  0xc8   : > { %1196 = vmatmul.mubr.bf16.gmra.mrb[72].mxu1 %v7204_v27  ;;  %1856 = vmatmul.mubr.bf16.gmra.mrb[72].mxu0 %v5698_v6  ;;  %v5913_v6 = vld [vmem:[#allocation2 + $0x10] sm:$0xf]  ;;  %v5957_v27 = vrot.slane %v2454_v12, 4 }
  0xc9   : > { %1205 = vmatprep.mubr.bf16.mxu1 %v7171_v45  ;;  %1865 = vmatprep.mubr.bf16.mxu0 %v7171_v45  ;;  %v4157_v13 = vcombine.low %v5911_v0, %v5913_v6  ;;  %v2367_v24 = vshll.u32 %v5913_v6, 16  ;;  %v2371_v8 = vshrl.u32 %v5913_v6, 16  ;;  %v5965_v0 = vrot.slane %v2467_v49, 4 }
  0xca   : > { %v2487_v6 = vshll.u32 %v505_v60, 16  ;;  %v2422_v49 = vor.u32 %v5942_v56, %v5940_v22 }
  0xcb   : > { %v2373_v7 = vrot.slane %v2371_v8, 4 }
  0xcc   : > { %v6029_v53 = vrot.slane %v2422_v49, 4 }
  0xd0   : > { %1206 = vmatmul.mubr.bf16.gmra.mrb[76].mxu1 %v7205_v52  ;;  %1866 = vmatmul.mubr.bf16.gmra.mrb[76].mxu0 %v5732_v10  ;;  %v497_v10 = vld [vmem:[#allocation2 + $0x1c] sm:$0xf]  ;;  %v5963_v52 = vrot.slane %v2463_v15, 5  ;;  %v2412_v15 = vor.u32 %v5936_v43, %v5934_v5  ;;  %v2550_v5 = vshrl.u32 %v6007_v44, 16  ;;  %v2553_v43 = vshll.u32 %v6007_v44, 16 }
  0xd1   : > { %1875 = vmatprep.mubr.bf16.mxu0 %v7171_v45  ;;  %2180 = vmatprep.mubr.bf16.mxu1 %v7171_v45  ;;  %v4158_v57 = vcombine.low %v496_v26, %v497_v10  ;;  %v2391_v61 = vshll.u32 %v497_v10, 16  ;;  %v2395_v23 = vshrl.u32 %v497_v10, 16  ;;  %v2363_v10 = vrot.slane %v2361_v17, 5 }
  0xd3   : > { %v5926_v1 = vrot.slane %v2391_v61, 5  ;;  %v2397_v11 = vrot.slane %v2395_v23, 4  ;;  %v526_v23 = vld [vmem:[#allocation2 + $0x14] sm:$0x1] }
  0xd4   : > { %v2377_v29 = vshll.u32 %v526_v23, 16 }
  0xd6   : > { %v2379_v8 = vrot.slane %v2377_v29, 5 }
  0xd8   : > { %1876 = vmatmul.mubr.bf16.gmra.mrb[80].mxu0 %v5747_v16  ;;  %2181 = vmatmul.mubr.bf16.vlgmr.msra.gmra.mrb[80].mxu1 %v4157_v13  ;;  %v2385_v16 = vshll.u32 %v496_v26, 16  ;;  %v5967_v13 = vld [vmem:[#allocation2 + $0x54] sm:$0xf]  ;;  %v2360_v26 = vrot.slane %v2358_v58, 4 }
  0xd9   : > { %1885 = vmatprep.mubr.bf16.mxu0 %v7171_v45  ;;  %2190 = vmatprep.mubr.bf16.mxu1 %v7171_v45  ;;  %v2502_v61 = vshrl.u32 %v5967_v13, 16 }
  0xda   : > { %v2387_v47 = vrot.slane %v2385_v16, 5  ;;  %v507_v16 = vld [vmem:[#allocation2 + $0x58] sm:$0xf] }
  0xdb   : > { %v4163_v18 = vcombine.low %v5967_v13, %v507_v16 }
  0xdc   : > { %v2388_v25 = vor.u32 %v2387_v47, %v2384_v46  ;;  %v2511_v46 = vshll.u32 %v507_v16, 16  ;;  %v2515_v47 = vshrl.u32 %v507_v16, 16  ;;  %v529_v16 = vld [vmem:[#allocation2 + $0x38] sm:$0x1] }
  0xde   : > { %v5932_v21 = vrot.slane %v2388_v25, 4  ;;  %v5981_v25 = vld [vmem:[#allocation2 + $0x64] sm:$0xf]  ;;  %v5996_v14 = vrot.slane %v2511_v46, 5  ;;  %v5998_v12 = vrot.slane %v2515_v47, 4  ;;  %v6050_v46 = vrot.slane %v2550_v5, 4 }
  0xdf   : > { %v2535_v58 = vshll.u32 %v5981_v25, 16  ;;  %v6055_v47 = vld [vmem:[%s7122_s3] ss:$0 sm:$0xff] }
  0xe0   : > { %1886 = vmatmul.mubr.bf16.gmra.mrb[84].mxu0 %v5768_v63  ;;  %2191 = vmatmul.mubr.bf16.gmra.mrb[84].mxu1 %v4158_v57  ;;  %v500_v63 = vld [vmem:[#allocation2 + $0x30] sm:$0xf]  ;;  %v5969_v57 = vrot.slane %v2367_v24, 5 }
  0xe1   : > { %1895 = vmatprep.mubr.bf16.mxu0 %v7171_v45  ;;  %2200 = vmatprep.mubr.bf16.mxu1 %v7171_v45  ;;  %v4160_v48 = vcombine.low %v500_v63, %v501_v34  ;;  %v2430_v28 = vshrl.u32 %v500_v63, 16  ;;  %v2433_v3 = vshll.u32 %v500_v63, 16  ;;  %v5974_v63 = vrot.slane %v2481_v37, 5 }
  0xe2   : > { %v2374_v62 = vor.u32 %v2373_v7, %v5969_v57  ;;  %v6027_v7 = vrot.slane %v2412_v15, 4 }
  0xe3   : > { %v5948_v50 = vrot.slane %v2430_v28, 4  ;;  %v5950_v32 = vrot.slane %v2433_v3, 5  ;;  %v5988_v28 = vrot.slane %v2502_v61, 4 }
  0xe4   : > { %v2375_v24 = vrot.slane %v2374_v62, 4  ;;  %v2418_v62 = vsel %vm5072_vm2, %v6027_v7, %v5940_v22  ;;  %v2470_v22 = vor.u32 %v5965_v0, %v5963_v52 }
  0xe6   : > { %v2380_v23 = vsel %vm5072_vm2, %v2375_v24, %v2379_v8 }
  0xe8   : > { %1896 = vmatmul.mubr.bf16.gmra.mrb[88].mxu0 %v5791_v38  ;;  %2201 = vmatmul.mubr.bf16.gmra.mrb[88].mxu1 %v4159_v40  ;;  %v2398_v38 = vor.u32 %v2397_v11, %v5926_v1  ;;  %v4162_v40 = vcombine.low %v504_v2, %v505_v60  ;;  %v5979_v11 = vld [vmem:[#allocation2 + $0x60] sm:$0xf]  ;;  %v2425_v2 = vshll.u32 %v528_v20, 16  ;;  %v6079_v20 = vld [vmem:[#allocation2 + $0x78] sm:$0xf] }
  0xe9   : > { %1905 = vmatprep.mubr.bf16.mxu0 %v7171_v45  ;;  %2210 = vmatprep.mubr.bf16.mxu1 %v7171_v45  ;;  %v2526_v3 = vshrl.u32 %v5979_v11, 16  ;;  %v2577_v5 = vshll.u32 %v6079_v20, 16 }
  0xea   : > { %v5938_v39 = vrot.slane %v2398_v38, 4  ;;  %v2364_v38 = vor.u32 %v2363_v10, %v2360_v26  ;;  %v2394_v26 = vsel %vm5072_vm2, %v5932_v21, %v5926_v1  ;;  %v2436_v1 = vor.u32 %v5950_v32, %v5948_v50 }
  0xec   : > { %v2365_v17 = vrot.slane %v2364_v38, 4  ;;  %v2404_v10 = vsel %vm5072_vm2, %v5938_v39, %v2403_v59  ;;  %v6044_v39 = vrot.slane %v2535_v58, 5  ;;  %v6081_v59 = vld [vmem:[#allocation2 + $0x7c] sm:$0xf]  ;;  %v6083_v15 = vrot.slane %v2436_v1, 4 }
  0xed   : > { %v6063_v32 = vcombine.low %v2394_v26, %v2404_v10  ;;  %v2484_v26 = vor.u32 %v5974_v63, %v5971_v51 }
  0xee   : > { %v2370_v61 = vsel %vm5072_vm2, %v2365_v17, %v5969_v57 }
  0xef   : > { %v4189_v41 = vcombine.low %v2370_v61, %v2380_v23  ;;  %v4166_v23 = vcombine.low %v6079_v20, %v6081_v59 }
  0xf0   : > { %1906 = vmatmul.mubr.bf16.gmra.mrb[92].mxu0 %v5816_v30  ;;  %2211 = vmatmul.mubr.bf16.gmra.mrb[92].mxu1 %v4160_v48  ;;  %v2439_v30 = vshll.u32 %v501_v34, 16  ;;  %v2505_v34 = vshll.u32 %v5967_v13, 16  ;;  %v5977_v48 = vrot.slane %v2487_v6, 5  ;;  %v2539_v6 = vshrl.u32 %v5981_v25, 16 }
  0xf1   : > { %1915 = vmatprep.mubr.bf16.mxu0 %v7171_v45  ;;  %2220 = vmatprep.mubr.bf16.mxu1 %v7171_v45 }
  0xf2   : > { %v5952_v42 = vrot.slane %v2439_v30, 5  ;;  %v2529_v30 = vshll.u32 %v5979_v11, 16 }
  0xf4   : > { %v6011_v37 = vrot.slane %v2529_v30, 5  ;;  %v2446_v21 = vor.u32 %v5955_v54, %v5952_v42  ;;  %v2449_v54 = vshll.u32 %v529_v16, 16 }
  0xf6   : > { %v6085_v49 = vrot.slane %v2446_v21, 4 }
  0xf8   : > { %1916 = vmatmul.mubr.bf16.gmra.mrb[96].mxu0 %v5826_v4  ;;  %2221 = vmatmul.mubr.bf16.gmra.mrb[96].mxu1 %v4161_v9  ;;  %v2491_v4 = vshrl.u32 %v505_v60, 16  ;;  %v5994_v9 = vrot.slane %v2505_v34, 5  ;;  %v6009_v60 = vrot.slane %v2526_v3, 4  ;;  %v6046_v34 = vrot.slane %v2539_v6, 4 }
  0xf9   : > { %1925 = vmatprep.mubr.bf16.mxu0 %v7171_v45  ;;  %2230 = vmatprep.mubr.bf16.mxu1 %v7171_v45  ;;  %v2574_v6 = vshrl.u32 %v6079_v20, 16 }
  0xfa   : > { %v5983_v55 = vrot.slane %v2491_v4, 4  ;;  %v6014_v4 = vld [vmem:[#allocation2 + $0x70] sm:$0xf] }
  0xfb   : > { %v2559_v56 = vshll.u32 %v6014_v4, 16  ;;  %v2563_v13 = vshrl.u32 %v6014_v4, 16  ;;  %v4165_v57 = vcombine.low %v6007_v44, %v6014_v4 }
  0xfc   : > { %v2494_v21 = vor.u32 %v5983_v55, %v5977_v48  ;;  %v2587_v55 = vshrl.u32 %v6081_v59, 16 }
  0xfd   : > { %v6061_v50 = vrot.slane %v2559_v56, 5  ;;  %v6069_v38 = vrot.slane %v2563_v13, 4 }
 0x100   : > { %1926 = vmatmul.mubr.bf16.gmra.mrb[100].mxu0 %v5840_v33  ;;  %2231 = vmatmul.mubr.bf16.gmra.mrb[100].mxu1 %v4162_v40  ;;  %v4164_v33 = vcombine.low %v5979_v11, %v5981_v25  ;;  %v6031_v40 = vrot.slane %v2425_v2, 5  ;;  %v2460_v2 = vor.u32 %v5959_v19, %v5957_v27  ;;  %v2583_v27 = vshll.u32 %v6081_v59, 16 }
 0x101   : > { %1935 = vmatprep.mubr.bf16.mxu0 %v7171_v45  ;;  %2240 = vmatprep.mubr.bf16.mxu1 %v7171_v45  ;;  %v6100_v19 = vrot.slane %v2449_v54, 5  ;;  %v6135_v11 = vrot.slane %v2574_v6, 4  ;;  %v6137_v25 = vrot.slane %v2577_v5, 5 }
 0x102   : > { %v2428_v29 = vsel %vm5072_vm2, %v6029_v53, %v6031_v40  ;;  %v6112_v1 = vrot.slane %v2460_v2, 4 }
 0x108   : > { %1936 = vmatmul.mubr.bf16.gmra.mrb[104].mxu0 %v5847_v36  ;;  %2241 = vmatmul.mubr.bf16.gmra.mrb[104].mxu1 %v4163_v18  ;;  %v6059_v36 = vrot.slane %v2553_v43, 5  ;;  %v530_v18 = vld [vmem:[#allocation2 + $0x44] sm:$0x1]  ;;  %v531_v43 = vld [vmem:[#allocation2 + $0x50] sm:$0x1] }
 0x109   : > { %1945 = vmatprep.mubr.bf16.mxu0 %v7171_v45  ;;  %2250 = vmatprep.mubr.bf16.mxu1 %v7171_v45  ;;  %v2473_v0 = vshll.u32 %v530_v18, 16  ;;  %v2497_v54 = vshll.u32 %v531_v43, 16  ;;  %v4191_v18 = vcombine.low %v2418_v62, %v2428_v29  ;;  %v2466_v29 = vsel %vm5072_vm2, %v6112_v1, %v5963_v52 }
 0x10b   : > { %v864_v3 = vpop.f32.mrb[0].mxu0  ;;  %v984_v30 = vpop.f32.mrb[0].mxu1  ;;  %v2475_v2 = vrot.slane %v2473_v0, 5 }
 0x10c   : > { %v3020_v58 = vadd.f32 %v6055_v47, %v864_v3  ;;  %v3044_v17 = vadd.f32 %v6055_v47, %v984_v30  ;;  %v6093_v24 = vpop.f32.mrb[1].mxu0  ;;  %v6095_v8 = vpop.f32.mrb[1].mxu1  ;;  %v2442_v3 = vsel %vm5072_vm2, %v6083_v15, %v5952_v42  ;;  %v2471_v30 = vrot.slane %v2470_v22, 4 }
 0x10d   : > { %v868_v56 = vpop.f32.mrb[2].mxu0  ;;  %v988_v13 = vpop.f32.mrb[2].mxu1  ;;  %v2495_v15 = vrot.slane %v2494_v21, 4  ;;  %v2499_v22 = vrot.slane %v2497_v54, 5  ;;  %v6175_v21 = vld [vmem:[#allocation2 + $0x88] sm:$0xf] }
 0x10e   : > { %v4413_v10 = vpack.c.bf16 %v3020_v58, %v3020_v58  ;;  %v4437_v7 = vpack.c.bf16 %v3044_v17, %v3044_v17  ;;  %v3021_v53 = vadd.f32 %v6055_v47, %v868_v56  ;;  %v3045_v40 = vadd.f32 %v6055_v47, %v988_v13  ;;  %v6106_v16 = vpop.f32.mrb[3].mxu0  ;;  %v6108_v61 = vpop.f32.mrb[3].mxu1 }
 0x10f   : > { %7206 = vst [vmem:[#allocation6_spill] sm:$0xff] %v6108_v61  ;;  %v6131_v58 = vrot.slane %v2484_v26, 4  ;;  %v2508_v17 = vor.u32 %v5994_v9, %v5988_v28  ;;  %v2518_v13 = vor.u32 %v5998_v12, %v5996_v14  ;;  %v2476_v28 = vsel %vm5072_vm2, %v2471_v30, %v2475_v2 }
 0x110   : > { %3436 = vst [vmem:[%s6117_s11] sm:$0xf] %v4413_v10  ;;  %3460 = vst [vmem:[%s6117_s11 + $0x180] sm:$0xf] %v4437_v7  ;;  %v4414_v51 = vpack.c.bf16 %v3021_v53, %v3021_v53  ;;  %v4438_v63 = vpack.c.bf16 %v3045_v40, %v3045_v40  ;;  %1946 = vmatmul.mubr.bf16.gmra.mrb[108].mxu0 %v5859_v31  ;;  %2251 = vmatmul.mubr.bf16.gmra.mrb[108].mxu1 %v4164_v33  ;;  %v532_v31 = vld [vmem:[#allocation2 + $0x5c] sm:$0x1]  ;;  %v6139_v33 = vrot.slane %v2583_v27, 5 }
 0x111   : > { %2260 = vmatprep.mubr.bf16.mxu1 %v7171_v45  ;;  %4582 = vmatprep.mubr.bf16.mxu0 %v4189_v41  ;;  %v2452_v41 = vsel %vm5072_vm2, %v6085_v49, %v6100_v19  ;;  %v6157_v49 = vld [vmem:[#allocation2 + $0x84] sm:$0xf]  ;;  %v2521_v27 = vshll.u32 %v532_v31, 16  ;;  %v2490_v26 = vsel %vm5072_vm2, %v6131_v58, %v5977_v48  ;;  %v2607_v54 = vshll.u32 %v6175_v21, 16 }
 0x112   : > { %3437 = vst [vmem:[%s6117_s11 + $0x8] sm:$0xf] %v4414_v51  ;;  %3461 = vst [vmem:[%s6117_s11 + $0x188] sm:$0xf] %v4438_v63  ;;  %v2598_v9 = vshrl.u32 %v6157_v49, 16  ;;  %v2601_v0 = vshll.u32 %v6157_v49, 16  ;;  %v2500_v51 = vsel %vm5072_vm2, %v2495_v15, %v2499_v22  ;;  %v2532_v48 = vor.u32 %v6011_v37, %v6009_v60 }
 0x113   : > { %v874_v62 = vpop.f32.mrb[4].mxu0  ;;  %v994_v42 = vpop.f32.mrb[4].mxu1  ;;  %v6180_v63 = vrot.slane %v2508_v17, 4  ;;  %v2519_v58 = vrot.slane %v2518_v13, 4  ;;  %v2523_v31 = vrot.slane %v2521_v27, 5  ;;  %v4192_v60 = vcombine.low %v2442_v3, %v2452_v41 }
 0x114   : > { %v3022_v6 = vadd.f32 %v6055_v47, %v874_v62  ;;  %v3046_v5 = vadd.f32 %v6055_v47, %v994_v42  ;;  %v6153_v43 = vpop.f32.mrb[5].mxu0  ;;  %v6155_v56 = vpop.f32.mrb[5].mxu1  ;;  %v533_v62 = vld [vmem:[#allocation2 + $0x68] sm:$0x1]  ;;  %v6191_v42 = vrot.slane %v2587_v55, 4  ;;  %v4167_v37 = vcombine.low %v6157_v49, %v6175_v21 }
 0x115   : > { %7207 = vst [vmem:[#allocation24_spill] sm:$0xff] %v6155_v56  ;;  %v878_v52 = vpop.f32.mrb[6].mxu0  ;;  %v998_v19 = vpop.f32.mrb[6].mxu1  ;;  %v2542_v15 = vor.u32 %v6046_v34, %v6044_v39  ;;  %v4193_v44 = vcombine.low %v2466_v29, %v2476_v28  ;;  %v6199_v4 = vrot.slane %v2598_v9, 4  ;;  %v534_v22 = vld [vmem:[#allocation2 + $0x74] sm:$0x1]  ;;  %v6206_v3 = vcombine.low %v2490_v26, %v2500_v51 }
 0x116   : > { %v4415_v10 = vpack.c.bf16 %v3022_v6, %v3022_v6  ;;  %v4439_v7 = vpack.c.bf16 %v3046_v5, %v3046_v5  ;;  %v3023_v12 = vadd.f32 %v6055_v47, %v878_v52  ;;  %v3047_v53 = vadd.f32 %v6055_v47, %v998_v19  ;;  %v6171_v40 = vpop.f32.mrb[7].mxu0  ;;  %v6173_v1 = vpop.f32.mrb[7].mxu1  ;;  %v6222_v9 = vld [vmem:[#allocation2 + $0x90] sm:$0xf] }
 0x117   : > { %7208 = vst [vmem:[#allocation23_spill] sm:$0xff] %v6173_v1  ;;  %v6204_v17 = vrot.slane %v2607_v54, 5  ;;  %v2514_v34 = vsel %vm5072_vm2, %v6180_v63, %v5996_v14  ;;  %v2545_v41 = vshll.u32 %v533_v62, 16  ;;  %v2524_v27 = vsel %vm5072_vm2, %v2519_v58, %v2523_v31 }
 0x118   : > { %3438 = vst [vmem:[%s6117_s11 + $0x20] sm:$0xf] %v4415_v10  ;;  %3462 = vst [vmem:[%s6117_s11 + $0x1a0] sm:$0xf] %v4439_v7  ;;  %v4416_v30 = vpack.c.bf16 %v3023_v12, %v3023_v12  ;;  %v4440_v2 = vpack.c.bf16 %v3047_v53, %v3047_v53  ;;  %2261 = vmatmul.mubr.bf16.gmra.mrb[112].mxu1 %v4165_v57  ;;  %4583 = vmatmul.mubr.bf16.vlgmr.msra.gmra.mrb[112].mxu0 %v6063_v32  ;;  %v6201_v57 = vrot.slane %v2601_v0, 5 }
 0x119   : > { %2270 = vmatprep.mubr.bf16.mxu1 %v7171_v45  ;;  %4586 = vmatprep.mubr.bf16.mxu0 %v4191_v18  ;;  %v2611_v32 = vshrl.u32 %v6175_v21, 16  ;;  %v6220_v52 = vrot.slane %v2532_v48, 4  ;;  %v6224_v0 = vrot.slane %v2542_v15, 4  ;;  %v2556_v14 = vor.u32 %v6059_v36, %v6050_v46  ;;  %v6236_v48 = vld [vmem:[#allocation2 + $0x94] sm:$0xf] }
 0x11a   : > { %3439 = vst [vmem:[%s6117_s11 + $0x28] sm:$0xf] %v4416_v30  ;;  %3463 = vst [vmem:[%s6117_s11 + $0x1a8] sm:$0xf] %v4440_v2  ;;  %v2566_v26 = vor.u32 %v6069_v38, %v6061_v50  ;;  %v2569_v10 = vshll.u32 %v534_v22, 16  ;;  %v2622_v46 = vshrl.u32 %v6222_v9, 16  ;;  %v2580_v38 = vor.u32 %v6137_v25, %v6135_v11 }
 0x11b   : > { %v884_v18 = vpop.f32.mrb[8].mxu0  ;;  %v1004_v55 = vpop.f32.mrb[8].mxu1  ;;  %v535_v30 = vld [vmem:[#allocation2 + $0x80] sm:$0x1]  ;;  %v2625_v36 = vshll.u32 %v6222_v9, 16  ;;  %v6240_v2 = vrot.slane %v2545_v41, 5  ;;  %v2590_v15 = vor.u32 %v6191_v42, %v6139_v33  ;;  %v4195_v22 = vcombine.low %v2514_v34, %v2524_v27 }
 0x11c   : > { %v3024_v29 = vadd.f32 %v6055_v47, %v884_v18  ;;  %v3048_v6 = vadd.f32 %v6055_v47, %v1004_v55  ;;  %v6214_v5 = vpop.f32.mrb[9].mxu0  ;;  %v6216_v13 = vpop.f32.mrb[9].mxu1  ;;  %v6249_v62 = vrot.slane %v2611_v32, 4  ;;  %v4168_v11 = vcombine.low %v6222_v9, %v6236_v48 }
 0x11d   : > { %7209 = vst [vmem:[#allocation17_spill] sm:$0xff] %v6216_v13  ;;  %v888_v19 = vpop.f32.mrb[10].mxu0  ;;  %v1008_v28 = vpop.f32.mrb[10].mxu1  ;;  %v2631_v25 = vshll.u32 %v6236_v48, 16  ;;  %v2593_v18 = vshll.u32 %v535_v30, 16  ;;  %v2635_v20 = vshrl.u32 %v6236_v48, 16  ;;  %v2548_v34 = vsel %vm5072_vm2, %v6224_v0, %v6240_v2 }
 0x11e   : > { %v4417_v7 = vpack.c.bf16 %v3024_v29, %v3024_v29  ;;  %v4441_v12 = vpack.c.bf16 %v3048_v6, %v3048_v6  ;;  %v3025_v53 = vadd.f32 %v6055_v47, %v888_v19  ;;  %v3049_v54 = vadd.f32 %v6055_v47, %v1008_v28  ;;  %v6232_v51 = vpop.f32.mrb[11].mxu0  ;;  %v6234_v63 = vpop.f32.mrb[11].mxu1  ;;  %v6272_v29 = vld [vmem:[#allocation2 + $0x9c] sm:$0xf] }
 0x11f   : > { %7210 = vst [vmem:[#allocation8_spill] sm:$0xff] %v6234_v63  ;;  %v2557_v59 = vrot.slane %v2556_v14, 4  ;;  %v6260_v42 = vrot.slane %v2622_v46, 4  ;;  %v6262_v41 = vrot.slane %v2625_v36, 5  ;;  %v2581_v14 = vrot.slane %v2580_v38, 4 }
 0x120   : > { %3440 = vst [vmem:[%s6117_s11 + $0x40] sm:$0xf] %v4417_v7  ;;  %3464 = vst [vmem:[%s6117_s11 + $0x1c0] sm:$0xf] %v4441_v12  ;;  %v4418_v58 = vpack.c.bf16 %v3025_v53, %v3025_v53  ;;  %v4442_v31 = vpack.c.bf16 %v3049_v54, %v3049_v54  ;;  %2271 = vmatmul.mubr.bf16.gmra.mrb[116].mxu1 %v4166_v23  ;;  %4587 = vmatmul.mubr.bf16.gmra.mrb[116].mxu0 %v4192_v60  ;;  %v2567_v23 = vrot.slane %v2566_v26, 4 }
 0x121   : > { %2280 = vmatprep.mubr.bf16.mxu1 %v7171_v45  ;;  %4590 = vmatprep.mubr.bf16.mxu0 %v4193_v44  ;;  %v2571_v60 = vrot.slane %v2569_v10, 5  ;;  %v2538_v44 = vsel %vm5072_vm2, %v6220_v52, %v6044_v39  ;;  %v2591_v26 = vrot.slane %v2590_v15, 4  ;;  %v536_v10 = vld [vmem:[#allocation2 + $0x8c] sm:$0x1]  ;;  %v2646_v52 = vshrl.u32 %v6272_v29, 16 }
 0x122   : > { %3441 = vst [vmem:[%s6117_s11 + $0x48] sm:$0xf] %v4418_v58  ;;  %3465 = vst [vmem:[%s6117_s11 + $0x1c8] sm:$0xf] %v4442_v31  ;;  %v2649_v0 = vshll.u32 %v6272_v29, 16  ;;  %v2595_v12 = vrot.slane %v2593_v18, 5  ;;  %v2604_v53 = vor.u32 %v6201_v57, %v6199_v4  ;;  %v2562_v15 = vsel %vm5072_vm2, %v2557_v59, %v6061_v50 }
 0x123   : > { %v894_v32 = vpop.f32.mrb[12].mxu0  ;;  %v1014_v55 = vpop.f32.mrb[12].mxu1  ;;  %v6290_v58 = vld [vmem:[#allocation2 + $0xa0] sm:$0xf]  ;;  %v6292_v31 = vld [vmem:[#allocation2 + $0x98] sm:$0x1]  ;;  %v2572_v4 = vsel %vm5072_vm2, %v2567_v23, %v2571_v60  ;;  %v2614_v50 = vor.u32 %v6249_v62, %v6204_v17 }
 0x124   : > { %v3026_v6 = vadd.f32 %v6055_v47, %v894_v32  ;;  %v3050_v27 = vadd.f32 %v6055_v47, %v1014_v55  ;;  %v6276_v19 = vpop.f32.mrb[13].mxu0  ;;  %v6278_v28 = vpop.f32.mrb[13].mxu1  ;;  %v2655_v57 = vshll.u32 %v6290_v58, 16  ;;  %v2659_v18 = vshrl.u32 %v6290_v58, 16  ;;  %v6397_v63 = vld [vmem:[#allocation2 + $0xc4] sm:$0xf] }
 0x125   : > { %7211 = vst [vmem:[#allocation19_spill] sm:$0xff] %v6278_v28  ;;  %v898_v7 = vpop.f32.mrb[14].mxu0  ;;  %v1018_v39 = vpop.f32.mrb[14].mxu1  ;;  %v2617_v59 = vshll.u32 %v536_v10, 16  ;;  %v6310_v23 = vrot.slane %v2631_v25, 5  ;;  %v2637_v60 = vrot.slane %v2635_v20, 4  ;;  %v4196_v20 = vcombine.low %v2538_v44, %v2548_v34 }
 0x126   : > { %v4419_v54 = vpack.c.bf16 %v3026_v6, %v3026_v6  ;;  %v4443_v30 = vpack.c.bf16 %v3050_v27, %v3050_v27  ;;  %v3027_v46 = vadd.f32 %v6055_v47, %v898_v7  ;;  %v3051_v36 = vadd.f32 %v6055_v47, %v1018_v39  ;;  %v6286_v2 = vpop.f32.mrb[15].mxu0  ;;  %v6288_v38 = vpop.f32.mrb[15].mxu1  ;;  %v6315_v27 = vld [vmem:[#allocation2 + $0xa8] sm:$0xf] }
 0x127   : > { %7212 = vst [vmem:[#allocation18_spill] sm:$0xff] %v6288_v38  ;;  %v2586_v6 = vsel %vm5072_vm2, %v2581_v14, %v6139_v33  ;;  %v2641_v49 = vshll.u32 %v6292_v31, 16  ;;  %v2648_v21 = vrot.slane %v2646_v52, 4  ;;  %v6322_v62 = vrot.slane %v2604_v53, 4  ;;  %v6328_v14 = vld [vmem:[#allocation2 + $0xac] sm:$0xf] }
 0x128   : > { %3442 = vst [vmem:[%s6117_s11 + $0x60] sm:$0xf] %v4419_v54  ;;  %3466 = vst [vmem:[%s6117_s11 + $0x1e0] sm:$0xf] %v4443_v30  ;;  %v4420_v32 = vpack.c.bf16 %v3027_v46, %v3027_v46  ;;  %v4444_v55 = vpack.c.bf16 %v3051_v36, %v3051_v36  ;;  %2281 = vmatmul.mubr.bf16.gmra.mrb[120].mxu1 %v4167_v37  ;;  %4591 = vmatmul.mubr.bf16.gmra.mrb[120].mxu0 %v6206_v3  ;;  %v2651_v37 = vrot.slane %v2649_v0, 5 }
 0x129   : > { %2290 = vmatprep.mubr.bf16.mxu1 %v7171_v45  ;;  %4594 = vmatprep.mubr.bf16.mxu0 %v4195_v22  ;;  %v2596_v3 = vsel %vm5072_vm2, %v2591_v26, %v2595_v12  ;;  %v4197_v10 = vcombine.low %v2562_v15, %v2572_v4  ;;  %v6326_v7 = vrot.slane %v2655_v57, 5  ;;  %v2661_v33 = vrot.slane %v2659_v18, 4  ;;  %v538_v31 = vld [vmem:[#allocation2 + $0xa4] sm:$0x1]  ;;  %v6345_v15 = vld [vmem:[#allocation2 + $0xb4] sm:$0xf] }
 0x12a   : > { %3443 = vst [vmem:[%s6117_s11 + $0x68] sm:$0xf] %v4420_v32  ;;  %3467 = vst [vmem:[%s6117_s11 + $0x1e8] sm:$0xf] %v4444_v55  ;;  %v2615_v0 = vrot.slane %v2614_v50, 4  ;;  %v2619_v26 = vrot.slane %v2617_v59, 5  ;;  %v6340_v34 = vcombine.low %v2586_v6, %v2596_v3  ;;  %v2628_v46 = vor.u32 %v6262_v41, %v6260_v42 }
 0x12b   : > { %v904_v22 = vpop.f32.mrb[16].mxu0  ;;  %v6324_v25 = vpop.f32.mrb[16].mxu1  ;;  %v2670_v12 = vshrl.u32 %v6315_v27, 16  ;;  %v2638_v36 = vor.u32 %v2637_v60, %v6310_v23  ;;  %v2673_v55 = vshll.u32 %v6315_v27, 16  ;;  %v2679_v50 = vshll.u32 %v6328_v14, 16 }
 0x12c   : > { %v3028_v39 = vadd.f32 %v6055_v47, %v904_v22  ;;  %v6331_v54 = vpop.f32.mrb[17].mxu0  ;;  %v6333_v52 = vpop.f32.mrb[17].mxu1  ;;  %v2610_v42 = vsel %vm5072_vm2, %v6322_v62, %v6204_v17  ;;  %v2683_v41 = vshrl.u32 %v6328_v14, 16  ;;  %v2652_v59 = vor.u32 %v2651_v37, %v2648_v21  ;;  %v6360_v6 = vld [vmem:[#allocation2 + $0xb8] sm:$0xf] }
 0x12d   : > { %v908_v53 = vpop.f32.mrb[18].mxu0  ;;  %v6336_v30 = vpop.f32.mrb[18].mxu1  ;;  %v2662_v60 = vor.u32 %v2661_v33, %v6326_v7  ;;  %v2665_v22 = vshll.u32 %v538_v31, 16  ;;  %v2697_v17 = vshll.u32 %v6345_v15, 16  ;;  %v2620_v21 = vsel %vm5072_vm2, %v2615_v0, %v2619_v26 }
 0x12e   : > { %v4421_v4 = vpack.c.bf16 %v3028_v39, %v3028_v39  ;;  %v3029_v57 = vadd.f32 %v6055_v47, %v908_v53  ;;  %v6348_v18 = vpop.f32.mrb[19].mxu0  ;;  %v6350_v32 = vpop.f32.mrb[19].mxu1  ;;  %v2694_v39 = vshrl.u32 %v6345_v15, 16  ;;  %v2672_v37 = vrot.slane %v2670_v12, 4 }
 0x12f   : > { %v2629_v62 = vrot.slane %v2628_v46, 4  ;;  %v2639_v33 = vrot.slane %v2638_v36, 4  ;;  %v2675_v53 = vrot.slane %v2673_v55, 5  ;;  %v2703_v9 = vshll.u32 %v6360_v6, 16 }
 0x130   : > { %3444 = vst [vmem:[%s6117_s11 + $0x80] sm:$0xf] %v4421_v4  ;;  %v4422_v3 = vpack.c.bf16 %v3029_v57, %v3029_v57  ;;  %2291 = vmatmul.mubr.bf16.gmra.mrb[124].mxu1 %v4168_v11  ;;  %4595 = vmatmul.mubr.bf16.gmra.mrb[124].mxu0 %v4196_v20  ;;  %v6372_v4 = vrot.slane %v2679_v50, 5  ;;  %v2707_v48 = vshrl.u32 %v6360_v6, 16  ;;  %v2685_v31 = vrot.slane %v2683_v41, 4 }
 0x131   : > { %2300 = vmatprep.mubr.bf16.mxu1 %v7171_v45  ;;  %4598 = vmatprep.mubr.bf16.mxu0 %v4197_v10  ;;  %v2643_v57 = vrot.slane %v2641_v49, 5  ;;  %v2653_v10 = vrot.slane %v2652_v59, 4  ;;  %v2663_v44 = vrot.slane %v2662_v60, 4  ;;  %v2667_v46 = vrot.slane %v2665_v22, 5  ;;  %v539_v41 = vld [vmem:[#allocation2 + $0xb0] sm:$0x1] }
 0x132   : > { %3445 = vst [vmem:[%s6117_s11 + $0x88] sm:$0xf] %v4422_v3  ;;  %v2696_v36 = vrot.slane %v2694_v39, 4  ;;  %v2699_v55 = vrot.slane %v2697_v17, 5  ;;  %v4199_v38 = vcombine.low %v2610_v42, %v2620_v21  ;;  %v2634_v49 = vsel %vm5072_vm2, %v2629_v62, %v6310_v23  ;;  %v6388_v59 = vld [vmem:[#allocation2 + $0xc0] sm:$0xf] }
 0x133   : > { %v914_v11 = vpop.f32.mrb[20].mxu0  ;;  %v6376_v20 = vpop.f32.mrb[20].mxu1  ;;  %v6395_v39 = vrot.slane %v2703_v9, 5  ;;  %v2709_v17 = vrot.slane %v2707_v48, 4  ;;  %v2644_v42 = vsel %vm5072_vm2, %v2639_v33, %v2643_v57  ;;  %v2658_v23 = vsel %vm5072_vm2, %v2653_v10, %v6326_v7 }
 0x134   : > { %v3030_v0 = vadd.f32 %v6055_v47, %v914_v11  ;;  %v6379_v26 = vpop.f32.mrb[21].mxu0  ;;  %v6381_v12 = vpop.f32.mrb[21].mxu1  ;;  %v2676_v21 = vor.u32 %v2675_v53, %v2672_v37  ;;  %v2686_v62 = vor.u32 %v2685_v31, %v6372_v4  ;;  %v7213_v9 = vcombine.low %v6272_v29, %v6290_v58 }
 0x135   : > { %v918_v50 = vpop.f32.mrb[22].mxu0  ;;  %v6383_v3 = vpop.f32.mrb[22].mxu1  ;;  %v2668_v33 = vsel %vm5072_vm2, %v2663_v44, %v2667_v46  ;;  %v2689_v48 = vshll.u32 %v539_v41, 16  ;;  %v2700_v57 = vor.u32 %v2699_v55, %v2696_v36  ;;  %v2718_v7 = vshrl.u32 %v6388_v59, 16 }
 0x136   : > { %v4423_v60 = vpack.c.bf16 %v3030_v0, %v3030_v0  ;;  %v3031_v11 = vadd.f32 %v6055_v47, %v918_v50  ;;  %v6391_v28 = vpop.f32.mrb[23].mxu0  ;;  %v6393_v22 = vpop.f32.mrb[23].mxu1  ;;  %v540_v0 = vld [vmem:[#allocation2 + $0xbc] sm:$0x1]  ;;  %v2721_v37 = vshll.u32 %v6388_v59, 16  ;;  %v2727_v53 = vshll.u32 %v6397_v63, 16 }
 0x137   : > { %v2731_v31 = vshrl.u32 %v6397_v63, 16  ;;  %v2710_v29 = vor.u32 %v2709_v17, %v6395_v39  ;;  %v2713_v58 = vshll.u32 %v540_v0, 16  ;;  %v4170_v44 = vcombine.low %v6315_v27, %v6328_v14 }
 0x138   : > { %3446 = vst [vmem:[%s6117_s11 + $0xa0] sm:$0xf] %v4423_v60  ;;  %v4424_v50 = vpack.c.bf16 %v3031_v11, %v3031_v11  ;;  %2301 = vmatmul.mubr.bf16.gmra.mrb[128].mxu1 %v7213_v9  ;;  %4599 = vmatmul.mubr.bf16.gmra.mrb[128].mxu0 %v6340_v34  ;;  %v4200_v46 = vcombine.low %v2634_v49, %v2644_v42  ;;  %v2687_v36 = vrot.slane %v2686_v62, 4  ;;  %v2701_v17 = vrot.slane %v2700_v57, 4 }
 0x139   : > { %2310 = vmatprep.mubr.bf16.mxu1 %v7171_v45  ;;  %4602 = vmatprep.mubr.bf16.mxu0 %v4199_v38  ;;  %v2677_v38 = vrot.slane %v2676_v21, 4  ;;  %v4201_v11 = vcombine.low %v2658_v23, %v2668_v33  ;;  %v2720_v13 = vrot.slane %v2718_v7, 4  ;;  %v2723_v1 = vrot.slane %v2721_v37, 5  ;;  %v541_v33 = vld [vmem:[#allocation2 + $0xc8] sm:$0x1] }
 0x13a   : > { %3447 = vst [vmem:[%s6117_s11 + $0xa8] sm:$0xf] %v4424_v50  ;;  %v2691_v50 = vrot.slane %v2689_v48, 5  ;;  %v2729_v56 = vrot.slane %v2727_v53, 5  ;;  %v2733_v27 = vrot.slane %v2731_v31, 4  ;;  %v2711_v62 = vrot.slane %v2710_v29, 4 }
 0x13b   : > { %v924_v34 = vpop.f32.mrb[24].mxu0  ;;  %v6419_v10 = vpop.f32.mrb[24].mxu1  ;;  %v2715_v23 = vrot.slane %v2713_v58, 5  ;;  %v2682_v57 = vsel %vm5072_vm2, %v2677_v38, %v6372_v4  ;;  %v2724_v37 = vor.u32 %v2723_v1, %v2720_v13  ;;  %v2737_v31 = vshll.u32 %v541_v33, 16 }
 0x13c   : > { %v3032_v55 = vadd.f32 %v6055_v47, %v924_v34  ;;  %v6424_v41 = vpop.f32.mrb[25].mxu0  ;;  %v6426_v60 = vpop.f32.mrb[25].mxu1  ;;  %v2692_v7 = vsel %vm5072_vm2, %v2687_v36, %v2691_v50  ;;  %v2734_v53 = vor.u32 %v2733_v27, %v2729_v56  ;;  %v2706_v29 = vsel %vm5072_vm2, %v2701_v17, %v6395_v39 }
 0x13d   : > { %v928_v0 = vpop.f32.mrb[26].mxu0  ;;  %v6428_v9 = vpop.f32.mrb[26].mxu1  ;;  %v2716_v58 = vsel %vm5072_vm2, %v2711_v62, %v2715_v23  ;;  %v4171_v1 = vcombine.low %v6345_v15, %v6360_v6  ;;  %v4202_v13 = vcombine.low %v2682_v57, %v2692_v7  ;;  %v2739_v17 = vrot.slane %v2737_v31, 5 }
 0x13e   : > { %v4425_v14 = vpack.c.bf16 %v3032_v55, %v3032_v55  ;;  %v3033_v49 = vadd.f32 %v6055_v47, %v928_v0  ;;  %v6431_v42 = vpop.f32.mrb[27].mxu0  ;;  %v6433_v21 = vpop.f32.mrb[27].mxu1  ;;  %v4203_v39 = vcombine.low %v2706_v29, %v2716_v58  ;;  %v2735_v50 = vrot.slane %v2734_v53, 4 }
 0x140   : > { %3448 = vst [vmem:[%s6117_s11 + $0xc0] sm:$0xf] %v4425_v14  ;;  %v4426_v48 = vpack.c.bf16 %v3033_v49, %v3033_v49  ;;  %2311 = vmatmul.mubr.bf16.gmra.mrb[132].mxu1 %v4170_v44  ;;  %4603 = vmatmul.mubr.bf16.gmra.mrb[132].mxu0 %v4200_v46  ;;  %v2740_v6 = vsel %vm5072_vm2, %v2735_v50, %v2739_v17 }
 0x141   : > { %2320 = vmatprep.mubr.bf16.mxu1 %v7171_v45  ;;  %4606 = vmatprep.mubr.bf16.mxu0 %v4201_v11  ;;  %v2725_v11 = vrot.slane %v2724_v37, 4 }
 0x142   : > { %3449 = vst [vmem:[%s6117_s11 + $0xc8] sm:$0xf] %v4426_v48 }
 0x143   : > { %v934_v34 = vpop.f32.mrb[28].mxu0  ;;  %v6448_v44 = vpop.f32.mrb[28].mxu1  ;;  %v2730_v15 = vsel %vm5072_vm2, %v2725_v11, %v2729_v56 }
 0x144   : > { %v3034_v4 = vadd.f32 %v6055_v47, %v934_v34  ;;  %v6451_v46 = vpop.f32.mrb[29].mxu0  ;;  %v6453_v38 = vpop.f32.mrb[29].mxu1  ;;  %v4204_v37 = vcombine.low %v2730_v15, %v2740_v6 }
 0x145   : > { %v938_v36 = vpop.f32.mrb[30].mxu0  ;;  %v6457_v55 = vpop.f32.mrb[30].mxu1 }
 0x146   : > { %v4427_v0 = vpack.c.bf16 %v3034_v4, %v3034_v4  ;;  %v3035_v27 = vadd.f32 %v6055_v47, %v938_v36  ;;  %v6460_v14 = vpop.f32.mrb[31].mxu0  ;;  %v6462_v49 = vpop.f32.mrb[31].mxu1 }
 0x148   : > { %3450 = vst [vmem:[%s6117_s11 + $0xe0] sm:$0xf] %v4427_v0  ;;  %v4428_v62 = vpack.c.bf16 %v3035_v27, %v3035_v27  ;;  %2321 = vmatmul.mubr.bf16.gmra.mrb[136].mxu1 %v4171_v1  ;;  %4607 = vmatmul.mubr.bf16.gmra.mrb[136].mxu0 %v4202_v13 }
 0x149   : > { %2330 = vmatprep.mubr.bf16.mxu1 %v7171_v45  ;;  %4610 = vmatprep.mubr.bf16.mxu0 %v4203_v39  ;;  %v4172_v45 = vcombine.low %v6388_v59, %v6397_v63 }
 0x14a   : > { %3451 = vst [vmem:[%s6117_s11 + $0xe8] sm:$0xf] %v4428_v62 }
 0x14b   : > { %v944_v23 = vpop.f32.mrb[32].mxu0  ;;  %v6471_v33 = vpop.f32.mrb[32].mxu1 }
 0x14c   : > { %v3036_v48 = vadd.f32 %v6055_v47, %v944_v23  ;;  %v6474_v57 = vpop.f32.mrb[33].mxu0  ;;  %v6476_v7 = vpop.f32.mrb[33].mxu1 }
 0x14d   : > { %v948_v56 = vpop.f32.mrb[34].mxu0  ;;  %v6480_v53 = vpop.f32.mrb[34].mxu1 }
 0x14e   : > { %7214 = vst [vmem:[#allocation9_spill] sm:$0xff] %v6480_v53  ;;  %v4429_v35 = vpack.c.bf16 %v3036_v48, %v3036_v48  ;;  %v3037_v31 = vadd.f32 %v6055_v47, %v948_v56  ;;  %v6483_v29 = vpop.f32.mrb[35].mxu0  ;;  %v6485_v58 = vpop.f32.mrb[35].mxu1 }
 0x150   : > { %3452 = vst [vmem:[%s6117_s11 + $0x100] sm:$0xf] %v4429_v35  ;;  %v4430_v34 = vpack.c.bf16 %v3037_v31, %v3037_v31  ;;  %2331 = vmatmul.mubr.bf16.gmra.mrb[140].mxu1 %v4172_v45  ;;  %4611 = vmatmul.mubr.bf16.gmra.mrb[140].mxu0 %v4204_v37 }
 0x152   : > { %3453 = vst [vmem:[%s6117_s11 + $0x108] sm:$0xf] %v4430_v34 }
 0x153   : > { %v954_v4 = vpop.f32.mrb[36].mxu0  ;;  %v6489_v63 = vpop.f32.mrb[36].mxu1 }
 0x154   : > { %7215 = vst [vmem:[#allocation11_spill] sm:$0xff] %v6489_v63  ;;  %v3038_v59 = vadd.f32 %v6055_v47, %v954_v4  ;;  %v6492_v1 = vpop.f32.mrb[37].mxu0  ;;  %v6494_v13 = vpop.f32.mrb[37].mxu1 }
 0x155   : > { %v958_v36 = vpop.f32.mrb[38].mxu0  ;;  %v6496_v39 = vpop.f32.mrb[38].mxu1 }
 0x156   : > { %7216 = vst [vmem:[#allocation20_spill] sm:$0xff] %v6496_v39  ;;  %v4431_v11 = vpack.c.bf16 %v3038_v59, %v3038_v59  ;;  %v3039_v50 = vadd.f32 %v6055_v47, %v958_v36  ;;  %v6499_v17 = vpop.f32.mrb[39].mxu0  ;;  %v6501_v0 = vpop.f32.mrb[39].mxu1 }
 0x158   : > { %3454 = vst [vmem:[%s6117_s11 + $0x120] sm:$0xf] %v4431_v11  ;;  %v4432_v27 = vpack.c.bf16 %v3039_v50, %v3039_v50 }
 0x15a   : > { %3455 = vst [vmem:[%s6117_s11 + $0x128] sm:$0xf] %v4432_v27 }
 0x15b   : > { %v964_v62 = vpop.f32.mrb[40].mxu0  ;;  %v6505_v15 = vpop.f32.mrb[40].mxu1 }
 0x15c   : > { %7217 = vst [vmem:[#allocation12_spill] sm:$0xff] %v6505_v15  ;;  %v3040_v6 = vadd.f32 %v6055_v47, %v964_v62  ;;  %v6508_v23 = vpop.f32.mrb[41].mxu0  ;;  %v6510_v48 = vpop.f32.mrb[41].mxu1 }
 0x15d   : > { %v968_v45 = vpop.f32.mrb[42].mxu0  ;;  %v6512_v37 = vpop.f32.mrb[42].mxu1 }
 0x15e   : > { %7218 = vst [vmem:[#allocation14_spill] sm:$0xff] %v6512_v37  ;;  %v4433_v56 = vpack.c.bf16 %v3040_v6, %v3040_v6  ;;  %v3041_v35 = vadd.f32 %v6055_v47, %v968_v45  ;;  %v6515_v31 = vpop.f32.mrb[43].mxu0  ;;  %v6517_v34 = vpop.f32.mrb[43].mxu1 }
 0x160   : > { %3456 = vst [vmem:[%s6117_s11 + $0x140] sm:$0xf] %v4433_v56  ;;  %v4434_v4 = vpack.c.bf16 %v3041_v35, %v3041_v35 }
 0x162   : > { %3457 = vst [vmem:[%s6117_s11 + $0x148] sm:$0xf] %v4434_v4 }
 0x163   : > { %v974_v59 = vpop.f32.mrb[44].mxu0  ;;  %v6521_v36 = vpop.f32.mrb[44].mxu1 }
 0x164   : > { %7219 = vst [vmem:[#allocation21_spill] sm:$0xff] %v6521_v36  ;;  %v3042_v11 = vadd.f32 %v6055_v47, %v974_v59  ;;  %v6524_v50 = vpop.f32.mrb[45].mxu0  ;;  %v6526_v27 = vpop.f32.mrb[45].mxu1 }
 0x165   : > { %v978_v62 = vpop.f32.mrb[46].mxu0  ;;  %v6528_v6 = vpop.f32.mrb[46].mxu1 }
 0x166   : > { %7220 = vst [vmem:[#allocation15_spill] sm:$0xff] %v6528_v6  ;;  %v4435_v45 = vpack.c.bf16 %v3042_v11, %v3042_v11  ;;  %v3043_v37 = vadd.f32 %v6055_v47, %v978_v62  ;;  %v6531_v15 = vpop.f32.mrb[47].mxu0  ;;  %v6533_v56 = vpop.f32.mrb[47].mxu1 }
 0x168   : > { %3458 = vst [vmem:[%s6117_s11 + $0x160] sm:$0xf] %v4435_v45  ;;  %v4436_v35 = vpack.c.bf16 %v3043_v37, %v3043_v37 }
 0x16a   : > { %3459 = vst [vmem:[%s6117_s11 + $0x168] sm:$0xf] %v4436_v35 }
 0x16b   : > { %v6537_v4 = vpop.f32.mrb[48].mxu1  ;;  %v1797_v59 = vpop.f32.mrb[48].mxu0 }
 0x16c   : > { %7221 = vst [vmem:[#allocation25_spill] sm:$0xff] %v6537_v4  ;;  %v3052_v36 = vadd.f32 %v1797_v59, %v6093_v24  ;;  %v6540_v39 = vpop.f32.mrb[49].mxu1  ;;  %v1799_v6 = vpop.f32.mrb[49].mxu0 }
 0x16d   : > { %v6543_v11 = vadd.f32 %v1799_v6, %v6333_v52  ;;  %v6545_v62 = vpop.f32.mrb[50].mxu1  ;;  %v1801_v63 = vpop.f32.mrb[50].mxu0 }
 0x16e   : > { %7222 = vst [vmem:[#allocation22_spill] sm:$0xff] %v6545_v62  ;;  %v3084_v45 = vadd.f32 %v6055_v47, %v3052_v36  ;;  %v3053_v37 = vadd.f32 %v1801_v63, %v6106_v16  ;;  %v6549_v35 = vpop.f32.mrb[51].mxu1  ;;  %v1803_v4 = vpop.f32.mrb[51].mxu0 }
 0x16f   : > { %v6552_v53 = vadd.f32 %v1803_v4, %v6350_v32 }
 0x170   : > { %v4445_v24 = vpack.c.bf16 %v3084_v45, %v3084_v45  ;;  %v3085_v59 = vadd.f32 %v6055_v47, %v3053_v37 }
 0x172   : > { %3596 = vst [vmem:[%s6117_s11 + $0x4] sm:$0xf] %v4445_v24  ;;  %v4446_v61 = vpack.c.bf16 %v3085_v59, %v3085_v59 }
 0x173   : > { %v6556_v52 = vpop.f32.mrb[52].mxu1  ;;  %v1807_v6 = vpop.f32.mrb[52].mxu0 }
 0x174   : > { %7223 = vst [vmem:[#allocation7_spill] sm:$0xff] %v6556_v52  ;;  %3597 = vst [vmem:[%s6117_s11 + $0xc] sm:$0xf] %v4446_v61  ;;  %v3054_v36 = vadd.f32 %v1807_v6, %v6153_v43  ;;  %v6560_v62 = vpop.f32.mrb[53].mxu1  ;;  %v1809_v16 = vpop.f32.mrb[53].mxu0 }
 0x175   : > { %v6563_v63 = vadd.f32 %v1809_v16, %v6381_v12  ;;  %v6565_v32 = vpop.f32.mrb[54].mxu1  ;;  %v1811_v4 = vpop.f32.mrb[54].mxu0 }
 0x176   : > { %7224 = vst [vmem:[#allocation10_spill] sm:$0xff] %v6565_v32  ;;  %v3086_v45 = vadd.f32 %v6055_v47, %v3054_v36  ;;  %v3055_v37 = vadd.f32 %v1811_v4, %v6171_v40  ;;  %v6569_v24 = vpop.f32.mrb[55].mxu1  ;;  %v1813_v59 = vpop.f32.mrb[55].mxu0 }
 0x177   : > { %v6572_v61 = vadd.f32 %v1813_v59, %v6393_v22 }
 0x178   : > { %v4447_v43 = vpack.c.bf16 %v3086_v45, %v3086_v45  ;;  %v3087_v6 = vadd.f32 %v6055_v47, %v3055_v37 }
 0x17a   : > { %3598 = vst [vmem:[%s6117_s11 + $0x24] sm:$0xf] %v4447_v43  ;;  %v4448_v52 = vpack.c.bf16 %v3087_v6, %v3087_v6 }
 0x17b   : > { %v6576_v12 = vpop.f32.mrb[56].mxu1  ;;  %v1817_v16 = vpop.f32.mrb[56].mxu0 }
 0x17c   : > { %7225 = vst [vmem:[#allocation13_spill] sm:$0xff] %v6576_v12  ;;  %3599 = vst [vmem:[%s6117_s11 + $0x2c] sm:$0xf] %v4448_v52  ;;  %v3056_v36 = vadd.f32 %v1817_v16, %v6214_v5  ;;  %v6580_v32 = vpop.f32.mrb[57].mxu1  ;;  %v1819_v40 = vpop.f32.mrb[57].mxu0 }
 0x17d   : > { %v6583_v4 = vadd.f32 %v1819_v40, %v6426_v60  ;;  %v6585_v22 = vpop.f32.mrb[58].mxu1  ;;  %v1821_v45 = vpop.f32.mrb[58].mxu0 }
 0x17e   : > { %7226 = vst [vmem:[#allocation16_spill] sm:$0xff] %v6585_v22  ;;  %v3088_v37 = vadd.f32 %v6055_v47, %v3056_v36  ;;  %v3057_v59 = vadd.f32 %v1821_v45, %v6232_v51  ;;  %v6589_v43 = vpop.f32.mrb[59].mxu1  ;;  %v1823_v6 = vpop.f32.mrb[59].mxu0 }
 0x17f   : > { %v6592_v52 = vadd.f32 %v1823_v6, %v6433_v21 }
 0x180   : > { %v4449_v5 = vpack.c.bf16 %v3088_v37, %v3088_v37  ;;  %v3089_v16 = vadd.f32 %v6055_v47, %v3057_v59 }
 0x182   : > { %3600 = vst [vmem:[%s6117_s11 + $0x44] sm:$0xf] %v4449_v5  ;;  %v4450_v12 = vpack.c.bf16 %v3089_v16, %v3089_v16 }
 0x183   : > { %v6596_v60 = vpop.f32.mrb[60].mxu1  ;;  %v1827_v40 = vpop.f32.mrb[60].mxu0 }
 0x184   : > { %7227 = vst [vmem:[#allocation26_spill] sm:$0xff] %v6596_v60  ;;  %3601 = vst [vmem:[%s6117_s11 + $0x4c] sm:$0xf] %v4450_v12  ;;  %v3058_v36 = vadd.f32 %v1827_v40, %v6276_v19  ;;  %v6600_v22 = vpop.f32.mrb[61].mxu1  ;;  %v1829_v51 = vpop.f32.mrb[61].mxu0 }
 0x185   : > { %v6603_v45 = vadd.f32 %v1829_v51, %v6453_v38  ;;  %v6605_v21 = vpop.f32.mrb[62].mxu1  ;;  %v1831_v37 = vpop.f32.mrb[62].mxu0 }
 0x186   : > { %7228 = vst [vmem:[#allocation27_spill] sm:$0xff] %v6605_v21  ;;  %v3090_v59 = vadd.f32 %v6055_v47, %v3058_v36  ;;  %v3059_v6 = vadd.f32 %v1831_v37, %v6286_v2  ;;  %v6609_v5 = vpop.f32.mrb[63].mxu1  ;;  %v1833_v16 = vpop.f32.mrb[63].mxu0 }
 0x187   : > { %v6612_v12 = vadd.f32 %v1833_v16, %v6462_v49 }
 0x188   : > { %v4451_v19 = vpack.c.bf16 %v3090_v59, %v3090_v59  ;;  %v3091_v40 = vadd.f32 %v6055_v47, %v3059_v6  ;;  %v6630_v47 = vld [vmem:[%s7122_s3] ss:$0 sm:$0xff] }
 0x18a   : > { %3602 = vst [vmem:[%s6117_s11 + $0x64] sm:$0xf] %v4451_v19  ;;  %v4452_v60 = vpack.c.bf16 %v3091_v40, %v3091_v40 }
 0x18b   : > { %v6616_v38 = vpop.f32.mrb[64].mxu1  ;;  %v1837_v51 = vpop.f32.mrb[64].mxu0 }
 0x18c   : > { %7229 = vst [vmem:[#allocation28_spill] sm:$0xff] %v6616_v38  ;;  %3603 = vst [vmem:[%s6117_s11 + $0x6c] sm:$0xf] %v4452_v60  ;;  %v3060_v36 = vadd.f32 %v1837_v51, %v6331_v54  ;;  %v6620_v21 = vpop.f32.mrb[65].mxu1  ;;  %v1839_v2 = vpop.f32.mrb[65].mxu0 }
 0x18d   : > { %v6623_v37 = vadd.f32 %v1839_v2, %v6476_v7  ;;  %v6625_v49 = vpop.f32.mrb[66].mxu1  ;;  %v1841_v59 = vpop.f32.mrb[66].mxu0 }
 0x18e   : > { %7230 = vst [vmem:[#allocation29_spill] sm:$0xff] %v6625_v49  ;;  %v3092_v6 = vadd.f32 %v6630_v47, %v3060_v36  ;;  %v3061_v60 = vadd.f32 %v1841_v59, %v6348_v18  ;;  %v6634_v54 = vpop.f32.mrb[67].mxu1  ;;  %v1843_v16 = vpop.f32.mrb[67].mxu0 }
 0x18f   : > { %v6637_v19 = vadd.f32 %v1843_v16, %v6485_v58 }
 0x190   : > { %v4453_v7 = vpack.c.bf16 %v3092_v6, %v3092_v6  ;;  %v3093_v40 = vadd.f32 %v6630_v47, %v3061_v60 }
 0x192   : > { %3604 = vst [vmem:[%s6117_s11 + $0x84] sm:$0xf] %v4453_v7  ;;  %v4454_v51 = vpack.c.bf16 %v3093_v40, %v3093_v40 }
 0x193   : > { %v6641_v2 = vpop.f32.mrb[68].mxu1  ;;  %v1847_v49 = vpop.f32.mrb[68].mxu0 }
 0x194   : > { %7231 = vst [vmem:[#allocation30_spill] sm:$0xff] %v6641_v2  ;;  %3605 = vst [vmem:[%s6117_s11 + $0x8c] sm:$0xf] %v4454_v51  ;;  %v3062_v36 = vadd.f32 %v1847_v49, %v6379_v26  ;;  %v6645_v38 = vpop.f32.mrb[69].mxu1  ;;  %v1849_v18 = vpop.f32.mrb[69].mxu0 }
 0x195   : > { %v6648_v59 = vadd.f32 %v1849_v18, %v6494_v13  ;;  %v6650_v58 = vpop.f32.mrb[70].mxu1  ;;  %v1851_v6 = vpop.f32.mrb[70].mxu0 }
 0x196   : > { %7232 = vst [vmem:[#allocation31_spill] sm:$0xff] %v6650_v58  ;;  %v3094_v60 = vadd.f32 %v6630_v47, %v3062_v36  ;;  %v3063_v16 = vadd.f32 %v1851_v6, %v6391_v28  ;;  %v6654_v7 = vpop.f32.mrb[71].mxu1  ;;  %v1853_v40 = vpop.f32.mrb[71].mxu0 }
 0x197   : > { %v6657_v51 = vadd.f32 %v1853_v40, %v6501_v0 }
 0x198   : > { %v4455_v26 = vpack.c.bf16 %v3094_v60, %v3094_v60  ;;  %v3095_v49 = vadd.f32 %v6630_v47, %v3063_v16 }
 0x19a   : > { %3606 = vst [vmem:[%s6117_s11 + $0xa4] sm:$0xf] %v4455_v26  ;;  %v4456_v2 = vpack.c.bf16 %v3095_v49, %v3095_v49 }
 0x19b   : > { %v6661_v13 = vpop.f32.mrb[72].mxu1  ;;  %v1857_v18 = vpop.f32.mrb[72].mxu0 }
 0x19c   : > { %7233 = vst [vmem:[#allocation32_spill] sm:$0xff] %v6661_v13  ;;  %3607 = vst [vmem:[%s6117_s11 + $0xac] sm:$0xf] %v4456_v2  ;;  %v3064_v36 = vadd.f32 %v1857_v18, %v6424_v41  ;;  %v6665_v58 = vpop.f32.mrb[73].mxu1  ;;  %v1859_v28 = vpop.f32.mrb[73].mxu0 }
 0x19d   : > { %v6668_v6 = vadd.f32 %v1859_v28, %v6510_v48  ;;  %v6670_v0 = vpop.f32.mrb[74].mxu1  ;;  %v1861_v60 = vpop.f32.mrb[74].mxu0 }
 0x19e   : > { %7234 = vst [vmem:[#allocation33_spill] sm:$0xff] %v6670_v0  ;;  %v3096_v16 = vadd.f32 %v6630_v47, %v3064_v36  ;;  %v3065_v40 = vadd.f32 %v1861_v60, %v6431_v42  ;;  %v6674_v26 = vpop.f32.mrb[75].mxu1  ;;  %v1863_v49 = vpop.f32.mrb[75].mxu0 }
 0x19f   : > { %v6677_v2 = vadd.f32 %v1863_v49, %v6517_v34 }
 0x1a0   : > { %v4457_v41 = vpack.c.bf16 %v3096_v16, %v3096_v16  ;;  %v3097_v18 = vadd.f32 %v6630_v47, %v3065_v40 }
 0x1a2   : > { %3608 = vst [vmem:[%s6117_s11 + $0xc4] sm:$0xf] %v4457_v41  ;;  %v4458_v13 = vpack.c.bf16 %v3097_v18, %v3097_v18 }
 0x1a3   : > { %v6681_v48 = vpop.f32.mrb[76].mxu1  ;;  %v1867_v28 = vpop.f32.mrb[76].mxu0 }
 0x1a4   : > { %7235 = vst [vmem:[#allocation34_spill] sm:$0xff] %v6681_v48  ;;  %3609 = vst [vmem:[%s6117_s11 + $0xcc] sm:$0xf] %v4458_v13  ;;  %v3066_v36 = vadd.f32 %v1867_v28, %v6451_v46  ;;  %v6685_v0 = vpop.f32.mrb[77].mxu1  ;;  %v1869_v42 = vpop.f32.mrb[77].mxu0 }
 0x1a5   : > { %v6688_v60 = vadd.f32 %v1869_v42, %v6526_v27  ;;  %v6690_v34 = vpop.f32.mrb[78].mxu1  ;;  %v1871_v16 = vpop.f32.mrb[78].mxu0 }
 0x1a6   : > { %7237 = vst [vmem:[#allocation36_spill] sm:$0xff] %v6690_v34  ;;  %v3098_v40 = vadd.f32 %v6630_v47, %v3066_v36  ;;  %v3067_v49 = vadd.f32 %v1871_v16, %v6460_v14  ;;  %v6694_v41 = vpop.f32.mrb[79].mxu1  ;;  %v1873_v18 = vpop.f32.mrb[79].mxu0 }
 0x1a7   : > { %7236 = vst [vmem:[#allocation35_spill] sm:$0xff] %v6688_v60  ;;  %v6697_v13 = vadd.f32 %v1873_v18, %v6533_v56 }
 0x1a8   : > { %v4459_v46 = vpack.c.bf16 %v3098_v40, %v3098_v40  ;;  %v3099_v28 = vadd.f32 %v6630_v47, %v3067_v49 }
 0x1aa   : > { %3610 = vst [vmem:[%s6117_s11 + $0xe4] sm:$0xf] %v4459_v46  ;;  %v4460_v48 = vpack.c.bf16 %v3099_v28, %v3099_v28 }
 0x1ab   : > { %v1877_v27 = vpop.f32.mrb[80].mxu0  ;;  %v2182_v42 = vpop.f32.mrb[80].mxu1 }
 0x1ac   : > { %3611 = vst [vmem:[%s6117_s11 + $0xec] sm:$0xf] %v4460_v48  ;;  %v3068_v34 = vadd.f32 %v1877_v27, %v6474_v57  ;;  %v3116_v36 = vadd.f32 %v2182_v42, %v6324_v25  ;;  %v1879_v60 = vpop.f32.mrb[81].mxu0  ;;  %v2184_v14 = vpop.f32.mrb[81].mxu1 }
 0x1ad   : > { %v6705_v16 = vadd.f32 %v1879_v60, %v6540_v39  ;;  %v6708_v56 = vadd.f32 %v6543_v11, %v2184_v14  ;;  %v1881_v40 = vpop.f32.mrb[82].mxu0  ;;  %v2186_v49 = vpop.f32.mrb[82].mxu1 }
 0x1ae   : > { %v3100_v18 = vadd.f32 %v6630_v47, %v3068_v34  ;;  %v3148_v48 = vadd.f32 %v6630_v47, %v3116_v36  ;;  %v3069_v57 = vadd.f32 %v1881_v40, %v6483_v29  ;;  %v3117_v25 = vadd.f32 %v2186_v49, %v6336_v30  ;;  %v1883_v46 = vpop.f32.mrb[83].mxu0  ;;  %v2188_v39 = vpop.f32.mrb[83].mxu1 }
 0x1af   : > { %v6715_v60 = vadd.f32 %v1883_v46, %v6549_v35  ;;  %v6718_v11 = vadd.f32 %v6552_v53, %v2188_v39 }
 0x1b0   : > { %v4461_v28 = vpack.c.bf16 %v3100_v18, %v3100_v18  ;;  %v4477_v27 = vpack.c.bf16 %v3148_v48, %v3148_v48  ;;  %v3101_v34 = vadd.f32 %v6630_v47, %v3069_v57  ;;  %v3149_v42 = vadd.f32 %v6630_v47, %v3117_v25 }
 0x1b2   : > { %3612 = vst [vmem:[%s6117_s11 + $0x104] sm:$0xf] %v4461_v28  ;;  %4310 = vst [vmem:[%s6117_s11 + $0x10] sm:$0xf] %v4477_v27  ;;  %v4462_v29 = vpack.c.bf16 %v3101_v34, %v3101_v34  ;;  %v4478_v36 = vpack.c.bf16 %v3149_v42, %v3149_v42 }
 0x1b3   : > { %v1887_v30 = vpop.f32.mrb[84].mxu0  ;;  %v2192_v14 = vpop.f32.mrb[84].mxu1 }
 0x1b4   : > { %3613 = vst [vmem:[%s6117_s11 + $0x10c] sm:$0xf] %v4462_v29  ;;  %4311 = vst [vmem:[%s6117_s11 + $0x18] sm:$0xf] %v4478_v36  ;;  %v3070_v35 = vadd.f32 %v1887_v30, %v6492_v1  ;;  %v3118_v40 = vadd.f32 %v2192_v14, %v6376_v20  ;;  %v1889_v53 = vpop.f32.mrb[85].mxu0  ;;  %v2194_v49 = vpop.f32.mrb[85].mxu1 }
 0x1b5   : > { %v6729_v18 = vadd.f32 %v1889_v53, %v6560_v62  ;;  %v6732_v48 = vadd.f32 %v6563_v63, %v2194_v49  ;;  %v1891_v57 = vpop.f32.mrb[86].mxu0  ;;  %v2196_v25 = vpop.f32.mrb[86].mxu1 }
 0x1b6   : > { %v3102_v46 = vadd.f32 %v6630_v47, %v3070_v35  ;;  %v3150_v39 = vadd.f32 %v6630_v47, %v3118_v40  ;;  %v3071_v1 = vadd.f32 %v1891_v57, %v6499_v17  ;;  %v3119_v20 = vadd.f32 %v2196_v25, %v6383_v3  ;;  %v1893_v28 = vpop.f32.mrb[87].mxu0  ;;  %v2198_v62 = vpop.f32.mrb[87].mxu1 }
 0x1b7   : > { %v6739_v27 = vadd.f32 %v1893_v28, %v6569_v24  ;;  %v6742_v63 = vadd.f32 %v6572_v61, %v2198_v62 }
 0x1b8   : > { %v4463_v34 = vpack.c.bf16 %v3102_v46, %v3102_v46  ;;  %v4479_v42 = vpack.c.bf16 %v3150_v39, %v3150_v39  ;;  %v3103_v29 = vadd.f32 %v6630_v47, %v3071_v1  ;;  %v3151_v36 = vadd.f32 %v6630_v47, %v3119_v20 }
 0x1ba   : > { %3614 = vst [vmem:[%s6117_s11 + $0x124] sm:$0xf] %v4463_v34  ;;  %4312 = vst [vmem:[%s6117_s11 + $0x30] sm:$0xf] %v4479_v42  ;;  %v4464_v17 = vpack.c.bf16 %v3103_v29, %v3103_v29  ;;  %v4480_v30 = vpack.c.bf16 %v3151_v36, %v3151_v36 }
 0x1bb   : > { %v1897_v3 = vpop.f32.mrb[88].mxu0  ;;  %v2202_v14 = vpop.f32.mrb[88].mxu1 }
 0x1bc   : > { %3615 = vst [vmem:[%s6117_s11 + $0x12c] sm:$0xf] %v4464_v17  ;;  %4313 = vst [vmem:[%s6117_s11 + $0x38] sm:$0xf] %v4480_v30  ;;  %v3072_v24 = vadd.f32 %v1897_v3, %v6508_v23  ;;  %v3120_v35 = vadd.f32 %v2202_v14, %v6419_v10  ;;  %v1899_v61 = vpop.f32.mrb[89].mxu0  ;;  %v2204_v40 = vpop.f32.mrb[89].mxu1 }
 0x1bd   : > { %v6753_v53 = vadd.f32 %v1899_v61, %v6580_v32  ;;  %v6756_v49 = vadd.f32 %v6583_v4, %v2204_v40  ;;  %v1901_v57 = vpop.f32.mrb[90].mxu0  ;;  %v2206_v25 = vpop.f32.mrb[90].mxu1 }
 0x1be   : > { %v3104_v46 = vadd.f32 %v6630_v47, %v3072_v24  ;;  %v3152_v39 = vadd.f32 %v6630_v47, %v3120_v35  ;;  %v3073_v23 = vadd.f32 %v1901_v57, %v6515_v31  ;;  %v3121_v10 = vadd.f32 %v2206_v25, %v6428_v9  ;;  %v1903_v1 = vpop.f32.mrb[91].mxu0  ;;  %v2208_v32 = vpop.f32.mrb[91].mxu1 }
 0x1bf   : > { %v6763_v20 = vadd.f32 %v1903_v1, %v6589_v43  ;;  %v6766_v4 = vadd.f32 %v6592_v52, %v2208_v32 }
 0x1c0   : > { %v4465_v28 = vpack.c.bf16 %v3104_v46, %v3104_v46  ;;  %v4481_v62 = vpack.c.bf16 %v3152_v39, %v3152_v39  ;;  %v3105_v34 = vadd.f32 %v6630_v47, %v3073_v23  ;;  %v3153_v42 = vadd.f32 %v6630_v47, %v3121_v10 }
 0x1c2   : > { %3616 = vst [vmem:[%s6117_s11 + $0x144] sm:$0xf] %v4465_v28  ;;  %4314 = vst [vmem:[%s6117_s11 + $0x50] sm:$0xf] %v4481_v62  ;;  %v4466_v31 = vpack.c.bf16 %v3105_v34, %v3105_v34  ;;  %v4482_v29 = vpack.c.bf16 %v3153_v42, %v3153_v42 }
 0x1c3   : > { %v1907_v9 = vpop.f32.mrb[92].mxu0  ;;  %v2212_v36 = vpop.f32.mrb[92].mxu1 }
 0x1c4   : > { %3617 = vst [vmem:[%s6117_s11 + $0x14c] sm:$0xf] %v4466_v31  ;;  %4315 = vst [vmem:[%s6117_s11 + $0x58] sm:$0xf] %v4482_v29  ;;  %v3074_v43 = vadd.f32 %v1907_v9, %v6524_v50  ;;  %v3122_v17 = vadd.f32 %v2212_v36, %v6448_v44  ;;  %v1909_v52 = vpop.f32.mrb[93].mxu0  ;;  %v2214_v30 = vpop.f32.mrb[93].mxu1 }
 0x1c5   : > { %v6777_v3 = vadd.f32 %v1909_v52, %v6600_v22  ;;  %v6780_v14 = vadd.f32 %v6603_v45, %v2214_v30  ;;  %v1911_v24 = vpop.f32.mrb[94].mxu0  ;;  %v2216_v35 = vpop.f32.mrb[94].mxu1 }
 0x1c6   : > { %v3106_v61 = vadd.f32 %v6630_v47, %v3074_v43  ;;  %v3154_v40 = vadd.f32 %v6630_v47, %v3122_v17  ;;  %v3075_v50 = vadd.f32 %v1911_v24, %v6531_v15  ;;  %v3123_v44 = vadd.f32 %v2216_v35, %v6457_v55  ;;  %v1913_v57 = vpop.f32.mrb[95].mxu0  ;;  %v2218_v22 = vpop.f32.mrb[95].mxu1  ;;  %v7238_v43 = vld [vmem:[#allocation6_spill] sm:$0xff]  ;;  %v7239_v17 = vld [vmem:[#allocation9_spill] sm:$0xff] }
 0x1c7   : > { %v6787_v25 = vadd.f32 %v1913_v57, %v6609_v5  ;;  %v6790_v45 = vadd.f32 %v6612_v12, %v2218_v22 }
 0x1c8   : > { %v4467_v46 = vpack.c.bf16 %v3106_v61, %v3106_v61  ;;  %v4483_v39 = vpack.c.bf16 %v3154_v40, %v3154_v40  ;;  %v3107_v23 = vadd.f32 %v6630_v47, %v3075_v50  ;;  %v3155_v10 = vadd.f32 %v6630_v47, %v3123_v44 }
 0x1ca   : > { %3618 = vst [vmem:[%s6117_s11 + $0x164] sm:$0xf] %v4467_v46  ;;  %4316 = vst [vmem:[%s6117_s11 + $0x70] sm:$0xf] %v4483_v39  ;;  %v4468_v15 = vpack.c.bf16 %v3107_v23, %v3107_v23  ;;  %v4484_v1 = vpack.c.bf16 %v3155_v10, %v3155_v10  ;;  %v7240_v46 = vld [vmem:[#allocation24_spill] sm:$0xff]  ;;  %v7241_v39 = vld [vmem:[#allocation11_spill] sm:$0xff] }
 0x1cb   : > { %v1917_v55 = vpop.f32.mrb[96].mxu0  ;;  %v2222_v32 = vpop.f32.mrb[96].mxu1 }
 0x1cc   : > { %3619 = vst [vmem:[%s6117_s11 + $0x16c] sm:$0xf] %v4468_v15  ;;  %4317 = vst [vmem:[%s6117_s11 + $0x78] sm:$0xf] %v4484_v1  ;;  %v3076_v5 = vadd.f32 %v1917_v55, %v6095_v8  ;;  %v3124_v28 = vadd.f32 %v2222_v32, %v6471_v33  ;;  %v1919_v12 = vpop.f32.mrb[97].mxu0  ;;  %v2224_v62 = vpop.f32.mrb[97].mxu1 }
 0x1cd   : > { %v6801_v34 = vadd.f32 %v1919_v12, %v6620_v21  ;;  %v6804_v42 = vadd.f32 %v6623_v37, %v2224_v62  ;;  %v1921_v31 = vpop.f32.mrb[98].mxu0  ;;  %v2226_v29 = vpop.f32.mrb[98].mxu1  ;;  %v7242_v12 = vld [vmem:[#allocation23_spill] sm:$0xff] }
 0x1ce   : > { %v3108_v9 = vadd.f32 %v6630_v47, %v3076_v5  ;;  %v3156_v36 = vadd.f32 %v6630_v47, %v3124_v28  ;;  %v3077_v8 = vadd.f32 %v1921_v31, %v7238_v43  ;;  %v3125_v33 = vadd.f32 %v2226_v29, %v7239_v17  ;;  %v1923_v52 = vpop.f32.mrb[99].mxu0  ;;  %v2228_v21 = vpop.f32.mrb[99].mxu1  ;;  %v7243_v31 = vld [vmem:[#allocation20_spill] sm:$0xff] }
 0x1cf   : > { %v6811_v30 = vadd.f32 %v1923_v52, %v6634_v54  ;;  %v6814_v37 = vadd.f32 %v6637_v19, %v2228_v21 }
 0x1d0   : > { %v4469_v24 = vpack.c.bf16 %v3108_v9, %v3108_v9  ;;  %v4485_v35 = vpack.c.bf16 %v3156_v36, %v3156_v36  ;;  %v3109_v61 = vadd.f32 %v6630_v47, %v3077_v8  ;;  %v3157_v40 = vadd.f32 %v6630_v47, %v3125_v33 }
 0x1d2   : > { %3620 = vst [vmem:[%s6117_s11 + $0x184] sm:$0xf] %v4469_v24  ;;  %4318 = vst [vmem:[%s6117_s11 + $0x90] sm:$0xf] %v4485_v35  ;;  %v4470_v50 = vpack.c.bf16 %v3109_v61, %v3109_v61  ;;  %v4486_v44 = vpack.c.bf16 %v3157_v40, %v3157_v40  ;;  %v7244_v61 = vld [vmem:[#allocation17_spill] sm:$0xff]  ;;  %v7245_v40 = vld [vmem:[#allocation12_spill] sm:$0xff] }
 0x1d3   : > { %v1927_v57 = vpop.f32.mrb[100].mxu0  ;;  %v2232_v22 = vpop.f32.mrb[100].mxu1 }
 0x1d4   : > { %3621 = vst [vmem:[%s6117_s11 + $0x18c] sm:$0xf] %v4470_v50  ;;  %4319 = vst [vmem:[%s6117_s11 + $0x98] sm:$0xf] %v4486_v44  ;;  %v3078_v54 = vadd.f32 %v1927_v57, %v7240_v46  ;;  %v3126_v23 = vadd.f32 %v2232_v22, %v7241_v39  ;;  %v1929_v19 = vpop.f32.mrb[101].mxu0  ;;  %v2234_v10 = vpop.f32.mrb[101].mxu1 }
 0x1d5   : > { %v6825_v15 = vadd.f32 %v1929_v19, %v6645_v38  ;;  %v6828_v1 = vadd.f32 %v6648_v59, %v2234_v10  ;;  %v1931_v55 = vpop.f32.mrb[102].mxu0  ;;  %v2236_v32 = vpop.f32.mrb[102].mxu1  ;;  %v7246_v19 = vld [vmem:[#allocation8_spill] sm:$0xff] }
 0x1d6   : > { %v3110_v5 = vadd.f32 %v6630_v47, %v3078_v54  ;;  %v3158_v28 = vadd.f32 %v6630_v47, %v3126_v23  ;;  %v3079_v62 = vadd.f32 %v1931_v55, %v7242_v12  ;;  %v3127_v29 = vadd.f32 %v2236_v32, %v7243_v31  ;;  %v1933_v9 = vpop.f32.mrb[103].mxu0  ;;  %v2238_v38 = vpop.f32.mrb[103].mxu1  ;;  %v7247_v55 = vld [vmem:[#allocation14_spill] sm:$0xff] }
 0x1d7   : > { %v6835_v36 = vadd.f32 %v1933_v9, %v6654_v7  ;;  %v6838_v59 = vadd.f32 %v6657_v51, %v2238_v38 }
 0x1d8   : > { %v4471_v43 = vpack.c.bf16 %v3110_v5, %v3110_v5  ;;  %v4487_v8 = vpack.c.bf16 %v3158_v28, %v3158_v28  ;;  %v3111_v17 = vadd.f32 %v6630_v47, %v3079_v62  ;;  %v3159_v33 = vadd.f32 %v6630_v47, %v3127_v29 }
 0x1da   : > { %3622 = vst [vmem:[%s6117_s11 + $0x1a4] sm:$0xf] %v4471_v43  ;;  %4320 = vst [vmem:[%s6117_s11 + $0xb0] sm:$0xf] %v4487_v8  ;;  %v4472_v52 = vpack.c.bf16 %v3111_v17, %v3111_v17  ;;  %v4488_v21 = vpack.c.bf16 %v3159_v33, %v3159_v33  ;;  %v7248_v17 = vld [vmem:[#allocation19_spill] sm:$0xff]  ;;  %v7249_v33 = vld [vmem:[#allocation21_spill] sm:$0xff] }
 0x1db   : > { %v1937_v24 = vpop.f32.mrb[104].mxu0  ;;  %v2242_v35 = vpop.f32.mrb[104].mxu1 }
 0x1dc   : > { %3623 = vst [vmem:[%s6117_s11 + $0x1ac] sm:$0xf] %v4472_v52  ;;  %4321 = vst [vmem:[%s6117_s11 + $0xb8] sm:$0xf] %v4488_v21  ;;  %v3080_v7 = vadd.f32 %v1937_v24, %v7244_v61  ;;  %v3128_v50 = vadd.f32 %v2242_v35, %v7245_v40  ;;  %v1939_v51 = vpop.f32.mrb[105].mxu0  ;;  %v2244_v44 = vpop.f32.mrb[105].mxu1 }
 0x1dd   : > { %v6849_v57 = vadd.f32 %v1939_v51, %v6665_v58  ;;  %v6852_v22 = vadd.f32 %v6668_v6, %v2244_v44  ;;  %v1941_v46 = vpop.f32.mrb[106].mxu0  ;;  %v2246_v54 = vpop.f32.mrb[106].mxu1  ;;  %v7250_v35 = vld [vmem:[#allocation35_spill] sm:$0xff]  ;;  %v7251_v44 = vld [vmem:[#allocation18_spill] sm:$0xff] }
 0x1de   : > { %v3112_v39 = vadd.f32 %v6630_v47, %v3080_v7  ;;  %v3160_v23 = vadd.f32 %v6630_v47, %v3128_v50  ;;  %v3081_v10 = vadd.f32 %v1941_v46, %v7246_v19  ;;  %v3129_v32 = vadd.f32 %v2246_v54, %v7247_v55  ;;  %v1943_v5 = vpop.f32.mrb[107].mxu0  ;;  %v2248_v58 = vpop.f32.mrb[107].mxu1  ;;  %v7252_v54 = vld [vmem:[#allocation15_spill] sm:$0xff] }
 0x1df   : > { %v6859_v28 = vadd.f32 %v1943_v5, %v6674_v26  ;;  %v6862_v6 = vadd.f32 %v6677_v2, %v2248_v58 }
 0x1e0   : > { %v4473_v12 = vpack.c.bf16 %v3112_v39, %v3112_v39  ;;  %v4489_v62 = vpack.c.bf16 %v3160_v23, %v3160_v23  ;;  %v3113_v31 = vadd.f32 %v6630_v47, %v3081_v10  ;;  %v3161_v29 = vadd.f32 %v6630_v47, %v3129_v32 }
 0x1e2   : > { %3624 = vst [vmem:[%s6117_s11 + $0x1c4] sm:$0xf] %v4473_v12  ;;  %4322 = vst [vmem:[%s6117_s11 + $0xd0] sm:$0xf] %v4489_v62  ;;  %v4474_v9 = vpack.c.bf16 %v3113_v31, %v3113_v31  ;;  %v4490_v38 = vpack.c.bf16 %v3161_v29, %v3161_v29 }
 0x1e3   : > { %v1947_v43 = vpop.f32.mrb[108].mxu0  ;;  %v2252_v8 = vpop.f32.mrb[108].mxu1 }
 0x1e4   : > { %3625 = vst [vmem:[%s6117_s11 + $0x1cc] sm:$0xf] %v4474_v9  ;;  %4323 = vst [vmem:[%s6117_s11 + $0xd8] sm:$0xf] %v4490_v38  ;;  %v3082_v26 = vadd.f32 %v1947_v43, %v7248_v17  ;;  %v3130_v52 = vadd.f32 %v2252_v8, %v7249_v33  ;;  %v1949_v2 = vpop.f32.mrb[109].mxu0  ;;  %v2254_v21 = vpop.f32.mrb[109].mxu1 }
 0x1e5   : > { %v6873_v24 = vadd.f32 %v1949_v2, %v6685_v0  ;;  %v6876_v61 = vadd.f32 %v7250_v35, %v2254_v21  ;;  %v1951_v7 = vpop.f32.mrb[110].mxu0  ;;  %v2256_v40 = vpop.f32.mrb[110].mxu1  ;;  %v7253_v9 = vld [vmem:[#allocation25_spill] sm:$0xff]  ;;  %v7254_v21 = vld [vmem:[#allocation22_spill] sm:$0xff] }
 0x1e6   : > { %v3114_v50 = vadd.f32 %v6630_v47, %v3082_v26  ;;  %v3162_v51 = vadd.f32 %v6630_v47, %v3130_v52  ;;  %v3083_v46 = vadd.f32 %v1951_v7, %v7251_v44  ;;  %v3131_v39 = vadd.f32 %v2256_v40, %v7252_v54  ;;  %v1953_v23 = vpop.f32.mrb[111].mxu0  ;;  %v2258_v0 = vpop.f32.mrb[111].mxu1 }
 0x1e7   : > { %v6883_v19 = vadd.f32 %v1953_v23, %v6694_v41  ;;  %v6886_v10 = vadd.f32 %v6697_v13, %v2258_v0 }
 0x1e8   : > { %v4475_v55 = vpack.c.bf16 %v3114_v50, %v3114_v50  ;;  %v4491_v32 = vpack.c.bf16 %v3162_v51, %v3162_v51  ;;  %v3115_v5 = vadd.f32 %v6630_v47, %v3083_v46  ;;  %v3163_v58 = vadd.f32 %v6630_v47, %v3131_v39 }
 0x1ea   : > { %3626 = vst [vmem:[%s6117_s11 + $0x1e4] sm:$0xf] %v4475_v55  ;;  %4324 = vst [vmem:[%s6117_s11 + $0xf0] sm:$0xf] %v4491_v32  ;;  %v4476_v12 = vpack.c.bf16 %v3115_v5, %v3115_v5  ;;  %v4492_v62 = vpack.c.bf16 %v3163_v58, %v3163_v58 }
 0x1eb   : > { %v2262_v31 = vpop.f32.mrb[112].mxu1  ;;  %v4584_v29 = vpop.f32.mrb[112].mxu0 }
 0x1ec   : > { %3627 = vst [vmem:[%s6117_s11 + $0x1ec] sm:$0xf] %v4476_v12  ;;  %4325 = vst [vmem:[%s6117_s11 + $0xf8] sm:$0xf] %v4492_v62  ;;  %v3132_v41 = vadd.f32 %v2262_v31, %v7253_v9  ;;  %v3246_v38 = vadd.f32 %v4584_v29, %v6732_v48  ;;  %v2264_v13 = vpop.f32.mrb[113].mxu1  ;;  %v2887_v43 = vpop.f32.mrb[113].mxu0 }
 0x1ed   : > { %v6897_v8 = vadd.f32 %v6705_v16, %v2264_v13  ;;  %v3244_v17 = vadd.f32 %v6708_v56, %v2887_v43  ;;  %v2266_v26 = vpop.f32.mrb[114].mxu1  ;;  %v4585_v33 = vpop.f32.mrb[114].mxu0  ;;  %v7256_v43 = vld [vmem:[#allocation10_spill] sm:$0xff] }
 0x1ee   : > { %v3164_v52 = vadd.f32 %v6630_v47, %v3132_v41  ;;  %v3278_v2 = vadd.f32 %v6630_v47, %v3246_v38  ;;  %v3133_v35 = vadd.f32 %v2266_v26, %v7254_v21  ;;  %v3247_v7 = vadd.f32 %v4585_v33, %v6742_v63  ;;  %v2268_v48 = vpop.f32.mrb[115].mxu1  ;;  %v2890_v40 = vpop.f32.mrb[115].mxu0 }
 0x1ef   : > { %v3276_v16 = vadd.f32 %v6630_v47, %v3244_v17  ;;  %v6906_v50 = vadd.f32 %v6715_v60, %v2268_v48  ;;  %v3245_v56 = vadd.f32 %v6718_v11, %v2890_v40  ;;  %v7255_v11 = vld [vmem:[#allocation7_spill] sm:$0xff] }
 0x1f0   : > { %v4493_v51 = vpack.c.bf16 %v3164_v52, %v3164_v52  ;;  %v4511_v44 = vpack.c.bf16 %v3278_v2, %v3278_v2  ;;  %v3165_v46 = vadd.f32 %v6630_v47, %v3133_v35  ;;  %v3279_v54 = vadd.f32 %v6630_v47, %v3247_v7 }
 0x1f1   : > { %v4509_v39 = vpack.c.bf16 %v3276_v16, %v3276_v16  ;;  %v3277_v63 = vadd.f32 %v6630_v47, %v3245_v56 }
 0x1f2   : > { %4326 = vst [vmem:[%s6117_s11 + $0x110] sm:$0xf] %v4493_v51  ;;  %4376 = vst [vmem:[%s6117_s11 + $0x34] sm:$0xf] %v4511_v44  ;;  %v4494_v23 = vpack.c.bf16 %v3165_v46, %v3165_v46  ;;  %v4512_v0 = vpack.c.bf16 %v3279_v54, %v3279_v54 }
 0x1f3   : > { %4374 = vst [vmem:[%s6117_s11 + $0x14] sm:$0xf] %v4509_v39  ;;  %v4510_v60 = vpack.c.bf16 %v3277_v63, %v3277_v63  ;;  %v2272_v55 = vpop.f32.mrb[116].mxu1  ;;  %v4588_v32 = vpop.f32.mrb[116].mxu0 }
 0x1f4   : > { %4327 = vst [vmem:[%s6117_s11 + $0x118] sm:$0xf] %v4494_v23  ;;  %4377 = vst [vmem:[%s6117_s11 + $0x3c] sm:$0xf] %v4512_v0  ;;  %v3134_v5 = vadd.f32 %v2272_v55, %v7255_v11  ;;  %v3250_v58 = vadd.f32 %v4588_v32, %v6780_v14  ;;  %v2274_v12 = vpop.f32.mrb[117].mxu1  ;;  %v2903_v62 = vpop.f32.mrb[117].mxu0 }
 0x1f5   : > { %4375 = vst [vmem:[%s6117_s11 + $0x1c] sm:$0xf] %v4510_v60  ;;  %v6921_v31 = vadd.f32 %v6729_v18, %v2274_v12  ;;  %v3248_v29 = vadd.f32 %v6756_v49, %v2903_v62  ;;  %v2276_v9 = vpop.f32.mrb[118].mxu1  ;;  %v4589_v41 = vpop.f32.mrb[118].mxu0  ;;  %v7258_v11 = vld [vmem:[#allocation16_spill] sm:$0xff] }
 0x1f6   : > { %v3166_v38 = vadd.f32 %v6630_v47, %v3134_v5  ;;  %v3282_v13 = vadd.f32 %v6630_v47, %v3250_v58  ;;  %v3135_v17 = vadd.f32 %v2276_v9, %v7256_v43  ;;  %v3251_v14 = vadd.f32 %v4589_v41, %v6790_v45  ;;  %v2278_v26 = vpop.f32.mrb[119].mxu1  ;;  %v2906_v33 = vpop.f32.mrb[119].mxu0 }
 0x1f7   : > { %v3280_v18 = vadd.f32 %v6630_v47, %v3248_v29  ;;  %v6930_v52 = vadd.f32 %v6739_v27, %v2278_v26  ;;  %v3249_v49 = vadd.f32 %v6766_v4, %v2906_v33  ;;  %v7257_v4 = vld [vmem:[#allocation13_spill] sm:$0xff] }
 0x1f8   : > { %v4495_v2 = vpack.c.bf16 %v3166_v38, %v3166_v38  ;;  %v4515_v21 = vpack.c.bf16 %v3282_v13, %v3282_v13  ;;  %v3167_v35 = vadd.f32 %v6630_v47, %v3135_v17  ;;  %v3283_v7 = vadd.f32 %v6630_v47, %v3251_v14 }
 0x1f9   : > { %v4513_v48 = vpack.c.bf16 %v3280_v18, %v3280_v18  ;;  %v3281_v45 = vadd.f32 %v6630_v47, %v3249_v49 }
 0x1fa   : > { %4328 = vst [vmem:[%s6117_s11 + $0x130] sm:$0xf] %v4495_v2  ;;  %4380 = vst [vmem:[%s6117_s11 + $0x74] sm:$0xf] %v4515_v21  ;;  %v4496_v40 = vpack.c.bf16 %v3167_v35, %v3167_v35  ;;  %v4516_v16 = vpack.c.bf16 %v3283_v7, %v3283_v7 }
 0x1fb   : > { %4378 = vst [vmem:[%s6117_s11 + $0x54] sm:$0xf] %v4513_v48  ;;  %v4514_v27 = vpack.c.bf16 %v3281_v45, %v3281_v45  ;;  %v2282_v56 = vpop.f32.mrb[120].mxu1  ;;  %v4592_v51 = vpop.f32.mrb[120].mxu0 }
 0x1fc   : > { %4329 = vst [vmem:[%s6117_s11 + $0x138] sm:$0xf] %v4496_v40  ;;  %4381 = vst [vmem:[%s6117_s11 + $0x7c] sm:$0xf] %v4516_v16  ;;  %v3136_v44 = vadd.f32 %v2282_v56, %v7257_v4  ;;  %v3254_v46 = vadd.f32 %v4592_v51, %v6828_v1  ;;  %v2284_v54 = vpop.f32.mrb[121].mxu1  ;;  %v2919_v39 = vpop.f32.mrb[121].mxu0 }
 0x1fd   : > { %4379 = vst [vmem:[%s6117_s11 + $0x5c] sm:$0xf] %v4514_v27  ;;  %v6945_v63 = vadd.f32 %v6753_v53, %v2284_v54  ;;  %v3252_v23 = vadd.f32 %v6804_v42, %v2919_v39  ;;  %v2286_v0 = vpop.f32.mrb[122].mxu1  ;;  %v4593_v60 = vpop.f32.mrb[122].mxu0  ;;  %v7260_v16 = vld [vmem:[#allocation27_spill] sm:$0xff] }
 0x1fe   : > { %v3168_v55 = vadd.f32 %v6630_v47, %v3136_v44  ;;  %v3286_v32 = vadd.f32 %v6630_v47, %v3254_v46  ;;  %v3137_v5 = vadd.f32 %v2286_v0, %v7258_v11  ;;  %v3255_v1 = vadd.f32 %v4593_v60, %v6838_v59  ;;  %v2288_v58 = vpop.f32.mrb[123].mxu1  ;;  %v2922_v12 = vpop.f32.mrb[123].mxu0 }
 0x1ff   : > { %v3284_v53 = vadd.f32 %v6630_v47, %v3252_v23  ;;  %v6954_v62 = vadd.f32 %v6763_v20, %v2288_v58  ;;  %v3253_v42 = vadd.f32 %v6814_v37, %v2922_v12  ;;  %v7259_v37 = vld [vmem:[#allocation26_spill] sm:$0xff] }
 0x200   : > { %v4497_v29 = vpack.c.bf16 %v3168_v55, %v3168_v55  ;;  %v4519_v9 = vpack.c.bf16 %v3286_v32, %v3286_v32  ;;  %v3169_v41 = vadd.f32 %v6630_v47, %v3137_v5  ;;  %v3287_v38 = vadd.f32 %v6630_v47, %v3255_v1 }
 0x201   : > { %v4517_v13 = vpack.c.bf16 %v3284_v53, %v3284_v53  ;;  %v3285_v59 = vadd.f32 %v6630_v47, %v3253_v42 }
 0x202   : > { %4330 = vst [vmem:[%s6117_s11 + $0x150] sm:$0xf] %v4497_v29  ;;  %4384 = vst [vmem:[%s6117_s11 + $0xb4] sm:$0xf] %v4519_v9  ;;  %v4498_v43 = vpack.c.bf16 %v3169_v41, %v3169_v41  ;;  %v4520_v17 = vpack.c.bf16 %v3287_v38, %v3287_v38  ;;  %v7262_v38 = vld [vmem:[#allocation29_spill] sm:$0xff] }
 0x203   : > { %4382 = vst [vmem:[%s6117_s11 + $0x94] sm:$0xf] %v4517_v13  ;;  %v4518_v20 = vpack.c.bf16 %v3285_v59, %v3285_v59  ;;  %v2292_v14 = vpop.f32.mrb[124].mxu1  ;;  %v4596_v26 = vpop.f32.mrb[124].mxu0 }
 0x204   : > { %4331 = vst [vmem:[%s6117_s11 + $0x158] sm:$0xf] %v4498_v43  ;;  %4385 = vst [vmem:[%s6117_s11 + $0xbc] sm:$0xf] %v4520_v17  ;;  %v3138_v33 = vadd.f32 %v2292_v14, %v7259_v37  ;;  %v3258_v18 = vadd.f32 %v4596_v26, %v6876_v61  ;;  %v2294_v49 = vpop.f32.mrb[125].mxu1  ;;  %v2935_v2 = vpop.f32.mrb[125].mxu0 }
 0x205   : > { %4383 = vst [vmem:[%s6117_s11 + $0x9c] sm:$0xf] %v4518_v20  ;;  %v6969_v21 = vadd.f32 %v6777_v3, %v2294_v49  ;;  %v3256_v35 = vadd.f32 %v6852_v22, %v2935_v2  ;;  %v2296_v7 = vpop.f32.mrb[126].mxu1  ;;  %v4597_v48 = vpop.f32.mrb[126].mxu0 }
 0x206   : > { %v3170_v45 = vadd.f32 %v6630_v47, %v3138_v33  ;;  %v3290_v40 = vadd.f32 %v6630_v47, %v3258_v18  ;;  %v3139_v27 = vadd.f32 %v2296_v7, %v7260_v16  ;;  %v3259_v61 = vadd.f32 %v4597_v48, %v6886_v10  ;;  %v2298_v56 = vpop.f32.mrb[127].mxu1  ;;  %v2938_v51 = vpop.f32.mrb[127].mxu0 }
 0x207   : > { %v3288_v3 = vadd.f32 %v6630_v47, %v3256_v35  ;;  %v6978_v4 = vadd.f32 %v6787_v25, %v2298_v56  ;;  %v3257_v22 = vadd.f32 %v6862_v6, %v2938_v51  ;;  %v7261_v6 = vld [vmem:[#allocation28_spill] sm:$0xff] }
 0x208   : > { %v4499_v44 = vpack.c.bf16 %v3170_v45, %v3170_v45  ;;  %v4523_v46 = vpack.c.bf16 %v3290_v40, %v3290_v40  ;;  %v3171_v54 = vadd.f32 %v6630_v47, %v3139_v27  ;;  %v3291_v39 = vadd.f32 %v6630_v47, %v3259_v61 }
 0x209   : > { %v4521_v23 = vpack.c.bf16 %v3288_v3, %v3288_v3  ;;  %v3289_v10 = vadd.f32 %v6630_v47, %v3257_v22  ;;  %v7264_v22 = vld [vmem:[#allocation31_spill] sm:$0xff] }
 0x20a   : > { %4332 = vst [vmem:[%s6117_s11 + $0x170] sm:$0xf] %v4499_v44  ;;  %4388 = vst [vmem:[%s6117_s11 + $0xf4] sm:$0xf] %v4523_v46  ;;  %v4500_v0 = vpack.c.bf16 %v3171_v54, %v3171_v54  ;;  %v4524_v60 = vpack.c.bf16 %v3291_v39, %v3291_v39 }
 0x20b   : > { %4386 = vst [vmem:[%s6117_s11 + $0xd4] sm:$0xf] %v4521_v23  ;;  %v4522_v25 = vpack.c.bf16 %v3289_v10, %v3289_v10  ;;  %v2302_v55 = vpop.f32.mrb[128].mxu1  ;;  %v4600_v32 = vpop.f32.mrb[128].mxu0 }
 0x20c   : > { %4333 = vst [vmem:[%s6117_s11 + $0x178] sm:$0xf] %v4500_v0  ;;  %4389 = vst [vmem:[%s6117_s11 + $0xfc] sm:$0xf] %v4524_v60  ;;  %v3140_v11 = vadd.f32 %v2302_v55, %v7261_v6  ;;  %v3262_v5 = vadd.f32 %v4600_v32, %v6921_v31  ;;  %v2304_v1 = vpop.f32.mrb[129].mxu1  ;;  %v2951_v58 = vpop.f32.mrb[129].mxu0 }
 0x20d   : > { %4387 = vst [vmem:[%s6117_s11 + $0xdc] sm:$0xf] %v4522_v25  ;;  %v6993_v12 = vadd.f32 %v6801_v34, %v2304_v1  ;;  %v3260_v53 = vadd.f32 %v6897_v8, %v2951_v58  ;;  %v2306_v42 = vpop.f32.mrb[130].mxu1  ;;  %v4601_v29 = vpop.f32.mrb[130].mxu0 }
 0x20e   : > { %v3172_v9 = vadd.f32 %v6630_v47, %v3140_v11  ;;  %v3294_v41 = vadd.f32 %v6630_v47, %v3262_v5  ;;  %v3141_v13 = vadd.f32 %v2306_v42, %v7262_v38  ;;  %v3263_v31 = vadd.f32 %v4601_v29, %v6930_v52  ;;  %v2308_v59 = vpop.f32.mrb[131].mxu1  ;;  %v2954_v43 = vpop.f32.mrb[131].mxu0 }
 0x20f   : > { %v3292_v34 = vadd.f32 %v6630_v47, %v3260_v53  ;;  %v7002_v17 = vadd.f32 %v6811_v30, %v2308_v59  ;;  %v3261_v8 = vadd.f32 %v6906_v50, %v2954_v43  ;;  %v7263_v50 = vld [vmem:[#allocation30_spill] sm:$0xff] }
 0x210   : > { %v4501_v20 = vpack.c.bf16 %v3172_v9, %v3172_v9  ;;  %v4527_v14 = vpack.c.bf16 %v3294_v41, %v3294_v41  ;;  %v3173_v26 = vadd.f32 %v6630_v47, %v3141_v13  ;;  %v3295_v37 = vadd.f32 %v6630_v47, %v3263_v31  ;;  %v7266_v31 = vld [vmem:[#allocation33_spill] sm:$0xff] }
 0x211   : > { %v4525_v33 = vpack.c.bf16 %v3292_v34, %v3292_v34  ;;  %v3293_v52 = vadd.f32 %v6630_v47, %v3261_v8 }
 0x212   : > { %4334 = vst [vmem:[%s6117_s11 + $0x190] sm:$0xf] %v4501_v20  ;;  %4392 = vst [vmem:[%s6117_s11 + $0x134] sm:$0xf] %v4527_v14  ;;  %v4502_v18 = vpack.c.bf16 %v3173_v26, %v3173_v26  ;;  %v4528_v49 = vpack.c.bf16 %v3295_v37, %v3295_v37  ;;  %v4828_v37 = vld [vmem:[%s7122_s3] ss:$0 sm:$0xff] }
 0x213   : > { %4390 = vst [vmem:[%s6117_s11 + $0x114] sm:$0xf] %v4525_v33  ;;  %v4526_v30 = vpack.c.bf16 %v3293_v52, %v3293_v52  ;;  %v2312_v2 = vpop.f32.mrb[132].mxu1  ;;  %v4604_v35 = vpop.f32.mrb[132].mxu0 }
 0x214   : > { %4335 = vst [vmem:[%s6117_s11 + $0x198] sm:$0xf] %v4502_v18  ;;  %4393 = vst [vmem:[%s6117_s11 + $0x13c] sm:$0xf] %v4528_v49  ;;  %v3142_v7 = vadd.f32 %v2312_v2, %v7263_v50  ;;  %v3266_v48 = vadd.f32 %v4604_v35, %v6969_v21  ;;  %v2314_v45 = vpop.f32.mrb[133].mxu1  ;;  %v2967_v40 = vpop.f32.mrb[133].mxu0 }
 0x215   : > { %4391 = vst [vmem:[%s6117_s11 + $0x11c] sm:$0xf] %v4526_v30  ;;  %v3238_v16 = vadd.f32 %v6825_v15, %v2314_v45  ;;  %v3264_v27 = vadd.f32 %v6945_v63, %v2967_v40  ;;  %v2316_v61 = vpop.f32.mrb[134].mxu1  ;;  %v4605_v56 = vpop.f32.mrb[134].mxu0  ;;  %v7267_v35 = vld [vmem:[#allocation34_spill] sm:$0xff] }
 0x216   : > { %v3174_v51 = vadd.f32 %v6630_v47, %v3142_v7  ;;  %v3298_v3 = vadd.f32 %v6630_v47, %v3266_v48  ;;  %v3143_v44 = vadd.f32 %v2316_v61, %v7264_v22  ;;  %v3267_v46 = vadd.f32 %v4605_v56, %v6978_v4  ;;  %v2318_v21 = vpop.f32.mrb[135].mxu1  ;;  %v2970_v54 = vpop.f32.mrb[135].mxu0  ;;  %v7268_v56 = vld [vmem:[#allocation36_spill] sm:$0xff] }
 0x217   : > { %v3296_v39 = vadd.f32 %v6630_v47, %v3264_v27  ;;  %v3239_v15 = vadd.f32 %v6835_v36, %v2318_v21  ;;  %v3265_v63 = vadd.f32 %v6954_v62, %v2970_v54  ;;  %v7265_v62 = vld [vmem:[#allocation32_spill] sm:$0xff] }
 0x218   : > { %v4503_v23 = vpack.c.bf16 %v3174_v51, %v3174_v51  ;;  %v4531_v10 = vpack.c.bf16 %v3298_v3, %v3298_v3  ;;  %v3175_v0 = vadd.f32 %v6630_v47, %v3143_v44  ;;  %v3299_v60 = vadd.f32 %v6630_v47, %v3267_v46 }
 0x219   : > { %v4529_v25 = vpack.c.bf16 %v3296_v39, %v3296_v39  ;;  %v3297_v4 = vadd.f32 %v6630_v47, %v3265_v63 }
 0x21a   : > { %4336 = vst [vmem:[%s6117_s11 + $0x1b0] sm:$0xf] %v4503_v23  ;;  %4396 = vst [vmem:[%s6117_s11 + $0x174] sm:$0xf] %v4531_v10  ;;  %v4504_v55 = vpack.c.bf16 %v3175_v0, %v3175_v0  ;;  %v4532_v32 = vpack.c.bf16 %v3299_v60, %v3299_v60 }
 0x21b   : > { %4394 = vst [vmem:[%s6117_s11 + $0x154] sm:$0xf] %v4529_v25  ;;  %v4530_v36 = vpack.c.bf16 %v3297_v4, %v3297_v4  ;;  %v2322_v6 = vpop.f32.mrb[136].mxu1  ;;  %v4608_v11 = vpop.f32.mrb[136].mxu0 }
 0x21c   : > { %4337 = vst [vmem:[%s6117_s11 + $0x1b8] sm:$0xf] %v4504_v55  ;;  %4397 = vst [vmem:[%s6117_s11 + $0x17c] sm:$0xf] %v4532_v32  ;;  %v3144_v5 = vadd.f32 %v2322_v6, %v7265_v62  ;;  %v3270_v1 = vadd.f32 %v4608_v11, %v3238_v16  ;;  %v2324_v58 = vpop.f32.mrb[137].mxu1  ;;  %v2983_v53 = vpop.f32.mrb[137].mxu0 }
 0x21d   : > { %4395 = vst [vmem:[%s6117_s11 + $0x15c] sm:$0xf] %v4530_v36  ;;  %v3240_v42 = vadd.f32 %v6849_v57, %v2324_v58  ;;  %v3268_v29 = vadd.f32 %v6993_v12, %v2983_v53  ;;  %v2326_v9 = vpop.f32.mrb[138].mxu1  ;;  %v4609_v41 = vpop.f32.mrb[138].mxu0 }
 0x21e   : > { %v3176_v38 = vadd.f32 %v6630_v47, %v3144_v5  ;;  %v3302_v13 = vadd.f32 %v6630_v47, %v3270_v1  ;;  %v3145_v59 = vadd.f32 %v2326_v9, %v7266_v31  ;;  %v3271_v43 = vadd.f32 %v4609_v41, %v3239_v15  ;;  %v2328_v34 = vpop.f32.mrb[139].mxu1  ;;  %v2986_v8 = vpop.f32.mrb[139].mxu0 }
 0x21f   : > { %v3300_v20 = vadd.f32 %v6630_v47, %v3268_v29  ;;  %v3241_v57 = vadd.f32 %v6859_v28, %v2328_v34  ;;  %v3269_v12 = vadd.f32 %v7002_v17, %v2986_v8 }
 0x220   : > { %v4505_v14 = vpack.c.bf16 %v3176_v38, %v3176_v38  ;;  %v4535_v26 = vpack.c.bf16 %v3302_v13, %v3302_v13  ;;  %v3177_v33 = vadd.f32 %v4828_v37, %v3145_v59  ;;  %v3303_v52 = vadd.f32 %v4828_v37, %v3271_v43 }
 0x221   : > { %v4533_v18 = vpack.c.bf16 %v3300_v20, %v3300_v20  ;;  %v3301_v49 = vadd.f32 %v4828_v37, %v3269_v12 }
 0x222   : > { %4338 = vst [vmem:[%s6117_s11 + $0x1d0] sm:$0xf] %v4505_v14  ;;  %4400 = vst [vmem:[%s6117_s11 + $0x1b4] sm:$0xf] %v4535_v26  ;;  %v4506_v47 = vpack.c.bf16 %v3177_v33, %v3177_v33  ;;  %v4536_v30 = vpack.c.bf16 %v3303_v52, %v3303_v52 }
 0x223   : > { %4398 = vst [vmem:[%s6117_s11 + $0x194] sm:$0xf] %v4533_v18  ;;  %v4534_v28 = vpack.c.bf16 %v3301_v49, %v3301_v49  ;;  %v2332_v17 = vpop.f32.mrb[140].mxu1  ;;  %v4612_v2 = vpop.f32.mrb[140].mxu0 }
 0x224   : > { %4339 = vst [vmem:[%s6117_s11 + $0x1d8] sm:$0xf] %v4506_v47  ;;  %4401 = vst [vmem:[%s6117_s11 + $0x1bc] sm:$0xf] %v4536_v30  ;;  %v3146_v50 = vadd.f32 %v2332_v17, %v7267_v35  ;;  %v2334_v7 = vpop.f32.mrb[141].mxu1  ;;  %v2999_v48 = vpop.f32.mrb[141].mxu0 }
 0x225   : > { %4399 = vst [vmem:[%s6117_s11 + $0x19c] sm:$0xf] %v4534_v28  ;;  %v3242_v45 = vadd.f32 %v6873_v24, %v2334_v7  ;;  %v3272_v40 = vadd.f32 %v3240_v42, %v2999_v48  ;;  %v2336_v16 = vpop.f32.mrb[142].mxu1  ;;  %v4613_v27 = vpop.f32.mrb[142].mxu0 }
 0x226   : > { %v3178_v61 = vadd.f32 %v4828_v37, %v3146_v50  ;;  %v3147_v51 = vadd.f32 %v2336_v16, %v7268_v56  ;;  %v2338_v3 = vpop.f32.mrb[143].mxu1  ;;  %v3002_v22 = vpop.f32.mrb[143].mxu0 }
 0x227   : > { %v3274_v44 = vadd.f32 %v4612_v2, %v3242_v45  ;;  %v3304_v46 = vadd.f32 %v4828_v37, %v3272_v40  ;;  %v3243_v21 = vadd.f32 %v6883_v19, %v2338_v3  ;;  %v3273_v54 = vadd.f32 %v3241_v57, %v3002_v22 }
 0x228   : > { %v4507_v39 = vpack.c.bf16 %v3178_v61, %v3178_v61  ;;  %v3179_v24 = vadd.f32 %v4828_v37, %v3147_v51 }
 0x229   : > { %v3306_v15 = vadd.f32 %v4828_v37, %v3274_v44  ;;  %v4537_v63 = vpack.c.bf16 %v3304_v46, %v3304_v46  ;;  %v3275_v23 = vadd.f32 %v4613_v27, %v3243_v21  ;;  %v3305_v10 = vadd.f32 %v4828_v37, %v3273_v54 }
 0x22a   : > { %4340 = vst [vmem:[%s6117_s11 + $0x1f0] sm:$0xf] %v4507_v39  ;;  %v4508_v0 = vpack.c.bf16 %v3179_v24, %v3179_v24 }
 0x22b   : > { %v4539_v60 = vpack.c.bf16 %v3306_v15, %v3306_v15  ;;  %4402 = vst [vmem:[%s6117_s11 + $0x1d4] sm:$0xf] %v4537_v63  ;;  %v3307_v19 = vadd.f32 %v4828_v37, %v3275_v23  ;;  %v4538_v25 = vpack.c.bf16 %v3305_v10, %v3305_v10 }
 0x22c   : > { %4341 = vst [vmem:[%s6117_s11 + $0x1f8] sm:$0xf] %v4508_v0 }
 0x22d   : > { %4404 = vst [vmem:[%s6117_s11 + $0x1f4] sm:$0xf] %v4539_v60  ;;  %v4540_v4 = vpack.c.bf16 %v3307_v19, %v3307_v19  ;;  %4403 = vst [vmem:[%s6117_s11 + $0x1dc] sm:$0xf] %v4538_v25 }
 0x22f   : > { %4405 = vst [vmem:[%s6117_s11 + $0x1fc] sm:$0xf] %v4540_v4 }
 0x230   : > { %4842 = shalt.err (!%p4839_p5)
}
 0x231   : > { %s4843_s9 = scalar_lea.hbm %s7064_s5, 8192  ;;  %s4847_s12 = scalar_lea.hbm %s7123_s4, 16384 }
 0x232   : > { %p4844_p6 = scmp.ne.s32.totalorder %s7064_s5, %s4843_s9  ;;  %p4848_p10 = scmp.lt.u32.totalorder %s7064_s5, %s7123_s4 }
 0x233   : > { %p4849_p11 = scmp.lt.u32.totalorder %s4847_s12, %s4843_s9  ;;  %p4851_p13 = scmp.lt.u32.totalorder %s4843_s9, %s7064_s5 }
 0x234   : > { %p4845_p7 = pnand %p4844_p6, %p4978_p4 }
 0x235   : > { %p4850_p12 = por %p4849_p11, %p4848_p10 }
 0x236   : > { %p4846_p9 = pneg %p4845_p7 }
 0x237   : > { %p4852_p0 = por %p4851_p13, %p4850_p12 }
 0x239   : > { %p4853_p1 = pnand %p4852_p0, %p4846_p9 }
 0x23b   : > { %4856 = shalt.err (!%p4853_p1)
}
 0x23c   : > { %s4911_s22 = smov 128   ;;  %s4912_s24 = smov 8  }
 0x23d   : > { %4632 = dma.vmem_to_hbm [thread:$0]  (%p4978_p4), %s7066_s26, 8192, %s7064_s5, %s7073_s18, %s4911_s22, %s4911_s22, %s4912_s24  }
 0x23e PF: > { %p4639_p2 = scmp.ge.s32.totalorder %s4907_s20, 2  ;;  %s3981_s30 = sand.u32 1, %s4887_s15  }
 0x23f   : > { %s3982_s29 = scalar_lea.sflag [#allocation4], %s3981_s30 }
 0x240   : > { %p4635_p3 = pnand %p4639_p2, %p4985_p8 }
 0x242   : > { %4882 = dma.done.wait (!%p4635_p3), %s3982_s29, 8192  }
 0x243   : > { %4884 = vsyncadd (!%p4635_p3), %s3982_s29, 4294959104  ;;  %s17_s20 = sadd.s32 1, %s4907_s20   ;;  %s7269_s15 = smov %s4891_s16 }
 0x244   : > { %p14_p5 = scmp.ge.s32.totalorder %s17_s20, 4   ;;  %s7270_s16 = smov %s4895_s17 }
 0x245   : > { %s7271_s17 = smov %s4991_s28  ;;  %s7272_s18 = smov %s4903_s19 }
 0x246   : > { %s7273_s19 = smov %s7275_s23  ;;  %16 = sbr.rel (!%p14_p5) target bundleno = 4 (0x4), region = 77 }
 0x24d   :  { %3987 = vsyncpa [#allocation4], 1 }
 0x24e   :  { %3989 = vsyncpa [#allocation4 + $0x1], 1 }

</bundles_post_ra>
